<compile_context>
chip_gen: v7x
topology: tpu7x:2x2x1
jax: 0.10.0
libtpu: 0.0.40
codegen_flags: <defaults>
</compile_context>

<pallas_src>
import functools

import jax
import jax.numpy as jnp
from jax.experimental import pallas as pl
from jax.experimental.pallas import tpu as pltpu


def _round_up(x, m):
    return ((x + m - 1) // m) * m


def _pad_to(x, shape):
    return jnp.pad(x, [(0, t - s) for s, t in zip(x.shape, shape)])


def attention_kernel(enc_ref, dec_ref, we_ref, be_ref, wd_ref, bd_ref, wf_ref, bf_ref,
                     awe_ref, alpha_ref, *, valid_n):
    Bt, N_pad, D_pad = enc_ref.shape
    A_pad = we_ref.shape[1]

    enc = enc_ref[...]                                   # (Bt, N_pad, D_pad), compute dtype
    dec = dec_ref[...]                                   # (Bt, D_pad)

    # att1 = encoder_att(encoder_out): flatten batch into the MXU M-dimension.
    att1 = jnp.dot(enc.reshape(Bt * N_pad, D_pad), we_ref[...],
                   preferred_element_type=jnp.float32)
    att1 = att1.reshape(Bt, N_pad, A_pad) + be_ref[...]  # + (1, A_pad) bias

    # att2 = decoder_att(decoder_hidden): batched matmul, broadcast over pixels.
    att2 = jnp.dot(dec, wd_ref[...], preferred_element_type=jnp.float32) + bd_ref[...]

    h = jnp.maximum(att1 + att2[:, None, :], 0.0)        # (Bt, N_pad, A_pad), f32

    # full_att(...): output width 1 -> VPU multiply + lane reduce (XLU), no MXU issue.
    att = jnp.sum(h * wf_ref[...], axis=-1) + bf_ref[0, 0]   # (Bt, N_pad)

    # Mask padded pixel positions, then softmax along the lane (pixel) axis.
    n_idx = jax.lax.broadcasted_iota(jnp.int32, (Bt, N_pad), 1)
    att = jnp.where(n_idx < valid_n, att, jnp.float32(-1e30))
    m = jnp.max(att, axis=-1, keepdims=True)
    e = jnp.exp(att - m)
    alpha = e / jnp.sum(e, axis=-1, keepdims=True)       # (Bt, N_pad); padded cols are 0
    alpha_ref[...] = alpha

    # attention_weighted_encoding: VPU multiply + sublane reduce over pixels.
    enc_f32 = enc.astype(jnp.float32)
    awe_ref[...] = jnp.sum(enc_f32 * alpha[:, :, None], axis=1)   # (Bt, D_pad)


def attention_forward(encoder_out, decoder_hidden, params, *, block_b=8,
                      compute_dtype=jnp.float32):
    """encoder_out: (B, N, D), decoder_hidden: (B, D). Returns (awe (B,D), alpha (B,N))."""
    B, N, D = encoder_out.shape
    A = params["we"].shape[1]

    LANE, SUB = 128, 8
    N_pad = _round_up(N, LANE)          # lane-dense alpha / softmax axis
    D_pad = _round_up(D, LANE)          # lane-dense awe output
    A_pad = _round_up(A, LANE)          # fill MXU output lanes
    Bt = max(SUB, _round_up(min(block_b, B), SUB))
    B_pad = _round_up(B, Bt)

    # Pad operands (zeros); cast matmul operands to the compute dtype (bf16 on v6e/v7x
    # halves HBM traffic and uses the native MXU path; accumulation stays f32).
    enc = _pad_to(encoder_out, (B_pad, N_pad, D_pad)).astype(compute_dtype)
    dec = _pad_to(decoder_hidden, (B_pad, D_pad)).astype(compute_dtype)
    we = _pad_to(params["we"], (D_pad, A_pad)).astype(compute_dtype)
    wd = _pad_to(params["wd"], (D_pad, A_pad)).astype(compute_dtype)
    be = _pad_to(params["be"].reshape(1, A), (1, A_pad)).astype(jnp.float32)
    bd = _pad_to(params["bd"].reshape(1, A), (1, A_pad)).astype(jnp.float32)
    wf = _pad_to(params["wf"].reshape(1, A), (1, A_pad)).astype(jnp.float32)
    bf = params["bf"].reshape(1, 1).astype(jnp.float32)   # scalar -> SMEM

    kernel = functools.partial(attention_kernel, valid_n=N)
    full2d = lambda b: (0, 0)

    awe_p, alpha_p = pl.pallas_call(
        kernel,
        out_shape=(
            jax.ShapeDtypeStruct((B_pad, D_pad), jnp.float32),
            jax.ShapeDtypeStruct((B_pad, N_pad), jnp.float32),
        ),
        grid_spec=pltpu.PrefetchScalarGridSpec(
            num_scalar_prefetch=0,
            grid=(B_pad // Bt,),
            in_specs=[
                pl.BlockSpec((Bt, N_pad, D_pad), lambda b: (b, 0, 0)),   # encoder_out
                pl.BlockSpec((Bt, D_pad), lambda b: (b, 0)),             # decoder_hidden
                pl.BlockSpec((D_pad, A_pad), full2d),                    # W_enc
                pl.BlockSpec((1, A_pad), full2d),                        # b_enc
                pl.BlockSpec((D_pad, A_pad), full2d),                    # W_dec
                pl.BlockSpec((1, A_pad), full2d),                        # b_dec
                pl.BlockSpec((1, A_pad), full2d),                        # W_full (row)
                pl.BlockSpec(memory_space=pltpu.MemorySpace.SMEM),       # b_full scalar
            ],
            out_specs=[
                pl.BlockSpec((Bt, D_pad), lambda b: (b, 0)),             # awe
                pl.BlockSpec((Bt, N_pad), lambda b: (b, 0)),             # alpha
            ],
        ),
        compiler_params=pltpu.CompilerParams(
            dimension_semantics=("parallel",),
            vmem_limit_bytes=48 * 1024 * 1024,
        ),
    )(enc, dec, we, be, wd, bd, wf, bf)

    return awe_p[:B, :D], alpha_p[:B, :N]


def reference_forward(encoder_out, decoder_hidden, params):
    att1 = encoder_out @ params["we"] + params["be"]                 # (B, N, A)
    att2 = decoder_hidden @ params["wd"] + params["bd"]              # (B, A)
    h = jnp.maximum(att1 + att2[:, None, :], 0.0)
    att = (h @ params["wf"] + params["bf"])[..., 0]                  # (B, N)
    alpha = jax.nn.softmax(att, axis=1)
    awe = jnp.sum(encoder_out * alpha[:, :, None], axis=1)
    return awe, alpha


if __name__ == "__main__":
    # Small shapes consistent with the module. Note: the module applies
    # nn.Linear(decoder_dim, attention_dim) to encoder_out, so the encoder
    # feature dim must equal decoder_dim.
    B, N = 2, 8          # batch, num_pixels
    D = 32               # decoder_dim (== encoder feature dim per module code)
    A = 32               # attention_dim

    key = jax.random.PRNGKey(0)
    k = jax.random.split(key, 8)
    encoder_out = jax.random.normal(k[0], (B, N, D), dtype=jnp.float32)
    decoder_hidden = jax.random.normal(k[1], (B, D), dtype=jnp.float32)

    params = {
        "we": 0.1 * jax.random.normal(k[2], (D, A), dtype=jnp.float32),
        "be": 0.1 * jax.random.normal(k[3], (A,), dtype=jnp.float32),
        "wd": 0.1 * jax.random.normal(k[4], (D, A), dtype=jnp.float32),
        "bd": 0.1 * jax.random.normal(k[5], (A,), dtype=jnp.float32),
        "wf": 0.1 * jax.random.normal(k[6], (A, 1), dtype=jnp.float32),
        "bf": 0.1 * jax.random.normal(k[7], (1,), dtype=jnp.float32),
    }

    awe_want, alpha_want = reference_forward(encoder_out, decoder_hidden, params)

    # f32 path — tight tolerance.
    awe, alpha = attention_forward(encoder_out, decoder_hidden, params)
    jax.block_until_ready((awe, alpha))
    assert jnp.allclose(awe, awe_want, atol=1e-5, rtol=1e-5)
    assert jnp.allclose(alpha, alpha_want, atol=1e-5, rtol=1e-5)

    # bf16 matmul path (v6e/v7x-friendly) — relaxed tolerance for bf16 inputs.
    awe_b, alpha_b = attention_forward(encoder_out, decoder_hidden, params,
                                       compute_dtype=jnp.bfloat16)
    jax.block_until_ready((awe_b, alpha_b))
    assert jnp.allclose(awe_b, awe_want, atol=5e-2, rtol=5e-2)
    assert jnp.allclose(alpha_b, alpha_want, atol=5e-2, rtol=5e-2)

    print("KERNEL_OK")
</pallas_src>

<mosaic_0001>
module attributes {stable_mosaic.version = 11 : i64} {
  func.func @attention_kernel(%arg0: i32, %arg1: memref<8x128x128xf32, #tpu.memory_space<vmem>>, %arg2: memref<8x128xf32, #tpu.memory_space<vmem>>, %arg3: memref<128x128xf32, #tpu.memory_space<vmem>>, %arg4: memref<1x128xf32, #tpu.memory_space<vmem>>, %arg5: memref<128x128xf32, #tpu.memory_space<vmem>>, %arg6: memref<1x128xf32, #tpu.memory_space<vmem>>, %arg7: memref<1x128xf32, #tpu.memory_space<vmem>>, %arg8: memref<1x1xf32, #tpu.memory_space<smem>>, %arg9: memref<8x128xf32, #tpu.memory_space<vmem>>, %arg10: memref<8x128xf32, #tpu.memory_space<vmem>>) attributes {dimension_semantics = [#tpu.dimension_semantics<parallel>], iteration_bounds = array<i64: 1>, scalar_prefetch = 0 : i64, scratch_operands = 0 : i64, tpu.core_type = #tpu.core_type<tc>, window_params = [{transform_indices = @transform_0, window_bounds = array<i64: 8, 128, 128>}, {transform_indices = @transform_1, window_bounds = array<i64: 8, 128>}, {pipeline_mode = #tpu.pipeline_mode<synchronous>, transform_indices = @transform_2, window_bounds = array<i64: 128, 128>}, {pipeline_mode = #tpu.pipeline_mode<synchronous>, transform_indices = @transform_3, window_bounds = array<i64: 1, 128>}, {pipeline_mode = #tpu.pipeline_mode<synchronous>, transform_indices = @transform_4, window_bounds = array<i64: 128, 128>}, {pipeline_mode = #tpu.pipeline_mode<synchronous>, transform_indices = @transform_5, window_bounds = array<i64: 1, 128>}, {pipeline_mode = #tpu.pipeline_mode<synchronous>, transform_indices = @transform_6, window_bounds = array<i64: 1, 128>}, {transform_indices = @transform_7, window_bounds = array<i64: 1, 1>}, {transform_indices = @transform_8, window_bounds = array<i64: 8, 128>}, {transform_indices = @transform_9, window_bounds = array<i64: 8, 128>}]} {
    %c0 = arith.constant 0 : index
    %c0_0 = arith.constant 0 : index
    %c0_1 = arith.constant 0 : index
    %0 = vector.load %arg1[%c0, %c0_0, %c0_1] : memref<8x128x128xf32, #tpu.memory_space<vmem>>, vector<8x128x128xf32>
    %c0_2 = arith.constant 0 : index
    %c0_3 = arith.constant 0 : index
    %1 = vector.load %arg2[%c0_2, %c0_3] : memref<8x128xf32, #tpu.memory_space<vmem>>, vector<8x128xf32>
    %2 = vector.shape_cast %0 : vector<8x128x128xf32> to vector<1024x128xf32>
    %c0_4 = arith.constant 0 : index
    %c0_5 = arith.constant 0 : index
    %3 = vector.load %arg3[%c0_4, %c0_5] : memref<128x128xf32, #tpu.memory_space<vmem>>, vector<128x128xf32>
    %cst = arith.constant dense<0.000000e+00> : vector<1024x128xf32>
    %4 = tpu.matmul %2, %3, %cst {dimension_numbers = #tpu.dot_dimension_numbers<[1], [0], [0], [1], [0, 0, 1, 1], [], []>} : vector<1024x128xf32>, vector<128x128xf32>, vector<1024x128xf32> -> vector<1024x128xf32>
    %5 = vector.shape_cast %4 : vector<1024x128xf32> to vector<8x128x128xf32>
    %c0_6 = arith.constant 0 : index
    %c0_7 = arith.constant 0 : index
    %6 = vector.load %arg4[%c0_6, %c0_7] : memref<1x128xf32, #tpu.memory_space<vmem>>, vector<1x128xf32>
    %7 = vector.shape_cast %6 : vector<1x128xf32> to vector<1x1x128xf32>
    %8 = vector.broadcast %7 : vector<1x1x128xf32> to vector<8x128x128xf32>
    %9 = arith.addf %5, %8 : vector<8x128x128xf32>
    %c0_8 = arith.constant 0 : index
    %c0_9 = arith.constant 0 : index
    %10 = vector.load %arg5[%c0_8, %c0_9] : memref<128x128xf32, #tpu.memory_space<vmem>>, vector<128x128xf32>
    %cst_10 = arith.constant dense<0.000000e+00> : vector<8x128xf32>
    %11 = tpu.matmul %1, %10, %cst_10 {dimension_numbers = #tpu.dot_dimension_numbers<[1], [0], [0], [1], [0, 0, 1, 1], [], []>} : vector<8x128xf32>, vector<128x128xf32>, vector<8x128xf32> -> vector<8x128xf32>
    %c0_11 = arith.constant 0 : index
    %c0_12 = arith.constant 0 : index
    %12 = vector.load %arg6[%c0_11, %c0_12] : memref<1x128xf32, #tpu.memory_space<vmem>>, vector<1x128xf32>
    %13 = vector.broadcast %12 : vector<1x128xf32> to vector<8x128xf32>
    %14 = arith.addf %11, %13 : vector<8x128xf32>
    %15 = vector.shape_cast %14 : vector<8x128xf32> to vector<8x1x128xf32>
    %16 = vector.broadcast %15 : vector<8x1x128xf32> to vector<8x128x128xf32>
    %17 = arith.addf %9, %16 : vector<8x128x128xf32>
    %cst_13 = arith.constant 0.000000e+00 : f32
    %18 = vector.broadcast %cst_13 : f32 to vector<8x128x128xf32>
    %19 = arith.maximumf %17, %18 : vector<8x128x128xf32>
    %c0_14 = arith.constant 0 : index
    %c0_15 = arith.constant 0 : index
    %20 = vector.load %arg7[%c0_14, %c0_15] : memref<1x128xf32, #tpu.memory_space<vmem>>, vector<1x128xf32>
    %21 = vector.shape_cast %20 : vector<1x128xf32> to vector<1x1x128xf32>
    %22 = vector.broadcast %21 : vector<1x1x128xf32> to vector<8x128x128xf32>
    %23 = arith.mulf %19, %22 : vector<8x128x128xf32>
    %cst_16 = arith.constant dense<0.000000e+00> : vector<8x128xf32>
    %24 = vector.multi_reduction <add>, %23, %cst_16 [2] : vector<8x128x128xf32> to vector<8x128xf32>
    %c0_17 = arith.constant 0 : index
    %c0_18 = arith.constant 0 : index
    %25 = memref.load %arg8[%c0_17, %c0_18] : memref<1x1xf32, #tpu.memory_space<smem>>
    %26 = vector.broadcast %25 : f32 to vector<8x128xf32>
    %27 = arith.addf %24, %26 : vector<8x128xf32>
    %28 = tpu.iota {dimensions = array<i32: 1>} : vector<8x128xi32>
    %c8_i32 = arith.constant 8 : i32
    %29 = vector.broadcast %c8_i32 : i32 to vector<8x128xi32>
    %30 = arith.cmpi slt, %28, %29 : vector<8x128xi32>
    %cst_19 = arith.constant -1.000000e+30 : f32
    %31 = vector.broadcast %cst_19 : f32 to vector<8x128xf32>
    %32 = arith.select %30, %27, %31 : vector<8x128xi1>, vector<8x128xf32>
    %cst_20 = arith.constant dense<0xFF800000> : vector<8xf32>
    %33 = vector.multi_reduction <maximumf>, %32, %cst_20 [1] : vector<8x128xf32> to vector<8xf32>
    %34 = vector.shape_cast %33 : vector<8xf32> to vector<8x1xf32>
    %35 = vector.broadcast %34 : vector<8x1xf32> to vector<8x128xf32>
    %36 = arith.subf %32, %35 : vector<8x128xf32>
    %37 = math.exp %36 : vector<8x128xf32>
    %cst_21 = arith.constant dense<0.000000e+00> : vector<8xf32>
    %38 = vector.multi_reduction <add>, %37, %cst_21 [1] : vector<8x128xf32> to vector<8xf32>
    %39 = vector.shape_cast %38 : vector<8xf32> to vector<8x1xf32>
    %40 = vector.broadcast %39 : vector<8x1xf32> to vector<8x128xf32>
    %41 = arith.divf %37, %40 : vector<8x128xf32>
    %c0_22 = arith.constant 0 : index
    %c0_23 = arith.constant 0 : index
    %42 = vector.load %arg10[%c0_22, %c0_23] : memref<8x128xf32, #tpu.memory_space<vmem>>, vector<8x128xf32>
    tpu.vector_store %arg10[%c0_22, %c0_23], %41 {strides = array<i32>} : memref<8x128xf32, #tpu.memory_space<vmem>>, vector<8x128xf32>,
    %43 = vector.shape_cast %41 : vector<8x128xf32> to vector<8x128x1xf32>
    %44 = vector.broadcast %43 : vector<8x128x1xf32> to vector<8x128x128xf32>
    %45 = arith.mulf %0, %44 : vector<8x128x128xf32>
    %cst_24 = arith.constant dense<0.000000e+00> : vector<8x128xf32>
    %46 = vector.multi_reduction <add>, %45, %cst_24 [1] : vector<8x128x128xf32> to vector<8x128xf32>
    %c0_25 = arith.constant 0 : index
    %c0_26 = arith.constant 0 : index
    %47 = vector.load %arg9[%c0_25, %c0_26] : memref<8x128xf32, #tpu.memory_space<vmem>>, vector<8x128xf32>
    tpu.vector_store %arg9[%c0_25, %c0_26], %46 {strides = array<i32>} : memref<8x128xf32, #tpu.memory_space<vmem>>, vector<8x128xf32>,
    return
  }
  func.func @transform_0(%arg0: i32) -> (i32, i32, i32) {
    %c0_i32 = arith.constant 0 : i32
    %c0_i32_0 = arith.constant 0 : i32
    %c0_i32_1 = arith.constant 0 : i32
    return %arg0, %c0_i32, %c0_i32_0 : i32, i32, i32
  }
  func.func @transform_1(%arg0: i32) -> (i32, i32) {
    %c0_i32 = arith.constant 0 : i32
    %c0_i32_0 = arith.constant 0 : i32
    return %arg0, %c0_i32 : i32, i32
  }
  func.func @transform_2(%arg0: i32) -> (i32, i32) {
    %c0_i32 = arith.constant 0 : i32
    %c0_i32_0 = arith.constant 0 : i32
    %c0_i32_1 = arith.constant 0 : i32
    return %c0_i32, %c0_i32_0 : i32, i32
  }
  func.func @transform_3(%arg0: i32) -> (i32, i32) {
    %c0_i32 = arith.constant 0 : i32
    %c0_i32_0 = arith.constant 0 : i32
    %c0_i32_1 = arith.constant 0 : i32
    return %c0_i32, %c0_i32_0 : i32, i32
  }
  func.func @transform_4(%arg0: i32) -> (i32, i32) {
    %c0_i32 = arith.constant 0 : i32
    %c0_i32_0 = arith.constant 0 : i32
    %c0_i32_1 = arith.constant 0 : i32
    return %c0_i32, %c0_i32_0 : i32, i32
  }
  func.func @transform_5(%arg0: i32) -> (i32, i32) {
    %c0_i32 = arith.constant 0 : i32
    %c0_i32_0 = arith.constant 0 : i32
    %c0_i32_1 = arith.constant 0 : i32
    return %c0_i32, %c0_i32_0 : i32, i32
  }
  func.func @transform_6(%arg0: i32) -> (i32, i32) {
    %c0_i32 = arith.constant 0 : i32
    %c0_i32_0 = arith.constant 0 : i32
    %c0_i32_1 = arith.constant 0 : i32
    return %c0_i32, %c0_i32_0 : i32, i32
  }
  func.func @transform_7(%arg0: i32) -> (i32, i32) {
    %c0_i32 = arith.constant 0 : i32
    %c0_i32_0 = arith.constant 0 : i32
    %c0_i32_1 = arith.constant 0 : i32
    return %c0_i32, %c0_i32_0 : i32, i32
  }
  func.func @transform_8(%arg0: i32) -> (i32, i32) {
    %c0_i32 = arith.constant 0 : i32
    %c0_i32_0 = arith.constant 0 : i32
    return %arg0, %c0_i32 : i32, i32
  }
  func.func @transform_9(%arg0: i32) -> (i32, i32) {
    %c0_i32 = arith.constant 0 : i32
    %c0_i32_0 = arith.constant 0 : i32
    return %arg0, %c0_i32 : i32, i32
  }
}

</mosaic_0001>

<bundles_post_ra>
// kernel: tpu_custom_call.1
= control target key start
LH: loop header
LB: loop body
LE: loop exit
PB: predicated region body
PF: predicated region fallthrough
CT: control target
= control target key end

     0   :  { %16 = vsyncpa [#allocation4], 0  ;;  %s6740_s0 = inlined_call_operand.hbm [shape: f32[8,128,128], index: 0, kind: input, shape index: {}]   ;;  %s6741_s1 = inlined_call_operand.hbm [shape: f32[8,128], index: 1, kind: input, shape index: {}]   ;;  %s6742_s2 = inlined_call_operand.hbm [shape: f32[128,128], index: 2, kind: input, shape index: {}]   ;;  %s6743_s3 = inlined_call_operand.vmem [shape: f32[1,128], index: 3, kind: input, shape index: {}]   ;;  %s6744_s4 = inlined_call_operand.hbm [shape: f32[128,128], index: 4, kind: input, shape index: {}]   ;;  %s6745_s5 = inlined_call_operand.vmem [shape: f32[1,128], index: 5, kind: input, shape index: {}]   ;;  %s6746_s6 = inlined_call_operand.vmem [shape: f32[1,128], index: 6, kind: input, shape index: {}]   ;;  %s6747_s7 = inlined_call_operand.<no memory space> [shape: f32[1,1], index: 7, kind: input, shape index: {}]   ;;  %s6748_s8 = inlined_call_operand.hbm [shape: f32[8,128], index: 8, kind: output, shape index: {0}]   ;;  %s6749_s9 = inlined_call_operand.hbm [shape: f32[8,128], index: 9, kind: output, shape index: {1}]  }
   0x1   :  { %17 = vsyncpa [#allocation7], 0 }
   0x2   :  { %18 = vsyncpa [#allocation10], 0 }
   0x3   :  { %19 = vsyncpa [#allocation5], 0 }
   0x4   :  { %20 = vsyncpa [#allocation13], 0  ;;  %s4513_s30 = smov [#allocation6]   ;;  %s4514_s11 = smov [#allocation3]  }
   0x5   :  { %s39_s10 = sshll.u32 %s4513_s30, 4  ;;  %s26_s12 = sshll.u32 %s4514_s11, 4  ;;  %s40_s10 = int_to_ptr.vmem [resolvable:$true] %s39_s10  ;;  %s4575_s12 = int_to_ptr.vmem [resolvable:$true] %s26_s12 }
   0x6   :  { %s4371_s15 = scalar_lea.hbm %s6741_s1, 128 }
   0x7   :  { %p4372_p0 = scmp.ne.s32.totalorder %s6741_s1, %s4371_s15  ;;  %p4375_p1 = scmp.lt.u32.totalorder %s4371_s15, %s6741_s1 }
   0x9   :  { %p4377_p2 = pnand %p4375_p1, %p4372_p0 }
   0xb   :  { %4380 = shalt.err (!%p4377_p2)
}
   0xc   :  { %s4381_s20 = scalar_lea.vmem %s40_s10, 128  ;;  %p4386_p4 = scmp.lt.s32.totalorder %s40_s10, %s40_s10 }
   0xd   :  { %p4382_p3 = scmp.ne.s32.totalorder %s40_s10, %s4381_s20  ;;  %p4387_p5 = scmp.lt.s32.totalorder %s4381_s20, %s4381_s20 }
   0xf   :  { %p4388_p6 = por %p4387_p5, %p4386_p4 }
  0x11   :  { %p4389_p7 = pnand %p4388_p6, %p4382_p3 }
  0x13   :  { %4392 = shalt.err (!%p4389_p7)
}
  0x14   :  { %42 = dma.hbm_to_vmem [thread:$0]  %s6741_s1, 128, %s40_s10, [#allocation7]  }
  0x15   :  { %s4393_s25 = scalar_lea.hbm %s6740_s0, 16384 }
  0x16   :  { %p4394_p8 = scmp.ne.s32.totalorder %s6740_s0, %s4393_s25  ;;  %p4397_p9 = scmp.lt.u32.totalorder %s4393_s25, %s6740_s0 }
  0x18   :  { %p4399_p10 = pnand %p4397_p9, %p4394_p8 }
  0x1a   :  { %4402 = shalt.err (!%p4399_p10)
}
  0x1b   :  { %s4403_s30 = scalar_lea.vmem %s4575_s12, 16384  ;;  %p4408_p12 = scmp.lt.s32.totalorder %s4575_s12, %s4575_s12 }
  0x1c   :  { %p4404_p11 = scmp.ne.s32.totalorder %s4575_s12, %s4403_s30  ;;  %p4409_p13 = scmp.lt.s32.totalorder %s4403_s30, %s4403_s30 }
  0x1e   :  { %p4410_p0 = por %p4409_p13, %p4408_p12 }
  0x20   :  { %p4411_p1 = pnand %p4410_p0, %p4404_p11 }
  0x22   :  { %4414 = shalt.err (!%p4411_p1)
}
  0x23   :  { %s4515_s1 = smov 128   ;;  %s4516_s10 = smov 8  }
  0x24   :  { %32 = dma.hbm_to_vmem [thread:$0]  %s6740_s0, 16384, %s4575_s12, [#allocation4], %s4515_s1, %s4515_s1, %s4516_s10  }
  0x25   :  { %s4517_s14 = smov [#allocation8]   ;;  %s4518_s16 = smov [#allocation9]  }
  0x26   :  { %s48_s15 = sshll.u32 %s4517_s14, 4  ;;  %s62_s17 = sshll.u32 %s4518_s16, 4  ;;  %s49_s15 = int_to_ptr.vmem [resolvable:$true] %s48_s15  ;;  %s4609_s17 = int_to_ptr.vmem [resolvable:$true] %s62_s17 }
  0x27   :  { %s4415_s20 = scalar_lea.hbm %s6742_s2, 2048 }
  0x28   :  { %p4416_p2 = scmp.ne.s32.totalorder %s6742_s2, %s4415_s20  ;;  %p4419_p3 = scmp.lt.u32.totalorder %s4415_s20, %s6742_s2 }
  0x2a   :  { %p4421_p4 = pnand %p4419_p3, %p4416_p2 }
  0x2c   :  { %4424 = shalt.err (!%p4421_p4)
}
  0x2d   :  { %s4425_s0 = scalar_lea.vmem %s49_s15, 2048  ;;  %p4430_p6 = scmp.lt.s32.totalorder %s49_s15, %s49_s15 }
  0x2e   :  { %p4426_p5 = scmp.ne.s32.totalorder %s49_s15, %s4425_s0  ;;  %p4431_p7 = scmp.lt.s32.totalorder %s4425_s0, %s4425_s0 }
  0x30   :  { %p4432_p8 = por %p4431_p7, %p4430_p6 }
  0x32   :  { %p4433_p9 = pnand %p4432_p8, %p4426_p5 }
  0x34   :  { %4436 = shalt.err (!%p4433_p9)
}
  0x35   :  { %54 = dma.hbm_to_vmem [thread:$0]  %s6742_s2, 2048, %s49_s15, [#allocation7], %s4515_s1, %s4515_s1, %s4516_s10  }
  0x36   :  { %s4437_s28 = scalar_lea.hbm %s6744_s4, 2048 }
  0x37   :  { %p4438_p10 = scmp.ne.s32.totalorder %s6744_s4, %s4437_s28  ;;  %p4441_p11 = scmp.lt.u32.totalorder %s4437_s28, %s6744_s4 }
  0x39   :  { %p4443_p12 = pnand %p4441_p11, %p4438_p10 }
  0x3b   :  { %4446 = shalt.err (!%p4443_p12)
}
  0x3c   :  { %s4447_s14 = scalar_lea.vmem %s4609_s17, 2048  ;;  %p4452_p0 = scmp.lt.s32.totalorder %s4609_s17, %s4609_s17 }
  0x3d   :  { %p4448_p13 = scmp.ne.s32.totalorder %s4609_s17, %s4447_s14  ;;  %p4453_p1 = scmp.lt.s32.totalorder %s4447_s14, %s4447_s14 }
  0x3f   :  { %p4454_p2 = por %p4453_p1, %p4452_p0 }
  0x41   :  { %p4455_p3 = pnand %p4454_p2, %p4448_p13 }
  0x43   :  { %4458 = shalt.err (!%p4455_p3)
}
  0x44   :  { %68 = dma.hbm_to_vmem [thread:$0]  %s6744_s4, 2048, %s4609_s17, [#allocation10], %s4515_s1, %s4515_s1, %s4516_s10  }
  0x45   :  { %4503 = dma.done.wait [#allocation4], 16384  }
  0x46   :  { %4504 = vsyncadd [#allocation4], 4294950912 }
  0x47   :  { %4505 = dma.done.wait [#allocation7], 2176  }
  0x48   :  { %4506 = vsyncadd [#allocation7], 4294965120 }
  0x49   :  { %4507 = dma.done.wait [#allocation10], 2048  }
  0x4a   :  { %4508 = vsyncadd [#allocation10], 4294965248  ;;  %v216_v0 = vld [vmem:[#allocation8] sm:$0xff]  ;;  %v217_v1 = vld [vmem:[#allocation8 + $0x8] sm:$0xff]  ;;  %v4519_v31 = vmov 0.0|0.0   ;;  %vm4520_vm0 = vmmov 0  }
  0x4b   :  { %v218_v2 = vld [vmem:[#allocation8 + $0x10] sm:$0xff]  ;;  %v4154_v3 = vpack.c.bf16 %v217_v1, %v216_v0  ;;  %v219_v4 = vld [vmem:[#allocation8 + $0x18] sm:$0xff]  ;;  %v220_v6 = vld [vmem:[#allocation8 + $0x20] sm:$0xff]  ;;  %vm2172_vm1 = vcmask 130112   ;;  %vm2179_vm2 = vcmask 195712   ;;  %vm2186_vm3 = vcmask 261312  }
  0x4c   :  { %v4158_v5 = vpack.c.bf16 %v219_v4, %v218_v2  ;;  %v221_v7 = vld [vmem:[#allocation8 + $0x28] sm:$0xff]  ;;  %v222_v10 = vld [vmem:[#allocation8 + $0x30] sm:$0xff]  ;;  %v223_v11 = vld [vmem:[#allocation8 + $0x38] sm:$0xff]  ;;  %vm2193_vm4 = vcmask 326912   ;;  %vm2200_vm5 = vcmask 392512   ;;  %vm2207_vm6 = vcmask 458112  }
  0x4d   :  { %4210 = vmatprep.subr.bf16.mxu1 %v4154_v3  ;;  %4155 = vmatprep.subr.bf16.mxu0 %v4154_v3  ;;  %v4162_v8 = vpack.c.bf16 %v221_v7, %v220_v6  ;;  %v153_v9 = vld [vmem:[#allocation3 + $0x210] sm:$0xff]  ;;  %v87_v12 = vld [vmem:[#allocation3] sm:$0xff]  ;;  %v4166_v13 = vpack.c.bf16 %v223_v11, %v222_v10  ;;  %v224_v14 = vld [vmem:[#allocation8 + $0x40] sm:$0xff]  ;;  %vm2214_vm7 = vcmask 523712   ;;  %vm2221_vm8 = vcmask 589312  }
  0x4e   :  { %4218 = vmatpush3.bf16.msra.mxu1 %v4154_v3  ;;  %4157 = vmatpush3.bf16.msra.mxu0 %v4154_v3  ;;  %v225_v15 = vld [vmem:[#allocation8 + $0x48] sm:$0xff]  ;;  %v226_v17 = vld [vmem:[#allocation8 + $0x50] sm:$0xff]  ;;  %v227_v18 = vld [vmem:[#allocation8 + $0x58] sm:$0xff]  ;;  %vm6757_vm9 = vcmask 654912   ;;  %vm2235_vm10 = vcmask 720512   ;;  %vm2242_vm11 = vcmask 786112  }
  0x4f   :  { %4211 = vmatprep.subr.bf16.mxu1 %v4158_v5  ;;  %4159 = vmatprep.subr.bf16.mxu0 %v4158_v5  ;;  %v4170_v16 = vpack.c.bf16 %v225_v15, %v224_v14  ;;  %v4174_v19 = vpack.c.bf16 %v227_v18, %v226_v17  ;;  %v228_v20 = vld [vmem:[#allocation8 + $0x60] sm:$0xff]  ;;  %v229_v21 = vld [vmem:[#allocation8 + $0x68] sm:$0xff]  ;;  %v230_v23 = vld [vmem:[#allocation8 + $0x70] sm:$0xff]  ;;  %vm2249_vm12 = vcmask 851712   ;;  %vm2256_vm13 = vcmask 917312  }
  0x50   :  { %4026 = vmatprep.mubr.f32.mxu1 %v153_v9  ;;  %3927 = vmatprep.mubr.f32.mxu0 %v87_v12  ;;  %v4178_v22 = vpack.c.bf16 %v229_v21, %v228_v20  ;;  %v231_v24 = vld [vmem:[#allocation8 + $0x78] sm:$0xff]  ;;  %v1072_v26 = vld [vmem:[#allocation9] sm:$0xff]  ;;  %v1073_v27 = vld [vmem:[#allocation9 + $0x8] sm:$0xff]  ;;  %vm2263_vm14 = vcmask 982912   ;;  %vm2270_vm15 = vcmask 1048512  }
  0x51   :  { %v4182_v25 = vpack.c.bf16 %v231_v24, %v230_v23  ;;  %v154_v28 = vld [vmem:[#allocation3 + $0x218] sm:$0xff]  ;;  %v4187_v29 = vpack.c.bf16 %v1073_v27, %v1072_v26  ;;  %v88_v30 = vld [vmem:[#allocation3 + $0x8] sm:$0xff]  ;;  %v155_v32 = vld [vmem:[#allocation3 + $0x220] sm:$0xff] }
  0x52   :  { %4219 = vmatpush3.bf16.msra.mxu1 %v4158_v5  ;;  %4161 = vmatpush3.bf16.msra.mxu0 %v4158_v5  ;;  %v89_v33 = vld [vmem:[#allocation3 + $0x10] sm:$0xff]  ;;  %v1074_v34 = vld [vmem:[#allocation9 + $0x10] sm:$0xff]  ;;  %v1075_v35 = vld [vmem:[#allocation9 + $0x18] sm:$0xff] }
  0x53   :  { %4212 = vmatprep.subr.bf16.mxu1 %v4162_v8  ;;  %4163 = vmatprep.subr.bf16.mxu0 %v4162_v8  ;;  %v156_v36 = vld [vmem:[#allocation3 + $0x228] sm:$0xff]  ;;  %v90_v37 = vld [vmem:[#allocation3 + $0x18] sm:$0xff]  ;;  %v157_v38 = vld [vmem:[#allocation3 + $0x230] sm:$0xff]  ;;  %v4190_v40 = vpack.c.bf16 %v1075_v35, %v1074_v34 }
  0x54   :  { %v91_v39 = vld [vmem:[#allocation3 + $0x20] sm:$0xff]  ;;  %v1076_v41 = vld [vmem:[#allocation9 + $0x20] sm:$0xff]  ;;  %v1077_v42 = vld [vmem:[#allocation9 + $0x28] sm:$0xff] }
  0x55   :  { %v158_v43 = vld [vmem:[#allocation3 + $0x238] sm:$0xff]  ;;  %v92_v44 = vld [vmem:[#allocation3 + $0x28] sm:$0xff]  ;;  %v159_v45 = vld [vmem:[#allocation3 + $0x240] sm:$0xff]  ;;  %v4193_v47 = vpack.c.bf16 %v1077_v42, %v1076_v41 }
  0x56   :  { %4220 = vmatpush3.bf16.msra.mxu1 %v4162_v8  ;;  %4165 = vmatpush3.bf16.msra.mxu0 %v4162_v8  ;;  %v93_v46 = vld [vmem:[#allocation3 + $0x30] sm:$0xff]  ;;  %v1078_v48 = vld [vmem:[#allocation9 + $0x30] sm:$0xff]  ;;  %v1079_v49 = vld [vmem:[#allocation9 + $0x38] sm:$0xff] }
  0x57   :  { %4213 = vmatprep.subr.bf16.mxu1 %v4166_v13  ;;  %4167 = vmatprep.subr.bf16.mxu0 %v4166_v13  ;;  %v160_v50 = vld [vmem:[#allocation3 + $0x248] sm:$0xff]  ;;  %v94_v51 = vld [vmem:[#allocation3 + $0x38] sm:$0xff]  ;;  %v161_v52 = vld [vmem:[#allocation3 + $0x250] sm:$0xff]  ;;  %v4196_v54 = vpack.c.bf16 %v1079_v49, %v1078_v48 }
  0x58   :  { %v95_v53 = vld [vmem:[#allocation3 + $0x40] sm:$0xff]  ;;  %v1080_v55 = vld [vmem:[#allocation9 + $0x40] sm:$0xff]  ;;  %v1081_v56 = vld [vmem:[#allocation9 + $0x48] sm:$0xff] }
  0x59   :  { %v162_v57 = vld [vmem:[#allocation3 + $0x258] sm:$0xff]  ;;  %v96_v58 = vld [vmem:[#allocation3 + $0x48] sm:$0xff]  ;;  %v163_v59 = vld [vmem:[#allocation3 + $0x260] sm:$0xff]  ;;  %v4199_v61 = vpack.c.bf16 %v1081_v56, %v1080_v55 }
  0x5a   :  { %4221 = vmatpush3.bf16.msra.mxu1 %v4166_v13  ;;  %4169 = vmatpush3.bf16.msra.mxu0 %v4166_v13  ;;  %v97_v60 = vld [vmem:[#allocation3 + $0x50] sm:$0xff]  ;;  %v1082_v62 = vld [vmem:[#allocation9 + $0x50] sm:$0xff]  ;;  %v1083_v63 = vld [vmem:[#allocation9 + $0x58] sm:$0xff] }
  0x5b   :  { %4214 = vmatprep.subr.bf16.mxu1 %v4170_v16  ;;  %4171 = vmatprep.subr.bf16.mxu0 %v4170_v16  ;;  %v164_v0 = vld [vmem:[#allocation3 + $0x268] sm:$0xff]  ;;  %v98_v1 = vld [vmem:[#allocation3 + $0x58] sm:$0xff]  ;;  %v165_v2 = vld [vmem:[#allocation3 + $0x270] sm:$0xff]  ;;  %v4202_v4 = vpack.c.bf16 %v1083_v63, %v1082_v62 }
  0x5c   :  { %v99_v3 = vld [vmem:[#allocation3 + $0x60] sm:$0xff]  ;;  %v1084_v5 = vld [vmem:[#allocation9 + $0x60] sm:$0xff]  ;;  %v1085_v6 = vld [vmem:[#allocation9 + $0x68] sm:$0xff] }
  0x5d   :  { %v166_v7 = vld [vmem:[#allocation3 + $0x278] sm:$0xff]  ;;  %v100_v8 = vld [vmem:[#allocation3 + $0x68] sm:$0xff]  ;;  %v167_v9 = vld [vmem:[#allocation3 + $0x280] sm:$0xff]  ;;  %v4205_v11 = vpack.c.bf16 %v1085_v6, %v1084_v5 }
  0x5e   :  { %4222 = vmatpush3.bf16.msra.mxu1 %v4170_v16  ;;  %4173 = vmatpush3.bf16.msra.mxu0 %v4170_v16  ;;  %v101_v10 = vld [vmem:[#allocation3 + $0x70] sm:$0xff]  ;;  %v1086_v12 = vld [vmem:[#allocation9 + $0x70] sm:$0xff]  ;;  %v1087_v13 = vld [vmem:[#allocation9 + $0x78] sm:$0xff] }
  0x5f   :  { %4215 = vmatprep.subr.bf16.mxu1 %v4174_v19  ;;  %4175 = vmatprep.subr.bf16.mxu0 %v4174_v19  ;;  %v168_v14 = vld [vmem:[#allocation3 + $0x288] sm:$0xff]  ;;  %v102_v15 = vld [vmem:[#allocation3 + $0x78] sm:$0xff]  ;;  %v169_v16 = vld [vmem:[#allocation3 + $0x290] sm:$0xff]  ;;  %v4208_v18 = vpack.c.bf16 %v1087_v13, %v1086_v12 }
  0x60   :  { %v103_v17 = vld [vmem:[#allocation3 + $0x80] sm:$0xff]  ;;  %v104_v20 = vld [vmem:[#allocation3 + $0x88] sm:$0xff]  ;;  %v106_v24 = vld [vmem:[#allocation3 + $0x98] sm:$0xff] }
  0x61   :  { %v171_v21 = vld [vmem:[#allocation3 + $0x2a0] sm:$0xff]  ;;  %v172_v23 = vld [vmem:[#allocation3 + $0x2a8] sm:$0xff]  ;;  %v174_v27 = vld [vmem:[#allocation3 + $0x2b8] sm:$0xff] }
  0x62   :  { %4223 = vmatpush3.bf16.msra.mxu1 %v4174_v19  ;;  %4177 = vmatpush3.bf16.msra.mxu0 %v4174_v19  ;;  %v170_v19 = vld [vmem:[#allocation3 + $0x298] sm:$0xff]  ;;  %v107_v26 = vld [vmem:[#allocation3 + $0xa0] sm:$0xff]  ;;  %v181_v41 = vld [vmem:[#allocation3 + $0x2f0] sm:$0xff] }
  0x63   :  { %4216 = vmatprep.subr.bf16.mxu1 %v4178_v22  ;;  %4179 = vmatprep.subr.bf16.mxu0 %v4178_v22  ;;  %v111_v34 = vld [vmem:[#allocation3 + $0xc0] sm:$0xff]  ;;  %v178_v35 = vld [vmem:[#allocation3 + $0x2d8] sm:$0xff]  ;;  %v185_v49 = vld [vmem:[#allocation3 + $0x310] sm:$0xff] }
  0x64   :  { %v115_v42 = vld [vmem:[#allocation3 + $0xe0] sm:$0xff]  ;;  %v118_v48 = vld [vmem:[#allocation3 + $0xf8] sm:$0xff]  ;;  %v188_v55 = vld [vmem:[#allocation3 + $0x328] sm:$0xff] }
  0x65   :  { %v122_v56 = vld [vmem:[#allocation3 + $0x118] sm:$0xff]  ;;  %v125_v62 = vld [vmem:[#allocation3 + $0x130] sm:$0xff]  ;;  %v192_v63 = vld [vmem:[#allocation3 + $0x348] sm:$0xff] }
  0x66   :  { %4224 = vmatpush3.bf16.msra.mxu1 %v4178_v22  ;;  %4181 = vmatpush3.bf16.msra.mxu0 %v4178_v22  ;;  %v105_v22 = vld [vmem:[#allocation3 + $0x90] sm:$0xff]  ;;  %v195_v5 = vld [vmem:[#allocation3 + $0x360] sm:$0xff]  ;;  %v132_v12 = vld [vmem:[#allocation3 + $0x168] sm:$0xff] }
  0x67   :  { %4217 = vmatprep.subr.bf16.mxu1 %v4182_v25  ;;  %4183 = vmatprep.subr.bf16.mxu0 %v4182_v25  ;;  %v129_v6 = vld [vmem:[#allocation3 + $0x150] sm:$0xff]  ;;  %v199_v13 = vld [vmem:[#allocation3 + $0x380] sm:$0xff] }
  0x6a   :  { %4225 = vmatpush3.bf16.msra.mxu1 %v4182_v25  ;;  %4185 = vmatpush3.bf16.msra.mxu0 %v4182_v25  ;;  %v173_v25 = vld [vmem:[#allocation3 + $0x2b0] sm:$0xff] }
  0x6b   :  { %4186 = vmatprep.subr.bf16.mxu1 %v4519_v31 }
  0x6d   :  { %4027 = vmatmul.mubr.f32.vlgmr.msra.gmra.mrb[0].mxu1 %v154_v28  ;;  %3928 = vmatmul.mubr.f32.vlgmr.msra.gmra.mrb[0].mxu0 %v88_v30  ;;  %v108_v28 = vld [vmem:[#allocation3 + $0xa8] sm:$0xff]  ;;  %v109_v30 = vld [vmem:[#allocation3 + $0xb0] sm:$0xff] }
  0x6e   :  { %4188 = vmatpush3.bf16.msra.mxu1 %v4187_v29  ;;  %4029 = vmatprep.mubr.f32.mxu1 %v155_v32  ;;  %v175_v29 = vld [vmem:[#allocation3 + $0x2c0] sm:$0xff]  ;;  %v110_v32 = vld [vmem:[#allocation3 + $0xb8] sm:$0xff] }
  0x6f   :  { %3930 = vmatprep.mubr.f32.mxu0 %v89_v33  ;;  %4189 = vmatprep.subr.bf16.mxu1 %v4519_v31  ;;  %v177_v33 = vld [vmem:[#allocation3 + $0x2d0] sm:$0xff] }
  0x71   :  { %4030 = vmatmul.mubr.f32.gmra.mrb[2].mxu1 %v156_v36  ;;  %3931 = vmatmul.mubr.f32.gmra.mrb[2].mxu0 %v90_v37  ;;  %v112_v36 = vld [vmem:[#allocation3 + $0xc8] sm:$0xff]  ;;  %v179_v37 = vld [vmem:[#allocation3 + $0x2e0] sm:$0xff] }
  0x72   :  { %4032 = vmatprep.mubr.f32.mxu1 %v157_v38  ;;  %3933 = vmatprep.mubr.f32.mxu0 %v91_v39  ;;  %v113_v38 = vld [vmem:[#allocation3 + $0xd0] sm:$0xff]  ;;  %v180_v39 = vld [vmem:[#allocation3 + $0x2e8] sm:$0xff] }
  0x73   :  { %4191 = vmatpush3.bf16.msra.mxu1 %v4190_v40  ;;  %v114_v40 = vld [vmem:[#allocation3 + $0xd8] sm:$0xff] }
  0x74   :  { %4192 = vmatprep.subr.bf16.mxu1 %v4519_v31 }
  0x75   :  { %4033 = vmatmul.mubr.f32.gmra.mrb[4].mxu1 %v158_v43  ;;  %3934 = vmatmul.mubr.f32.gmra.mrb[4].mxu0 %v92_v44  ;;  %v182_v43 = vld [vmem:[#allocation3 + $0x2f8] sm:$0xff]  ;;  %v116_v44 = vld [vmem:[#allocation3 + $0xe8] sm:$0xff] }
  0x76   :  { %4035 = vmatprep.mubr.f32.mxu1 %v159_v45  ;;  %3936 = vmatprep.mubr.f32.mxu0 %v93_v46  ;;  %v183_v45 = vld [vmem:[#allocation3 + $0x300] sm:$0xff]  ;;  %v117_v46 = vld [vmem:[#allocation3 + $0xf0] sm:$0xff] }
  0x77   :  { %4194 = vmatpush3.bf16.msra.mxu1 %v4193_v47  ;;  %v184_v47 = vld [vmem:[#allocation3 + $0x308] sm:$0xff] }
  0x78   :  { %4195 = vmatprep.subr.bf16.mxu1 %v4519_v31 }
  0x79   :  { %4036 = vmatmul.mubr.f32.gmra.mrb[6].mxu1 %v160_v50  ;;  %3937 = vmatmul.mubr.f32.gmra.mrb[6].mxu0 %v94_v51  ;;  %v119_v50 = vld [vmem:[#allocation3 + $0x100] sm:$0xff]  ;;  %v186_v51 = vld [vmem:[#allocation3 + $0x318] sm:$0xff] }
  0x7a   :  { %4038 = vmatprep.mubr.f32.mxu1 %v161_v52  ;;  %3939 = vmatprep.mubr.f32.mxu0 %v95_v53  ;;  %v120_v52 = vld [vmem:[#allocation3 + $0x108] sm:$0xff]  ;;  %v187_v53 = vld [vmem:[#allocation3 + $0x320] sm:$0xff] }
  0x7b   :  { %4197 = vmatpush3.bf16.msra.mxu1 %v4196_v54  ;;  %v121_v54 = vld [vmem:[#allocation3 + $0x110] sm:$0xff] }
  0x7c   :  { %4198 = vmatprep.subr.bf16.mxu1 %v4519_v31 }
  0x7d   :  { %4039 = vmatmul.mubr.f32.gmra.mrb[8].mxu1 %v162_v57  ;;  %3940 = vmatmul.mubr.f32.gmra.mrb[8].mxu0 %v96_v58  ;;  %v189_v57 = vld [vmem:[#allocation3 + $0x330] sm:$0xff]  ;;  %v123_v58 = vld [vmem:[#allocation3 + $0x120] sm:$0xff] }
  0x7e   :  { %4041 = vmatprep.mubr.f32.mxu1 %v163_v59  ;;  %3942 = vmatprep.mubr.f32.mxu0 %v97_v60  ;;  %v190_v59 = vld [vmem:[#allocation3 + $0x338] sm:$0xff]  ;;  %v124_v60 = vld [vmem:[#allocation3 + $0x128] sm:$0xff] }
  0x7f   :  { %4200 = vmatpush3.bf16.msra.mxu1 %v4199_v61  ;;  %v191_v61 = vld [vmem:[#allocation3 + $0x340] sm:$0xff] }
  0x80   :  { %4201 = vmatprep.subr.bf16.mxu1 %v4519_v31 }
  0x81   :  { %4042 = vmatmul.mubr.f32.gmra.mrb[10].mxu1 %v164_v0  ;;  %3943 = vmatmul.mubr.f32.gmra.mrb[10].mxu0 %v98_v1  ;;  %v126_v0 = vld [vmem:[#allocation3 + $0x138] sm:$0xff]  ;;  %v193_v1 = vld [vmem:[#allocation3 + $0x350] sm:$0xff] }
  0x82   :  { %4044 = vmatprep.mubr.f32.mxu1 %v165_v2  ;;  %3945 = vmatprep.mubr.f32.mxu0 %v99_v3  ;;  %v127_v2 = vld [vmem:[#allocation3 + $0x140] sm:$0xff]  ;;  %v194_v3 = vld [vmem:[#allocation3 + $0x358] sm:$0xff] }
  0x83   :  { %4203 = vmatpush3.bf16.msra.mxu1 %v4202_v4  ;;  %v128_v4 = vld [vmem:[#allocation3 + $0x148] sm:$0xff] }
  0x84   :  { %4204 = vmatprep.subr.bf16.mxu1 %v4519_v31 }
  0x85   :  { %4045 = vmatmul.mubr.f32.gmra.mrb[12].mxu1 %v166_v7  ;;  %3946 = vmatmul.mubr.f32.gmra.mrb[12].mxu0 %v100_v8  ;;  %v196_v7 = vld [vmem:[#allocation3 + $0x368] sm:$0xff]  ;;  %v130_v8 = vld [vmem:[#allocation3 + $0x158] sm:$0xff] }
  0x86   :  { %4047 = vmatprep.mubr.f32.mxu1 %v167_v9  ;;  %3948 = vmatprep.mubr.f32.mxu0 %v101_v10  ;;  %v197_v9 = vld [vmem:[#allocation3 + $0x370] sm:$0xff]  ;;  %v131_v10 = vld [vmem:[#allocation3 + $0x160] sm:$0xff] }
  0x87   :  { %4206 = vmatpush3.bf16.msra.mxu1 %v4205_v11  ;;  %v198_v11 = vld [vmem:[#allocation3 + $0x378] sm:$0xff] }
  0x88   :  { %4207 = vmatprep.subr.bf16.mxu1 %v4519_v31  ;;  %v176_v31 = vld [vmem:[#allocation3 + $0x2c8] sm:$0xff] }
  0x89   :  { %4048 = vmatmul.mubr.f32.gmra.mrb[14].mxu1 %v168_v14  ;;  %3949 = vmatmul.mubr.f32.gmra.mrb[14].mxu0 %v102_v15  ;;  %v133_v14 = vld [vmem:[#allocation3 + $0x170] sm:$0xff]  ;;  %v200_v15 = vld [vmem:[#allocation3 + $0x388] sm:$0xff] }
  0x8a   :  { %4050 = vmatprep.mubr.f32.mxu1 %v169_v16  ;;  %3951 = vmatprep.mubr.f32.mxu0 %v103_v17  ;;  %v134_v16 = vld [vmem:[#allocation3 + $0x178] sm:$0xff]  ;;  %v201_v17 = vld [vmem:[#allocation3 + $0x390] sm:$0xff] }
  0x8b   :  { %4209 = vmatpush3.bf16.msra.mxu1 %v4208_v18  ;;  %v135_v18 = vld [vmem:[#allocation3 + $0x180] sm:$0xff] }
  0x8d   :  { %4051 = vmatmul.mubr.f32.gmra.mrb[16].mxu1 %v170_v19  ;;  %3952 = vmatmul.mubr.f32.gmra.mrb[16].mxu0 %v104_v20  ;;  %v202_v19 = vld [vmem:[#allocation3 + $0x398] sm:$0xff]  ;;  %v136_v20 = vld [vmem:[#allocation3 + $0x188] sm:$0xff] }
  0x8e   :  { %4053 = vmatprep.mubr.f32.mxu1 %v171_v21  ;;  %3954 = vmatprep.mubr.f32.mxu0 %v105_v22  ;;  %v203_v21 = vld [vmem:[#allocation3 + $0x3a0] sm:$0xff]  ;;  %v137_v22 = vld [vmem:[#allocation3 + $0x190] sm:$0xff] }
  0x91   :  { %4054 = vmatmul.mubr.f32.gmra.mrb[18].mxu1 %v172_v23  ;;  %3955 = vmatmul.mubr.f32.gmra.mrb[18].mxu0 %v106_v24  ;;  %v204_v23 = vld [vmem:[#allocation3 + $0x3a8] sm:$0xff]  ;;  %v138_v24 = vld [vmem:[#allocation3 + $0x198] sm:$0xff] }
  0x92   :  { %4056 = vmatprep.mubr.f32.mxu1 %v173_v25  ;;  %3957 = vmatprep.mubr.f32.mxu0 %v107_v26  ;;  %v205_v25 = vld [vmem:[#allocation3 + $0x3b0] sm:$0xff]  ;;  %v139_v26 = vld [vmem:[#allocation3 + $0x1a0] sm:$0xff] }
  0x95   :  { %4057 = vmatmul.mubr.f32.gmra.mrb[20].mxu1 %v174_v27  ;;  %3958 = vmatmul.mubr.f32.gmra.mrb[20].mxu0 %v108_v28  ;;  %v206_v27 = vld [vmem:[#allocation3 + $0x3b8] sm:$0xff]  ;;  %v140_v28 = vld [vmem:[#allocation3 + $0x1a8] sm:$0xff] }
  0x96   :  { %4059 = vmatprep.mubr.f32.mxu1 %v175_v29  ;;  %3960 = vmatprep.mubr.f32.mxu0 %v109_v30  ;;  %v207_v29 = vld [vmem:[#allocation3 + $0x3c0] sm:$0xff]  ;;  %v141_v30 = vld [vmem:[#allocation3 + $0x1b0] sm:$0xff] }
  0x99   :  { %4060 = vmatmul.mubr.f32.gmra.mrb[22].mxu1 %v176_v31  ;;  %3961 = vmatmul.mubr.f32.gmra.mrb[22].mxu0 %v110_v32  ;;  %v208_v31 = vld [vmem:[#allocation3 + $0x3c8] sm:$0xff]  ;;  %v142_v32 = vld [vmem:[#allocation3 + $0x1b8] sm:$0xff] }
  0x9a   :  { %4062 = vmatprep.mubr.f32.mxu1 %v177_v33  ;;  %3963 = vmatprep.mubr.f32.mxu0 %v111_v34  ;;  %v209_v33 = vld [vmem:[#allocation3 + $0x3d0] sm:$0xff]  ;;  %v143_v34 = vld [vmem:[#allocation3 + $0x1c0] sm:$0xff] }
  0x9d   :  { %4063 = vmatmul.mubr.f32.gmra.mrb[24].mxu1 %v178_v35  ;;  %3964 = vmatmul.mubr.f32.gmra.mrb[24].mxu0 %v112_v36  ;;  %v210_v35 = vld [vmem:[#allocation3 + $0x3d8] sm:$0xff]  ;;  %v144_v36 = vld [vmem:[#allocation3 + $0x1c8] sm:$0xff] }
  0x9e   :  { %4065 = vmatprep.mubr.f32.mxu1 %v179_v37  ;;  %3966 = vmatprep.mubr.f32.mxu0 %v113_v38  ;;  %v211_v37 = vld [vmem:[#allocation3 + $0x3e0] sm:$0xff]  ;;  %v145_v38 = vld [vmem:[#allocation3 + $0x1d0] sm:$0xff] }
  0xa1   :  { %4066 = vmatmul.mubr.f32.gmra.mrb[26].mxu1 %v180_v39  ;;  %3967 = vmatmul.mubr.f32.gmra.mrb[26].mxu0 %v114_v40  ;;  %v212_v39 = vld [vmem:[#allocation3 + $0x3e8] sm:$0xff]  ;;  %v146_v40 = vld [vmem:[#allocation3 + $0x1d8] sm:$0xff] }
  0xa2   :  { %4068 = vmatprep.mubr.f32.mxu1 %v181_v41  ;;  %3969 = vmatprep.mubr.f32.mxu0 %v115_v42  ;;  %v213_v41 = vld [vmem:[#allocation3 + $0x3f0] sm:$0xff]  ;;  %v147_v42 = vld [vmem:[#allocation3 + $0x1e0] sm:$0xff] }
  0xa5   :  { %4069 = vmatmul.mubr.f32.gmra.mrb[28].mxu1 %v182_v43  ;;  %3970 = vmatmul.mubr.f32.gmra.mrb[28].mxu0 %v116_v44  ;;  %v214_v43 = vld [vmem:[#allocation3 + $0x3f8] sm:$0xff]  ;;  %v148_v44 = vld [vmem:[#allocation3 + $0x1e8] sm:$0xff] }
  0xa6   :  { %4071 = vmatprep.mubr.f32.mxu1 %v183_v45  ;;  %3972 = vmatprep.mubr.f32.mxu0 %v117_v46  ;;  %v149_v45 = vld [vmem:[#allocation3 + $0x1f0] sm:$0xff]  ;;  %v4521_v46 = vmov 0.0  }
  0xa9   :  { %4072 = vmatmul.mubr.f32.gmra.mrb[30].mxu1 %v184_v47  ;;  %3973 = vmatmul.mubr.f32.gmra.mrb[30].mxu0 %v118_v48  ;;  %v215_v47 = vld [vmem:[#allocation6] sm:$0xff]  ;;  %v150_v48 = vld [vmem:[#allocation3 + $0x1f8] sm:$0xff] }
  0xaa   :  { %4074 = vmatprep.mubr.f32.mxu1 %v185_v49  ;;  %3975 = vmatprep.mubr.f32.mxu0 %v119_v50  ;;  %v151_v49 = vld [vmem:[#allocation3 + $0x200] sm:$0xff]  ;;  %v152_v50 = vld [vmem:[#allocation3 + $0x208] sm:$0xff] }
  0xad   :  { %4075 = vmatmul.mubr.f32.gmra.mrb[32].mxu1 %v186_v51  ;;  %3976 = vmatmul.mubr.f32.gmra.mrb[32].mxu0 %v120_v52 }
  0xae   :  { %4077 = vmatprep.mubr.f32.mxu1 %v187_v53  ;;  %3978 = vmatprep.mubr.f32.mxu0 %v121_v54 }
  0xb1   :  { %4078 = vmatmul.mubr.f32.gmra.mrb[34].mxu1 %v188_v55  ;;  %3979 = vmatmul.mubr.f32.gmra.mrb[34].mxu0 %v122_v56 }
  0xb2   :  { %4080 = vmatprep.mubr.f32.mxu1 %v189_v57  ;;  %3981 = vmatprep.mubr.f32.mxu0 %v123_v58 }
  0xb5   :  { %4081 = vmatmul.mubr.f32.gmra.mrb[36].mxu1 %v190_v59  ;;  %3982 = vmatmul.mubr.f32.gmra.mrb[36].mxu0 %v124_v60 }
  0xb6   :  { %4083 = vmatprep.mubr.f32.mxu1 %v191_v61  ;;  %3984 = vmatprep.mubr.f32.mxu0 %v125_v62 }
  0xb9   :  { %4084 = vmatmul.mubr.f32.gmra.mrb[38].mxu1 %v192_v63  ;;  %3985 = vmatmul.mubr.f32.gmra.mrb[38].mxu0 %v126_v0 }
  0xba   :  { %4086 = vmatprep.mubr.f32.mxu1 %v193_v1  ;;  %3987 = vmatprep.mubr.f32.mxu0 %v127_v2 }
  0xbd   :  { %4087 = vmatmul.mubr.f32.gmra.mrb[40].mxu1 %v194_v3  ;;  %3988 = vmatmul.mubr.f32.gmra.mrb[40].mxu0 %v128_v4 }
  0xbe   :  { %4089 = vmatprep.mubr.f32.mxu1 %v195_v5  ;;  %3990 = vmatprep.mubr.f32.mxu0 %v129_v6 }
  0xc1   :  { %4090 = vmatmul.mubr.f32.gmra.mrb[42].mxu1 %v196_v7  ;;  %3991 = vmatmul.mubr.f32.gmra.mrb[42].mxu0 %v130_v8 }
  0xc2   :  { %4092 = vmatprep.mubr.f32.mxu1 %v197_v9  ;;  %3993 = vmatprep.mubr.f32.mxu0 %v131_v10 }
  0xc5   :  { %4093 = vmatmul.mubr.f32.gmra.mrb[44].mxu1 %v198_v11  ;;  %3994 = vmatmul.mubr.f32.gmra.mrb[44].mxu0 %v132_v12 }
  0xc6   :  { %4095 = vmatprep.mubr.f32.mxu1 %v199_v13  ;;  %3996 = vmatprep.mubr.f32.mxu0 %v133_v14 }
  0xc9   :  { %4096 = vmatmul.mubr.f32.gmra.mrb[46].mxu1 %v200_v15  ;;  %3997 = vmatmul.mubr.f32.gmra.mrb[46].mxu0 %v134_v16 }
  0xca   :  { %4098 = vmatprep.mubr.f32.mxu1 %v201_v17  ;;  %3999 = vmatprep.mubr.f32.mxu0 %v135_v18 }
  0xcd   :  { %4099 = vmatmul.mubr.f32.gmra.mrb[48].mxu1 %v202_v19  ;;  %4000 = vmatmul.mubr.f32.gmra.mrb[48].mxu0 %v136_v20 }
  0xce   :  { %4101 = vmatprep.mubr.f32.mxu1 %v203_v21  ;;  %4002 = vmatprep.mubr.f32.mxu0 %v137_v22 }
  0xd1   :  { %4102 = vmatmul.mubr.f32.gmra.mrb[50].mxu1 %v204_v23  ;;  %4003 = vmatmul.mubr.f32.gmra.mrb[50].mxu0 %v138_v24 }
  0xd2   :  { %4104 = vmatprep.mubr.f32.mxu1 %v205_v25  ;;  %4005 = vmatprep.mubr.f32.mxu0 %v139_v26 }
  0xd5   :  { %4105 = vmatmul.mubr.f32.gmra.mrb[52].mxu1 %v206_v27  ;;  %4006 = vmatmul.mubr.f32.gmra.mrb[52].mxu0 %v140_v28 }
  0xd6   :  { %4107 = vmatprep.mubr.f32.mxu1 %v207_v29  ;;  %4008 = vmatprep.mubr.f32.mxu0 %v141_v30 }
  0xd9   :  { %4108 = vmatmul.mubr.f32.gmra.mrb[54].mxu1 %v208_v31  ;;  %4009 = vmatmul.mubr.f32.gmra.mrb[54].mxu0 %v142_v32 }
  0xda   :  { %4110 = vmatprep.mubr.f32.mxu1 %v209_v33  ;;  %4011 = vmatprep.mubr.f32.mxu0 %v143_v34 }
  0xdd   :  { %4111 = vmatmul.mubr.f32.gmra.mrb[56].mxu1 %v210_v35  ;;  %4012 = vmatmul.mubr.f32.gmra.mrb[56].mxu0 %v144_v36 }
  0xde   :  { %4113 = vmatprep.mubr.f32.mxu1 %v211_v37  ;;  %4014 = vmatprep.mubr.f32.mxu0 %v145_v38 }
  0xe1   :  { %4114 = vmatmul.mubr.f32.gmra.mrb[58].mxu1 %v212_v39  ;;  %4015 = vmatmul.mubr.f32.gmra.mrb[58].mxu0 %v146_v40 }
  0xe2   :  { %4116 = vmatprep.mubr.f32.mxu1 %v213_v41  ;;  %4017 = vmatprep.mubr.f32.mxu0 %v147_v42 }
  0xe5   :  { %4117 = vmatmul.mubr.f32.gmra.mrb[60].mxu1 %v214_v43  ;;  %4018 = vmatmul.mubr.f32.gmra.mrb[60].mxu0 %v148_v44 }
  0xe6   :  { %4151 = vmatprep.mubr.msk.f32.mxu1 %vm4520_vm0, %v4521_v46  ;;  %4020 = vmatprep.mubr.f32.mxu0 %v149_v45  ;;  %vm6756_vm0 = vcmask 1041409  }
  0xe9   :  { %4152 = vmatmul.mubr.f32.vlgmr.msra.gmra.mrb[62].mxu1 %v215_v47  ;;  %4021 = vmatmul.mubr.f32.gmra.mrb[62].mxu0 %v150_v48 }
  0xea   :  { %4023 = vmatprep.mubr.f32.mxu0 %v151_v49 }
  0xed   :  { %4024 = vmatmul.mubr.f32.gmra.mrb[64].mxu0 %v152_v50 }
 0x140   :  { %v4654_v51 = vpop.f32.mrb[0].mxu1  ;;  %v4656_v52 = vpop.f32.mrb[0].mxu0 }
 0x141   :  { %6758 = vst [vmem:[#allocation19_spill] sm:$0xff] %v4654_v51  ;;  %v4658_v53 = vpop.f32.mrb[1].mxu1  ;;  %v4660_v54 = vpop.f32.mrb[1].mxu0 }
 0x142   :  { %6759 = vst [vmem:[#allocation20_spill] sm:$0xff] %v4658_v53 }
 0x144   :  { %v4662_v55 = vpop.f32.mrb[2].mxu1  ;;  %v4664_v56 = vpop.f32.mrb[2].mxu0 }
 0x145   :  { %6760 = vst [vmem:[#allocation21_spill] sm:$0xff] %v4662_v55  ;;  %v4666_v57 = vpop.f32.mrb[3].mxu1  ;;  %v4668_v58 = vpop.f32.mrb[3].mxu0 }
 0x146   :  { %6761 = vst [vmem:[#allocation22_spill] sm:$0xff] %v4666_v57 }
 0x148   :  { %v4670_v59 = vpop.f32.mrb[4].mxu1  ;;  %v4672_v60 = vpop.f32.mrb[4].mxu0 }
 0x149   :  { %6762 = vst [vmem:[#allocation23_spill] sm:$0xff] %v4670_v59  ;;  %v4674_v61 = vpop.f32.mrb[5].mxu1  ;;  %v4676_v62 = vpop.f32.mrb[5].mxu0 }
 0x14a   :  { %6763 = vst [vmem:[#allocation24_spill] sm:$0xff] %v4674_v61 }
 0x14c   :  { %v4678_v63 = vpop.f32.mrb[6].mxu1  ;;  %v4680_v0 = vpop.f32.mrb[6].mxu0 }
 0x14d   :  { %6764 = vst [vmem:[#allocation25_spill] sm:$0xff] %v4678_v63  ;;  %v4682_v1 = vpop.f32.mrb[7].mxu1  ;;  %v4684_v2 = vpop.f32.mrb[7].mxu0 }
 0x14e   :  { %6765 = vst [vmem:[#allocation26_spill] sm:$0xff] %v4682_v1 }
 0x150   :  { %v4686_v3 = vpop.f32.mrb[8].mxu1  ;;  %v4688_v4 = vpop.f32.mrb[8].mxu0 }
 0x151   :  { %6766 = vst [vmem:[#allocation27_spill] sm:$0xff] %v4686_v3  ;;  %v4690_v5 = vpop.f32.mrb[9].mxu1  ;;  %v4692_v6 = vpop.f32.mrb[9].mxu0 }
 0x152   :  { %6767 = vst [vmem:[#allocation28_spill] sm:$0xff] %v4690_v5 }
 0x154   :  { %v4694_v7 = vpop.f32.mrb[10].mxu1  ;;  %v4696_v8 = vpop.f32.mrb[10].mxu0 }
 0x155   :  { %6768 = vst [vmem:[#allocation29_spill] sm:$0xff] %v4694_v7  ;;  %v4698_v9 = vpop.f32.mrb[11].mxu1  ;;  %v4700_v10 = vpop.f32.mrb[11].mxu0 }
 0x156   :  { %6769 = vst [vmem:[#allocation30_spill] sm:$0xff] %v4698_v9 }
 0x158   :  { %v4702_v11 = vpop.f32.mrb[12].mxu1  ;;  %v4704_v12 = vpop.f32.mrb[12].mxu0 }
 0x159   :  { %6770 = vst [vmem:[#allocation31_spill] sm:$0xff] %v4702_v11  ;;  %v4706_v13 = vpop.f32.mrb[13].mxu1  ;;  %v4708_v14 = vpop.f32.mrb[13].mxu0 }
 0x15a   :  { %6771 = vst [vmem:[#allocation32_spill] sm:$0xff] %v4706_v13 }
 0x15c   :  { %v4710_v15 = vpop.f32.mrb[14].mxu1  ;;  %v4712_v16 = vpop.f32.mrb[14].mxu0 }
 0x15d   :  { %6772 = vst [vmem:[#allocation33_spill] sm:$0xff] %v4710_v15  ;;  %v4714_v17 = vpop.f32.mrb[15].mxu1  ;;  %v4716_v18 = vpop.f32.mrb[15].mxu0 }
 0x15e   :  { %6773 = vst [vmem:[#allocation34_spill] sm:$0xff] %v4714_v17 }
 0x160   :  { %v4718_v19 = vpop.f32.mrb[16].mxu1  ;;  %v4720_v20 = vpop.f32.mrb[16].mxu0 }
 0x161   :  { %6774 = vst [vmem:[#allocation35_spill] sm:$0xff] %v4718_v19  ;;  %v4722_v21 = vpop.f32.mrb[17].mxu1  ;;  %v4724_v22 = vpop.f32.mrb[17].mxu0 }
 0x162   :  { %6775 = vst [vmem:[#allocation36_spill] sm:$0xff] %v4722_v21 }
 0x164   :  { %v4726_v23 = vpop.f32.mrb[18].mxu1  ;;  %v4728_v24 = vpop.f32.mrb[18].mxu0 }
 0x165   :  { %6776 = vst [vmem:[#allocation37_spill] sm:$0xff] %v4726_v23  ;;  %v4730_v25 = vpop.f32.mrb[19].mxu1  ;;  %v4732_v26 = vpop.f32.mrb[19].mxu0 }
 0x166   :  { %6777 = vst [vmem:[#allocation38_spill] sm:$0xff] %v4730_v25 }
 0x168   :  { %v4734_v27 = vpop.f32.mrb[20].mxu1  ;;  %v4736_v28 = vpop.f32.mrb[20].mxu0 }
 0x169   :  { %6778 = vst [vmem:[#allocation39_spill] sm:$0xff] %v4734_v27  ;;  %v4738_v29 = vpop.f32.mrb[21].mxu1  ;;  %v4740_v30 = vpop.f32.mrb[21].mxu0 }
 0x16a   :  { %6779 = vst [vmem:[#allocation40_spill] sm:$0xff] %v4738_v29 }
 0x16c   :  { %v4742_v31 = vpop.f32.mrb[22].mxu1  ;;  %v4744_v32 = vpop.f32.mrb[22].mxu0 }
 0x16d   :  { %6780 = vst [vmem:[#allocation41_spill] sm:$0xff] %v4742_v31  ;;  %v4746_v33 = vpop.f32.mrb[23].mxu1  ;;  %v4748_v34 = vpop.f32.mrb[23].mxu0 }
 0x16e   :  { %6781 = vst [vmem:[#allocation42_spill] sm:$0xff] %v4746_v33 }
 0x170   :  { %v4750_v35 = vpop.f32.mrb[24].mxu1  ;;  %v4752_v36 = vpop.f32.mrb[24].mxu0 }
 0x171   :  { %6782 = vst [vmem:[#allocation43_spill] sm:$0xff] %v4750_v35  ;;  %v4754_v37 = vpop.f32.mrb[25].mxu1  ;;  %v4756_v38 = vpop.f32.mrb[25].mxu0 }
 0x172   :  { %6783 = vst [vmem:[#allocation44_spill] sm:$0xff] %v4754_v37 }
 0x174   :  { %v4758_v39 = vpop.f32.mrb[26].mxu1  ;;  %v4760_v40 = vpop.f32.mrb[26].mxu0 }
 0x175   :  { %6784 = vst [vmem:[#allocation45_spill] sm:$0xff] %v4758_v39  ;;  %v4762_v41 = vpop.f32.mrb[27].mxu1  ;;  %v4764_v42 = vpop.f32.mrb[27].mxu0 }
 0x176   :  { %6785 = vst [vmem:[#allocation46_spill] sm:$0xff] %v4762_v41 }
 0x178   :  { %v4766_v43 = vpop.f32.mrb[28].mxu1  ;;  %v4768_v44 = vpop.f32.mrb[28].mxu0 }
 0x179   :  { %6786 = vst [vmem:[#allocation47_spill] sm:$0xff] %v4766_v43  ;;  %v4770_v45 = vpop.f32.mrb[29].mxu1  ;;  %v4772_v46 = vpop.f32.mrb[29].mxu0 }
 0x17a   :  { %6787 = vst [vmem:[#allocation48_spill] sm:$0xff] %v4770_v45 }
 0x17c   :  { %v4774_v47 = vpop.f32.mrb[30].mxu1  ;;  %v4776_v48 = vpop.f32.mrb[30].mxu0 }
 0x17d   :  { %6788 = vst [vmem:[#allocation49_spill] sm:$0xff] %v4774_v47  ;;  %v4778_v49 = vpop.f32.mrb[31].mxu1  ;;  %v4780_v50 = vpop.f32.mrb[31].mxu0 }
 0x17e   :  { %6789 = vst [vmem:[#allocation50_spill] sm:$0xff] %v4778_v49 }
 0x180   :  { %v4782_v39 = vpop.f32.mrb[32].mxu1  ;;  %v4784_v41 = vpop.f32.mrb[32].mxu0 }
 0x181   :  { %6790 = vst [vmem:[#allocation51_spill] sm:$0xff] %v4782_v39  ;;  %v4786_v29 = vpop.f32.mrb[33].mxu1  ;;  %v4788_v43 = vpop.f32.mrb[33].mxu0 }
 0x182   :  { %6791 = vst [vmem:[#allocation52_spill] sm:$0xff] %v4786_v29 }
 0x184   :  { %v4790_v25 = vpop.f32.mrb[34].mxu1  ;;  %v4792_v45 = vpop.f32.mrb[34].mxu0 }
 0x185   :  { %6792 = vst [vmem:[#allocation53_spill] sm:$0xff] %v4790_v25  ;;  %v4794_v37 = vpop.f32.mrb[35].mxu1  ;;  %v4796_v35 = vpop.f32.mrb[35].mxu0 }
 0x186   :  { %6793 = vst [vmem:[#allocation54_spill] sm:$0xff] %v4794_v37 }
 0x188   :  { %v4798_v33 = vpop.f32.mrb[36].mxu1  ;;  %v4800_v49 = vpop.f32.mrb[36].mxu0 }
 0x189   :  { %6794 = vst [vmem:[#allocation55_spill] sm:$0xff] %v4798_v33  ;;  %v4802_v31 = vpop.f32.mrb[37].mxu1  ;;  %v4804_v27 = vpop.f32.mrb[37].mxu0 }
 0x18a   :  { %6795 = vst [vmem:[#allocation56_spill] sm:$0xff] %v4802_v31  ;;  %6796 = vst [vmem:[#allocation57_spill] sm:$0xff] %v4804_v27 }
 0x18c   :  { %v4806_v19 = vpop.f32.mrb[38].mxu1  ;;  %v4808_v15 = vpop.f32.mrb[38].mxu0 }
 0x18d   :  { %6797 = vst [vmem:[#allocation58_spill] sm:$0xff] %v4806_v19  ;;  %6798 = vst [vmem:[#allocation59_spill] sm:$0xff] %v4808_v15  ;;  %v4810_v23 = vpop.f32.mrb[39].mxu1  ;;  %v4812_v25 = vpop.f32.mrb[39].mxu0 }
 0x18e   :  { %6799 = vst [vmem:[#allocation60_spill] sm:$0xff] %v4810_v23  ;;  %6800 = vst [vmem:[#allocation61_spill] sm:$0xff] %v4812_v25 }
 0x190   :  { %v4814_v39 = vpop.f32.mrb[40].mxu1  ;;  %v4816_v37 = vpop.f32.mrb[40].mxu0 }
 0x191   :  { %6801 = vst [vmem:[#allocation62_spill] sm:$0xff] %v4814_v39  ;;  %6802 = vst [vmem:[#allocation63_spill] sm:$0xff] %v4816_v37  ;;  %v4818_v29 = vpop.f32.mrb[41].mxu1  ;;  %v4820_v33 = vpop.f32.mrb[41].mxu0 }
 0x192   :  { %6803 = vst [vmem:[#allocation64_spill] sm:$0xff] %v4818_v29  ;;  %6804 = vst [vmem:[#allocation65_spill] sm:$0xff] %v4820_v33 }
 0x194   :  { %v4822_v47 = vpop.f32.mrb[42].mxu1  ;;  %v4824_v31 = vpop.f32.mrb[42].mxu0 }
 0x195   :  { %6805 = vst [vmem:[#allocation66_spill] sm:$0xff] %v4822_v47  ;;  %6806 = vst [vmem:[#allocation67_spill] sm:$0xff] %v4824_v31  ;;  %v4826_v21 = vpop.f32.mrb[43].mxu1  ;;  %v4828_v19 = vpop.f32.mrb[43].mxu0 }
 0x196   :  { %6807 = vst [vmem:[#allocation68_spill] sm:$0xff] %v4826_v21  ;;  %6808 = vst [vmem:[#allocation69_spill] sm:$0xff] %v4828_v19 }
 0x198   :  { %v4830_v17 = vpop.f32.mrb[44].mxu1  ;;  %v4832_v23 = vpop.f32.mrb[44].mxu0 }
 0x199   :  { %6809 = vst [vmem:[#allocation70_spill] sm:$0xff] %v4830_v17  ;;  %6810 = vst [vmem:[#allocation71_spill] sm:$0xff] %v4832_v23  ;;  %v4834_v11 = vpop.f32.mrb[45].mxu1  ;;  %v4836_v39 = vpop.f32.mrb[45].mxu0 }
 0x19a   :  { %6811 = vst [vmem:[#allocation72_spill] sm:$0xff] %v4834_v11  ;;  %6812 = vst [vmem:[#allocation73_spill] sm:$0xff] %v4836_v39 }
 0x19c   :  { %v4838_v13 = vpop.f32.mrb[46].mxu1  ;;  %v4840_v29 = vpop.f32.mrb[46].mxu0 }
 0x19d   :  { %6813 = vst [vmem:[#allocation74_spill] sm:$0xff] %v4838_v13  ;;  %6814 = vst [vmem:[#allocation75_spill] sm:$0xff] %v4840_v29  ;;  %v4842_v7 = vpop.f32.mrb[47].mxu1  ;;  %v4844_v47 = vpop.f32.mrb[47].mxu0 }
 0x19e   :  { %6815 = vst [vmem:[#allocation76_spill] sm:$0xff] %v4842_v7  ;;  %6816 = vst [vmem:[#allocation77_spill] sm:$0xff] %v4844_v47 }
 0x1a0   :  { %v4846_v9 = vpop.f32.mrb[48].mxu1  ;;  %v4848_v21 = vpop.f32.mrb[48].mxu0 }
 0x1a1   :  { %6817 = vst [vmem:[#allocation78_spill] sm:$0xff] %v4846_v9  ;;  %6818 = vst [vmem:[#allocation79_spill] sm:$0xff] %v4848_v21  ;;  %v4850_v5 = vpop.f32.mrb[49].mxu1  ;;  %v4852_v17 = vpop.f32.mrb[49].mxu0 }
 0x1a2   :  { %6819 = vst [vmem:[#allocation80_spill] sm:$0xff] %v4850_v5  ;;  %6820 = vst [vmem:[#allocation81_spill] sm:$0xff] %v4852_v17 }
 0x1a4   :  { %v4854_v3 = vpop.f32.mrb[50].mxu1  ;;  %v4856_v11 = vpop.f32.mrb[50].mxu0 }
 0x1a5   :  { %6821 = vst [vmem:[#allocation82_spill] sm:$0xff] %v4854_v3  ;;  %6822 = vst [vmem:[#allocation83_spill] sm:$0xff] %v4856_v11  ;;  %v4858_v63 = vpop.f32.mrb[51].mxu1  ;;  %v4860_v13 = vpop.f32.mrb[51].mxu0 }
 0x1a6   :  { %6823 = vst [vmem:[#allocation84_spill] sm:$0xff] %v4858_v63  ;;  %6824 = vst [vmem:[#allocation85_spill] sm:$0xff] %v4860_v13 }
 0x1a8   :  { %v4862_v1 = vpop.f32.mrb[52].mxu1  ;;  %v4864_v7 = vpop.f32.mrb[52].mxu0 }
 0x1a9   :  { %6825 = vst [vmem:[#allocation86_spill] sm:$0xff] %v4862_v1  ;;  %6826 = vst [vmem:[#allocation87_spill] sm:$0xff] %v4864_v7  ;;  %v4866_v61 = vpop.f32.mrb[53].mxu1  ;;  %v4868_v9 = vpop.f32.mrb[53].mxu0  ;;  %v4522_v7 = vmov 1966171168  }
 0x1aa   :  { %6827 = vst [vmem:[#allocation88_spill] sm:$0xff] %v4866_v61  ;;  %6828 = vst [vmem:[#allocation89_spill] sm:$0xff] %v4868_v9  ;;  %v1168_v57 = vunpack.c.l.s4 %v4522_v7  ;;  %v6750_v61 = vlaneseq  ;;  %v3732_v7 = vld [vmem:[%s6745_s5] ss:$0 sm:$0xff] }
 0x1ac   :  { %v4870_v59 = vpop.f32.mrb[54].mxu1  ;;  %v4872_v5 = vpop.f32.mrb[54].mxu0  ;;  %v1169_v55 = vunpack.c.0.s8 %v1168_v57 }
 0x1ad   :  { %6829 = vst [vmem:[#allocation90_spill] sm:$0xff] %v4870_v59  ;;  %6830 = vst [vmem:[#allocation91_spill] sm:$0xff] %v4872_v5  ;;  %v4874_v17 = vpop.f32.mrb[55].mxu1  ;;  %v4876_v3 = vpop.f32.mrb[55].mxu0 }
 0x1ae   :  { %6831 = vst [vmem:[#allocation92_spill] sm:$0xff] %v4874_v17  ;;  %6832 = vst [vmem:[#allocation93_spill] sm:$0xff] %v4876_v3  ;;  %v4889_v17 = vshrl.u32 %v6750_v61, 7 }
 0x1b0   :  { %v4878_v11 = vpop.f32.mrb[56].mxu1  ;;  %v4880_v63 = vpop.f32.mrb[56].mxu0  ;;  %6838 = vst [vmem:[#allocation99_spill] sm:$0xff] %v4889_v17  ;;  %v4900_v39 = vsub.s32 0, %v4889_v17 }
 0x1b1   :  { %6833 = vst [vmem:[#allocation94_spill] sm:$0xff] %v4878_v11  ;;  %6834 = vst [vmem:[#allocation95_spill] sm:$0xff] %v4880_v63  ;;  %v4882_v13 = vpop.f32.mrb[57].mxu1  ;;  %v578_v1 = vpop.f32.mrb[57].mxu0 }
 0x1b2   :  { %6835 = vst [vmem:[#allocation96_spill] sm:$0xff] %v4882_v13  ;;  %6841 = vst [vmem:[#allocation102_spill] sm:$0xff] %v4900_v39 }
 0x1b4   :  { %v4884_v21 = vpop.f32.mrb[58].mxu1  ;;  %v4016_v9 = vpop.f32.mrb[58].mxu0 }
 0x1b5   :  { %6836 = vst [vmem:[#allocation97_spill] sm:$0xff] %v4884_v21  ;;  %v4886_v59 = vpop.f32.mrb[59].mxu1  ;;  %v588_v5 = vpop.f32.mrb[59].mxu0  ;;  %v1172_v21 = vsub.s32 %v1169_v55, %v4889_v17 }
 0x1b6   :  { %6837 = vst [vmem:[#allocation98_spill] sm:$0xff] %v4886_v59 }
 0x1b8   :  { %v4891_v3 = vpop.f32.mrb[60].mxu1  ;;  %v4019_v11 = vpop.f32.mrb[60].mxu0 }
 0x1b9   :  { %6839 = vst [vmem:[#allocation100_spill] sm:$0xff] %v4891_v3  ;;  %v4893_v63 = vpop.f32.mrb[61].mxu1  ;;  %v598_v13 = vpop.f32.mrb[61].mxu0 }
 0x1ba   :  { %6840 = vst [vmem:[#allocation101_spill] sm:$0xff] %v4893_v63  ;;  %v4905_v63 = vld [vmem:[%s6743_s3] ss:$0 sm:$0xff] }
 0x1bb   :  { %v1005_v25 = vadd.f32 %v4019_v11, %v4905_v63 }
 0x1bc   :  { %v1161_v53 = vpop.f32.mrb[62].mxu1  ;;  %v4022_v51 = vpop.f32.mrb[62].mxu0 }
 0x1bd   :  { %v1162_v59 = vadd.f32 %v3732_v7, %v1161_v53  ;;  %v4153_v47 = vpop.f32.mrb[63].mxu1  ;;  %v608_v57 = vpop.f32.mrb[63].mxu0  ;;  %v944_v53 = vadd.f32 %v4905_v63, %v4660_v54  ;;  %v1003_v7 = vadd.f32 %v4016_v9, %v4905_v63  ;;  %v1004_v9 = vadd.f32 %v4905_v63, %v598_v13 }
 0x1be   :  { %v1000_v47 = vadd.f32 %v4905_v63, %v578_v1  ;;  %v947_v13 = vadd.f32 %v4664_v56, %v4905_v63 }
 0x1bf   :  { %v1166_v29 = vcombine.high %v1162_v59, %v1162_v59  ;;  %v1173_v61 = vrot.slane %v1162_v59, %v1172_v21  ;;  %v946_v59 = vadd.f32 %v4905_v63, %v4668_v58 }
 0x1c0   :  { %v4025_v3 = vpop.f32.mrb[64].mxu0 }
 0x1c1   :  { %v1180_v23 = vrot.slane %v1166_v29, %v1172_v21  ;;  %v1181_v19 = vcombine.high %v1173_v61, %v1173_v61  ;;  %v4907_v31 = vrot.slane %v1173_v61, %v1172_v21  ;;  %v618_v55 = vpop.f32.mrb[65].mxu0  ;;  %v1002_v29 = vadd.f32 %v4905_v63, %v588_v5 }
 0x1c2   :  { %v1009_v54 = vadd.f32 %v4025_v3, %v4905_v63  ;;  %v1008_v58 = vadd.f32 %v4905_v63, %v618_v55  ;;  %v945_v3 = vadd.f32 %v4656_v52, %v4905_v63 }
 0x1c3   :  { %v1182_v17 = vcombine.high %v1180_v23, %v1180_v23  ;;  %v4915_v33 = vrot.slane %v1180_v23, %v1172_v21  ;;  %v1203_v37 = vrot.slane %v1181_v19, %v1172_v21  ;;  %v4920_v61 = vrot.slane %v4907_v31, %v4900_v39 }
 0x1c4   :  { %v1007_v23 = vadd.f32 %v4022_v51, %v4905_v63  ;;  %v1006_v19 = vadd.f32 %v4905_v63, %v608_v57 }
 0x1c5   :  { %v4925_v15 = vrot.slane %v1182_v17, %v1172_v21  ;;  %v1213_v1 = vcombine.high %v1203_v37, %v1203_v37  ;;  %v4931_v5 = vrot.slane %v4915_v33, %v4900_v39  ;;  %v1255_v27 = vadd.f32 %v4920_v61, %v944_v53 }
 0x1c6   :  { %v1257_v11 = vadd.f32 %v4920_v61, %v946_v59 }
 0x1c7   :  { %v4939_v17 = vrot.slane %v1213_v1, %v4900_v39  ;;  %v4944_v51 = vadd.f32 %v4931_v5, %v1009_v54  ;;  %v4947_v21 = vadd.f32 %v4931_v5, %v1008_v58  ;;  %v1383_v57 = vmax.f32 %v1255_v27, 0.0 }
 0x1c8   :  { %v1385_v59 = vmax.f32 %v1257_v11, 0.0  ;;  %v950_v58 = vadd.f32 %v4905_v63, %v4684_v2  ;;  %v1256_v2 = vadd.f32 %v4920_v61, %v945_v3  ;;  %v956_v3 = vadd.f32 %v4905_v63, %v4708_v14 }
 0x1c9   :  { %v4950_v55 = vadd.f32 %v4939_v17, %v1000_v47  ;;  %v4953_v53 = vadd.f32 %v4939_v17, %v1003_v7  ;;  %v4956_v52 = vadd.f32 %v4939_v17, %v1002_v29  ;;  %v4959_v1 = vadd.f32 %v4939_v17, %v1005_v25  ;;  %v4973_v47 = vld [vmem:[%s6746_s6] ss:$0 sm:$0xff] }
 0x1ca   :  { %v4962_v56 = vadd.f32 %v4939_v17, %v1004_v9  ;;  %v4965_v54 = vadd.f32 %v4939_v17, %v1007_v23  ;;  %v4968_v27 = vadd.f32 %v4939_v17, %v1006_v19  ;;  %v949_v7 = vadd.f32 %v4672_v60, %v4905_v63 }
 0x1cb   :  { %6842 = vst [vmem:[#allocation103_spill] sm:$0xff] %v4950_v55  ;;  %6843 = vst [vmem:[#allocation104_spill] sm:$0xff] %v4953_v53  ;;  %v948_v25 = vadd.f32 %v4905_v63, %v4676_v62  ;;  %v951_v29 = vadd.f32 %v4680_v0, %v4905_v63  ;;  %v953_v9 = vadd.f32 %v4688_v4, %v4905_v63 }
 0x1cc   :  { %6844 = vst [vmem:[#allocation105_spill] sm:$0xff] %v4956_v52  ;;  %6845 = vst [vmem:[#allocation106_spill] sm:$0xff] %v4959_v1  ;;  %v952_v23 = vadd.f32 %v4905_v63, %v4692_v6  ;;  %v955_v19 = vadd.f32 %v4696_v8, %v4905_v63  ;;  %v954_v60 = vadd.f32 %v4905_v63, %v4700_v10  ;;  %v1384_v10 = vmax.f32 %v1256_v2, 0.0  ;;  %v6874_v52 = vld [vmem:[#allocation28_spill] sm:$0xff] }
 0x1cd   :  { %6846 = vst [vmem:[#allocation107_spill] sm:$0xff] %v4962_v56  ;;  %6847 = vst [vmem:[#allocation108_spill] sm:$0xff] %v4965_v54  ;;  %v957_v62 = vadd.f32 %v4704_v12, %v4905_v63  ;;  %v1518_v0 = vmul.f32 %v4973_v47, %v1383_v57  ;;  %v1520_v11 = vmul.f32 %v4973_v47, %v1385_v59  ;;  %v6878_v54 = vld [vmem:[#allocation81_spill] sm:$0xff] }
 0x1ce   :  { %6848 = vst [vmem:[#allocation109_spill] sm:$0xff] %v4968_v27  ;;  %v1258_v4 = vadd.f32 %v4920_v61, %v947_v13  ;;  %v1260_v27 = vadd.f32 %v4920_v61, %v949_v7  ;;  %v1259_v6 = vadd.f32 %v4920_v61, %v948_v25  ;;  %v1262_v8 = vadd.f32 %v4920_v61, %v951_v29 }
 0x1cf   :  { %1646 = vadd.xlane.f32.xlu0 %v1518_v0  ;;  %1650 = vadd.xlane.f32.xlu1 %v1520_v11  ;;  %v1261_v56 = vadd.f32 %v4920_v61, %v950_v58  ;;  %v5002_v12 = vadd.f32 %v4920_v61, %v953_v9  ;;  %v1263_v57 = vadd.f32 %v4920_v61, %v952_v23 }
 0x1d0   :  { %v959_v13 = vadd.f32 %v4712_v16, %v4905_v63  ;;  %v958_v59 = vadd.f32 %v4905_v63, %v4716_v18  ;;  %v1386_v7 = vmax.f32 %v1258_v4, 0.0  ;;  %v961_v25 = vadd.f32 %v4720_v20, %v4905_v63 }
 0x1d1   :  { %v5014_v29 = vrot.slane %v1203_v37, %v4900_v39  ;;  %v1519_v58 = vmul.f32 %v4973_v47, %v1384_v10  ;;  %v1387_v9 = vmax.f32 %v1259_v6, 0.0  ;;  %v960_v23 = vadd.f32 %v4905_v63, %v4724_v22 }
 0x1d2   :  { %v963_v14 = vadd.f32 %v4728_v24, %v4905_v63  ;;  %v1521_v16 = vmul.f32 %v4973_v47, %v1386_v7  ;;  %v1388_v0 = vmax.f32 %v1260_v27, 0.0  ;;  %v962_v18 = vadd.f32 %v4905_v63, %v4732_v26 }
 0x1d3   :  { %1648 = vadd.xlane.f32.xlu0 %v1519_v58  ;;  %v1390_v20 = vmax.f32 %v1262_v8, 0.0  ;;  %v1389_v11 = vmax.f32 %v1261_v56, 0.0  ;;  %v5025_v37 = vadd.f32 %v4920_v61, %v955_v19  ;;  %v1265_v2 = vadd.f32 %v4920_v61, %v954_v60 }
 0x1d4   :  { %1652 = vadd.xlane.f32.xlu1 %v1521_v16  ;;  %v5029_v22 = vadd.f32 %v4920_v61, %v957_v62  ;;  %v5032_v24 = vadd.f32 %v4920_v61, %v956_v3  ;;  %v5035_v27 = vadd.f32 %v4920_v61, %v959_v13  ;;  %v1522_v26 = vmul.f32 %v4973_v47, %v1387_v9 }
 0x1d5   :  { %v5039_v4 = vadd.f32 %v4920_v61, %v958_v59  ;;  %v5042_v56 = vadd.f32 %v5014_v29, %v961_v25  ;;  %v5045_v19 = vadd.f32 %v5014_v29, %v960_v23  ;;  %v965_v60 = vadd.f32 %v4736_v28, %v4905_v63 }
 0x1d6   :  { %v964_v62 = vadd.f32 %v4905_v63, %v4740_v30  ;;  %v967_v6 = vadd.f32 %v4744_v32, %v4905_v63  ;;  %v1523_v8 = vmul.f32 %v4973_v47, %v1388_v0  ;;  %v966_v61 = vadd.f32 %v4905_v63, %v4748_v34 }
 0x1d7   :  { %v969_v10 = vadd.f32 %v4752_v36, %v4905_v63  ;;  %v968_v3 = vadd.f32 %v4905_v63, %v4756_v38  ;;  %1654 = vadd.xlane.f32.xlu0 %v1522_v26  ;;  %v971_v28 = vadd.f32 %v4760_v40, %v4905_v63  ;;  %v970_v30 = vadd.f32 %v4905_v63, %v4764_v42 }
 0x1d8   :  { %v1211_v32 = vcombine.high %v4907_v31, %v4907_v31  ;;  %1656 = vadd.xlane.f32.xlu1 %v1523_v8  ;;  %v1392_v13 = vmax.f32 %v5002_v12, 0.0  ;;  %v1525_v34 = vmul.f32 %v4973_v47, %v1390_v20  ;;  %v1524_v36 = vmul.f32 %v4973_v47, %v1389_v11  ;;  %v6849_v8 = vld [vmem:[#allocation57_spill] sm:$0xff] }
 0x1d9   :  { %v1391_v59 = vmax.f32 %v1263_v57, 0.0  ;;  %v5070_v38 = vadd.f32 %v5014_v29, %v963_v14  ;;  %v5073_v7 = vadd.f32 %v5014_v29, %v962_v18  ;;  %v5076_v40 = vadd.f32 %v5014_v29, %v965_v60 }
 0x1da   :  { %v5079_v42 = vadd.f32 %v5014_v29, %v964_v62  ;;  %v5082_v31 = vadd.f32 %v5014_v29, %v967_v6  ;;  %v973_v12 = vadd.f32 %v4768_v44, %v4905_v63  ;;  %v5087_v57 = vadd.f32 %v5014_v29, %v966_v61 }
 0x1db   :  { %1658 = vadd.xlane.f32.xlu0 %v1524_v36  ;;  %v5090_v25 = vadd.f32 %v5014_v29, %v969_v10  ;;  %v5093_v58 = vadd.f32 %v5014_v29, %v968_v3  ;;  %v972_v9 = vadd.f32 %v4905_v63, %v4772_v46  ;;  %v975_v23 = vadd.f32 %v4776_v48, %v4905_v63  ;;  %v6850_v10 = vld [vmem:[#allocation59_spill] sm:$0xff] }
 0x1dc   :  { %v974_v14 = vadd.f32 %v4905_v63, %v4780_v50  ;;  %v977_v44 = vadd.f32 %v4784_v41, %v4905_v63  ;;  %1660 = vadd.xlane.f32.xlu1 %v1525_v34  ;;  %v976_v16 = vadd.f32 %v4905_v63, %v4788_v43  ;;  %v5106_v0 = vrot.slane %v1211_v32, %v4900_v39  ;;  %v6852_v32 = vld [vmem:[#allocation63_spill] sm:$0xff]  ;;  %v6853_v34 = vld [vmem:[#allocation65_spill] sm:$0xff] }
 0x1dd   :  { %v1526_v18 = vmul.f32 %v4973_v47, %v1391_v59  ;;  %v1393_v20 = vmax.f32 %v1265_v2, 0.0  ;;  %v979_v46 = vadd.f32 %v4792_v45, %v4905_v63  ;;  %v1527_v48 = vmul.f32 %v4973_v47, %v1392_v13 }
 0x1de   :  { %v1394_v50 = vmax.f32 %v5025_v37, 0.0  ;;  %v978_v41 = vadd.f32 %v4905_v63, %v4796_v35  ;;  %v1396_v11 = vmax.f32 %v5029_v22, 0.0  ;;  %v1395_v43 = vmax.f32 %v5032_v24, 0.0 }
 0x1df   :  { %1662 = vadd.xlane.f32.xlu0 %v1526_v18  ;;  %v5118_v26 = vadd.f32 %v5014_v29, %v971_v28  ;;  %v5121_v2 = vadd.f32 %v5014_v29, %v970_v30  ;;  %v5124_v45 = vadd.f32 %v5014_v29, %v973_v12  ;;  %v5127_v37 = vadd.f32 %v5014_v29, %v972_v9  ;;  %v6851_v30 = vld [vmem:[#allocation61_spill] sm:$0xff]  ;;  %v6854_v18 = vld [vmem:[#allocation67_spill] sm:$0xff] }
 0x1e0   :  { %1664 = vadd.xlane.f32.xlu1 %v1527_v48  ;;  %v5130_v35 = vadd.f32 %v5014_v29, %v975_v23  ;;  %v1528_v22 = vmul.f32 %v4973_v47, %v1393_v20  ;;  %v5134_v24 = vadd.f32 %v5014_v29, %v974_v14  ;;  %v5137_v60 = vadd.f32 %v5106_v0, %v977_v44 }
 0x1e1   :  { %v5140_v62 = vadd.f32 %v5106_v0, %v976_v16  ;;  %v981_v6 = vadd.f32 %v4800_v49, %v4905_v63  ;;  %v980_v61 = vadd.f32 %v4905_v63, %v6849_v8  ;;  %v983_v3 = vadd.f32 %v6850_v10, %v4905_v63  ;;  %v6858_v8 = vld [vmem:[#allocation75_spill] sm:$0xff]  ;;  %v6859_v10 = vld [vmem:[#allocation77_spill] sm:$0xff] }
 0x1e2   :  { %v1529_v28 = vmul.f32 %v4973_v47, %v1394_v50  ;;  %v982_v29 = vadd.f32 %v4905_v63, %v6851_v30  ;;  %v985_v13 = vadd.f32 %v6852_v32, %v4905_v63  ;;  %v984_v36 = vadd.f32 %v4905_v63, %v6853_v34  ;;  %v6855_v50 = vld [vmem:[#allocation69_spill] sm:$0xff] }
 0x1e3   :  { %1666 = vadd.xlane.f32.xlu0 %v1528_v22  ;;  %v1398_v49 = vmax.f32 %v5035_v27, 0.0  ;;  %v1531_v59 = vmul.f32 %v4973_v47, %v1396_v11  ;;  %v1530_v12 = vmul.f32 %v4973_v47, %v1395_v43  ;;  %v1397_v9 = vmax.f32 %v5039_v4, 0.0  ;;  %v6856_v11 = vld [vmem:[#allocation71_spill] sm:$0xff]  ;;  %v6857_v22 = vld [vmem:[#allocation73_spill] sm:$0xff] }
 0x1e4   :  { %1668 = vadd.xlane.f32.xlu1 %v1529_v28  ;;  %v5160_v23 = vadd.f32 %v5106_v0, %v979_v46  ;;  %v5163_v14 = vadd.f32 %v5106_v0, %v978_v41  ;;  %v5166_v44 = vadd.f32 %v5106_v0, %v981_v6  ;;  %v5169_v16 = vadd.f32 %v5106_v0, %v980_v61 }
 0x1e5   :  { %v5172_v27 = vadd.f32 %v5106_v0, %v983_v3  ;;  %v987_v20 = vadd.f32 %v6854_v18, %v4905_v63  ;;  %v5177_v4 = vadd.f32 %v5106_v0, %v982_v29  ;;  %v5180_v46 = vadd.f32 %v5106_v0, %v985_v13  ;;  %v6860_v13 = vld [vmem:[#allocation19_spill] sm:$0xff] }
 0x1e6   :  { %v5183_v48 = vadd.f32 %v5106_v0, %v984_v36  ;;  %v986_v41 = vadd.f32 %v4905_v63, %v6855_v50  ;;  %v989_v43 = vadd.f32 %v6856_v11, %v4905_v63  ;;  %v988_v6 = vadd.f32 %v4905_v63, %v6857_v22  ;;  %v6861_v36 = vld [vmem:[#allocation20_spill] sm:$0xff] }
 0x1e7   :  { %1670 = vadd.xlane.f32.xlu0 %v1530_v12  ;;  %v991_v61 = vadd.f32 %v6858_v8, %v4905_v63  ;;  %v990_v3 = vadd.f32 %v4905_v63, %v6859_v10  ;;  %v1532_v28 = vmul.f32 %v4973_v47, %v1397_v9  ;;  %v1399_v30 = vmax.f32 %v5045_v19, 0.0  ;;  %v6864_v10 = vld [vmem:[#allocation22_spill] sm:$0xff] }
 0x1e8   :  { %1672 = vadd.xlane.f32.xlu1 %v1531_v59  ;;  %v1533_v29 = vmul.f32 %v4973_v47, %v1398_v49  ;;  %v1400_v32 = vmax.f32 %v5042_v56, 0.0  ;;  %v1011_v34 = vadd.f32 %v6860_v13, %v4905_v63  ;;  %v1010_v12 = vadd.f32 %v4905_v63, %v6861_v36 }
 0x1e9   :  { %v5204_v59 = vadd.f32 %v5106_v0, %v987_v20  ;;  %v5207_v18 = vadd.f32 %v5106_v0, %v986_v41  ;;  %v5210_v19 = vadd.f32 %v5106_v0, %v989_v43  ;;  %v5213_v49 = vadd.f32 %v5106_v0, %v988_v6  ;;  %v6862_v41 = vld [vmem:[#allocation21_spill] sm:$0xff]  ;;  %v6863_v43 = vld [vmem:[#allocation79_spill] sm:$0xff] }
 0x1ea   :  { %v5216_v56 = vadd.f32 %v5106_v0, %v991_v61  ;;  %v1534_v9 = vmul.f32 %v4973_v47, %v1399_v30  ;;  %v1402_v50 = vmax.f32 %v5070_v38, 0.0  ;;  %v1401_v20 = vmax.f32 %v5073_v7, 0.0 }
 0x1eb   :  { %1674 = vadd.xlane.f32.xlu0 %v1532_v28  ;;  %v5222_v11 = vadd.f32 %v5106_v0, %v990_v3  ;;  %v1013_v22 = vadd.f32 %v6862_v41, %v4905_v63  ;;  %v993_v8 = vadd.f32 %v6863_v43, %v4905_v63  ;;  %v1535_v6 = vmul.f32 %v4973_v47, %v1400_v32  ;;  %v6865_v28 = vld [vmem:[#allocation23_spill] sm:$0xff]  ;;  %v6866_v0 = vld [vmem:[#allocation24_spill] sm:$0xff] }
 0x1ec   :  { %1676 = vadd.xlane.f32.xlu1 %v1533_v29  ;;  %v1012_v61 = vadd.f32 %v4905_v63, %v6864_v10  ;;  %v1015_v30 = vadd.f32 %v6865_v28, %v4905_v63  ;;  %v5234_v38 = vadd.f32 %v4931_v5, %v1011_v34  ;;  %v5237_v7 = vadd.f32 %v4931_v5, %v1010_v12  ;;  %v6867_v29 = vld [vmem:[#allocation26_spill] sm:$0xff]  ;;  %v6868_v32 = vld [vmem:[#allocation83_spill] sm:$0xff] }
 0x1ed   :  { %v1014_v3 = vadd.f32 %v4905_v63, %v6866_v0  ;;  %v1016_v13 = vadd.f32 %v4905_v63, %v6867_v29  ;;  %v995_v36 = vadd.f32 %v6868_v32, %v4905_v63  ;;  %v1404_v41 = vmax.f32 %v5076_v40, 0.0  ;;  %v6872_v29 = vld [vmem:[#allocation95_spill] sm:$0xff] }
 0x1ee   :  { %v1536_v34 = vmul.f32 %v4973_v47, %v1401_v20  ;;  %v1403_v43 = vmax.f32 %v5079_v42, 0.0  ;;  %v5250_v12 = vadd.f32 %v4931_v5, %v1013_v22  ;;  %v5253_v10 = vadd.f32 %v4931_v5, %v1012_v61  ;;  %v6870_v42 = vld [vmem:[#allocation87_spill] sm:$0xff] }
 0x1ef   :  { %1678 = vadd.xlane.f32.xlu0 %v1534_v9  ;;  %v1537_v9 = vmul.f32 %v4973_v47, %v1402_v50  ;;  %v5256_v28 = vadd.f32 %v4931_v5, %v1015_v30  ;;  %v5259_v0 = vadd.f32 %v4931_v5, %v1014_v3  ;;  %v5262_v40 = vadd.f32 %v4939_v17, %v993_v8  ;;  %v6869_v50 = vld [vmem:[#allocation25_spill] sm:$0xff]  ;;  %v6871_v61 = vld [vmem:[#allocation91_spill] sm:$0xff] }
 0x1f0   :  { %1680 = vadd.xlane.f32.xlu1 %v1535_v6  ;;  %v1017_v20 = vadd.f32 %v6869_v50, %v4905_v63  ;;  %v997_v6 = vadd.f32 %v6870_v42, %v4905_v63  ;;  %v5269_v22 = vadd.f32 %v4931_v5, %v1016_v13  ;;  %v999_v30 = vadd.f32 %v6871_v61, %v4905_v63  ;;  %v6873_v13 = vld [vmem:[#allocation27_spill] sm:$0xff] }
 0x1f1   :  { %v1001_v3 = vadd.f32 %v6872_v29, %v4905_v63  ;;  %v1538_v8 = vmul.f32 %v4973_v47, %v1403_v43  ;;  %v1405_v32 = vmax.f32 %v5087_v57, 0.0  ;;  %v5278_v50 = vadd.f32 %v4939_v17, %v995_v36  ;;  %v6875_v29 = vld [vmem:[#allocation30_spill] sm:$0xff] }
 0x1f2   :  { %v5281_v42 = vadd.f32 %v4931_v5, %v1017_v20  ;;  %v1018_v61 = vadd.f32 %v4905_v63, %v6874_v52  ;;  %v1539_v55 = vmul.f32 %v4973_v47, %v1404_v41  ;;  %v1020_v43 = vadd.f32 %v4905_v63, %v6875_v29  ;;  %v6877_v29 = vld [vmem:[#allocation32_spill] sm:$0xff] }
 0x1f3   :  { %1682 = vadd.xlane.f32.xlu0 %v1536_v34  ;;  %v1019_v34 = vadd.f32 %v6873_v13, %v4905_v63  ;;  %v5292_v57 = vadd.f32 %v4939_v17, %v997_v6  ;;  %v5298_v20 = vadd.f32 %v4939_v17, %v999_v30  ;;  %v5304_v41 = vadd.f32 %v4939_v17, %v1001_v3 }
 0x1f4   :  { %1684 = vadd.xlane.f32.xlu1 %v1537_v9  ;;  %v1406_v9 = vmax.f32 %v5082_v31, 0.0  ;;  %v5295_v36 = vadd.f32 %v4931_v5, %v1018_v61  ;;  %v6876_v31 = vld [vmem:[#allocation29_spill] sm:$0xff]  ;;  %v1407_v6 = vmax.f32 %v5093_v58, 0.0  ;;  %v1408_v30 = vmax.f32 %v5090_v25, 0.0 }
 0x1f5   :  { %v5301_v52 = vadd.f32 %v4931_v5, %v1019_v34  ;;  %v1021_v13 = vadd.f32 %v6876_v31, %v4905_v63  ;;  %v1022_v34 = vadd.f32 %v4905_v63, %v6877_v29  ;;  %v992_v3 = vadd.f32 %v4905_v63, %v6878_v54 }
 0x1f6   :  { %v1541_v61 = vmul.f32 %v4973_v47, %v1406_v9  ;;  %v5321_v31 = vrot.slane %v4925_v15, %v4900_v39  ;;  %v6880_v9 = vld [vmem:[#allocation34_spill] sm:$0xff]  ;;  %v1212_v29 = vcombine.high %v4915_v33, %v4915_v33  ;;  %v1542_v54 = vmul.f32 %v4973_v47, %v1407_v6  ;;  %v6881_v6 = vld [vmem:[#allocation85_spill] sm:$0xff] }
 0x1f7   :  { %1686 = vadd.xlane.f32.xlu0 %v1538_v8  ;;  %v1540_v8 = vmul.f32 %v4973_v47, %v1405_v32  ;;  %v5324_v58 = vadd.f32 %v4931_v5, %v1021_v13  ;;  %v6879_v32 = vld [vmem:[#allocation31_spill] sm:$0xff]  ;;  %v1024_v25 = vadd.f32 %v4905_v63, %v6880_v9  ;;  %v1409_v1 = vmax.f32 %v5121_v2, 0.0 }
 0x1f8   :  { %1688 = vadd.xlane.f32.xlu1 %v1539_v55  ;;  %v5311_v55 = vadd.f32 %v4931_v5, %v1020_v43  ;;  %v1023_v43 = vadd.f32 %v6879_v32, %v4905_v63  ;;  %v5335_v53 = vadd.f32 %v4931_v5, %v1022_v34  ;;  %v1543_v13 = vmul.f32 %v4973_v47, %v1408_v30  ;;  %v6882_v34 = vld [vmem:[#allocation89_spill] sm:$0xff] }
 0x1f9   :  { %v5346_v33 = vadd.f32 %v4939_v17, %v992_v3  ;;  %v994_v2 = vadd.f32 %v4905_v63, %v6881_v6  ;;  %v996_v9 = vadd.f32 %v4905_v63, %v6882_v34  ;;  %v5353_v30 = vrot.slane %v1212_v29, %v4900_v39  ;;  %v6884_v6 = vld [vmem:[#allocation49_spill] sm:$0xff] }
 0x1fa   :  { %v5340_v32 = vadd.f32 %v4931_v5, %v1023_v43  ;;  %v1544_v5 = vmul.f32 %v4973_v47, %v1409_v1  ;;  %v6883_v43 = vld [vmem:[#allocation36_spill] sm:$0xff] }
 0x1fb   :  { %1690 = vadd.xlane.f32.xlu0 %v1540_v8  ;;  %v1410_v8 = vmax.f32 %v5118_v26, 0.0  ;;  %v1411_v26 = vmax.f32 %v5127_v37, 0.0  ;;  %v5367_v29 = vadd.f32 %v4939_v17, %v994_v2  ;;  %v1413_v37 = vmax.f32 %v5134_v24, 0.0  ;;  %v6888_v24 = vld [vmem:[#allocation51_spill] sm:$0xff] }
 0x1fc   :  { %1692 = vadd.xlane.f32.xlu1 %v1541_v61  ;;  %v5343_v61 = vadd.f32 %v5321_v31, %v1024_v25  ;;  %v1026_v25 = vadd.f32 %v4905_v63, %v6883_v43 }
 0x1fd   :  { %v1545_v3 = vmul.f32 %v4973_v47, %v1410_v8  ;;  %v1546_v1 = vmul.f32 %v4973_v47, %v1411_v26  ;;  %v6886_v8 = vld [vmem:[#allocation93_spill] sm:$0xff]  ;;  %v1043_v26 = vadd.f32 %v6888_v24, %v4905_v63 }
 0x1fe   :  { %v5364_v34 = vadd.f32 %v5321_v31, %v1026_v25  ;;  %v1414_v25 = vmax.f32 %v5130_v35, 0.0  ;;  %v6893_v24 = vld [vmem:[#allocation33_spill] sm:$0xff] }
 0x1ff   :  { %1694 = vadd.xlane.f32.xlu0 %v1542_v54  ;;  %v1412_v54 = vmax.f32 %v5124_v45, 0.0  ;;  %v5375_v45 = vadd.f32 %v4939_v17, %v996_v9  ;;  %v1415_v9 = vmax.f32 %v5140_v62, 0.0 }
 0x200   :  { %1696 = vadd.xlane.f32.xlu1 %v1543_v13  ;;  %v1041_v13 = vadd.f32 %v6884_v6, %v4905_v63  ;;  %v6887_v6 = vld [vmem:[#allocation52_spill] sm:$0xff] }
 0x201   :  { %v1042_v2 = vadd.f32 %v4905_v63, %v6887_v6  ;;  %v1550_v62 = vmul.f32 %v4973_v47, %v1415_v9  ;;  %v1417_v6 = vmax.f32 %v5163_v14, 0.0  ;;  %v1419_v9 = vmax.f32 %v5169_v16, 0.0  ;;  %v6899_v16 = vld [vmem:[#allocation43_spill] sm:$0xff] }
 0x202   :  { %v5372_v43 = vadd.f32 %v5353_v30, %v1041_v13  ;;  %v1548_v13 = vmul.f32 %v4973_v47, %v1413_v37 }
 0x203   :  { %1698 = vadd.xlane.f32.xlu0 %v1544_v5  ;;  %v998_v5 = vadd.f32 %v4905_v63, %v6886_v8  ;;  %v1549_v8 = vmul.f32 %v4973_v47, %v1414_v25  ;;  %v1418_v25 = vmax.f32 %v5160_v23, 0.0  ;;  %v6895_v23 = vld [vmem:[#allocation35_spill] sm:$0xff] }
 0x204   :  { %1700 = vadd.xlane.f32.xlu1 %v1545_v3  ;;  %6885 = vst [vmem:[#allocation57_spill] sm:$0xff] %v5372_v43  ;;  %v1547_v3 = vmul.f32 %v4973_v47, %v1412_v54  ;;  %v5388_v43 = vadd.f32 %v5353_v30, %v1042_v2  ;;  %v1416_v54 = vmax.f32 %v5137_v60, 0.0  ;;  %v6891_v60 = vld [vmem:[#allocation53_spill] sm:$0xff] }
 0x205   :  { %v5393_v35 = vadd.f32 %v4939_v17, %v998_v5  ;;  %v1045_v17 = vadd.f32 %v6891_v60, %v4905_v63 }
 0x206   :  { %v1551_v2 = vmul.f32 %v4973_v47, %v1416_v54  ;;  %v6896_v54 = vld [vmem:[#allocation39_spill] sm:$0xff] }
 0x207   :  { %1702 = vadd.xlane.f32.xlu0 %v1546_v1  ;;  %v5396_v1 = vadd.f32 %v5353_v30, %v1043_v26  ;;  %v1025_v26 = vadd.f32 %v6893_v24, %v4905_v63  ;;  %v5414_v14 = vadd.f32 %v5353_v30, %v1045_v17  ;;  %v6898_v24 = vld [vmem:[#allocation42_spill] sm:$0xff]  ;;  %v1035_v17 = vadd.f32 %v6899_v16, %v4905_v63 }
 0x208   :  { %1704 = vadd.xlane.f32.xlu1 %v1547_v3  ;;  %v6890_v3 = vld [vmem:[#allocation37_spill] sm:$0xff] }
 0x209   :  { %6889 = vst [vmem:[#allocation59_spill] sm:$0xff] %v5396_v1  ;;  %v1029_v37 = vadd.f32 %v6890_v3, %v4905_v63  ;;  %6894 = vst [vmem:[#allocation63_spill] sm:$0xff] %v5414_v14  ;;  %v1031_v3 = vadd.f32 %v6896_v54, %v4905_v63  ;;  %v6900_v14 = vld [vmem:[#allocation44_spill] sm:$0xff]  ;;  %v5442_v16 = vadd.f32 %v5321_v31, %v1025_v26 }
 0x20a   :  { %v5460_v26 = vadd.f32 %v5321_v31, %v1035_v17 }
 0x20b   :  { %1706 = vadd.xlane.f32.xlu0 %v1548_v13  ;;  %v5407_v5 = vadd.f32 %v5321_v31, %v1029_v37  ;;  %v1552_v13 = vmul.f32 %v4973_v47, %v1417_v6  ;;  %v1553_v37 = vmul.f32 %v4973_v47, %v1418_v25  ;;  %v1032_v6 = vadd.f32 %v4905_v63, %v6898_v24 }
 0x20c   :  { %1708 = vadd.xlane.f32.xlu1 %v1549_v8  ;;  %v1027_v8 = vadd.f32 %v6895_v23, %v4905_v63  ;;  %v6901_v23 = vld [vmem:[#allocation50_spill] sm:$0xff]  ;;  %v1422_v25 = vmax.f32 %v5172_v27, 0.0  ;;  %v1554_v24 = vmul.f32 %v4973_v47, %v1419_v9  ;;  %v1214_v9 = vcombine.high %v4925_v15, %v4925_v15  ;;  %6905 = vst [vmem:[#allocation71_spill] sm:$0xff] %v5460_v26 }
 0x20d   :  { %6892 = vst [vmem:[#allocation61_spill] sm:$0xff] %v5407_v5  ;;  %v1034_v5 = vadd.f32 %v4905_v63, %v6900_v14  ;;  %v1040_v54 = vadd.f32 %v4905_v63, %v6901_v23  ;;  %v5439_v1 = vadd.f32 %v5321_v31, %v1032_v6  ;;  %v6908_v23 = vld [vmem:[#allocation45_spill] sm:$0xff] }
 0x20f   :  { %1710 = vadd.xlane.f32.xlu0 %v1550_v62  ;;  %v1420_v62 = vmax.f32 %v5166_v44, 0.0  ;;  %v1421_v44 = vmax.f32 %v5177_v4, 0.0  ;;  %v5449_v27 = vadd.f32 %v5353_v30, %v1040_v54  ;;  %v5452_v4 = vadd.f32 %v5321_v31, %v1034_v5  ;;  %v6909_v54 = vld [vmem:[#allocation46_spill] sm:$0xff] }
 0x210   :  { %1712 = vadd.xlane.f32.xlu1 %v1551_v2  ;;  %v6897_v2 = vld [vmem:[#allocation41_spill] sm:$0xff]  ;;  %v1037_v5 = vadd.f32 %v6908_v23, %v4905_v63  ;;  %v1424_v23 = vmax.f32 %v5180_v46, 0.0 }
 0x211   :  { %v1033_v60 = vadd.f32 %v6897_v2, %v4905_v63  ;;  %v5435_v2 = vadd.f32 %v5321_v31, %v1031_v3  ;;  %v1555_v14 = vmul.f32 %v4973_v47, %v1420_v62  ;;  %6903 = vst [vmem:[#allocation67_spill] sm:$0xff] %v5452_v4  ;;  %v5455_v3 = vadd.f32 %v5321_v31, %v1027_v8  ;;  %v6907_v62 = vld [vmem:[#allocation40_spill] sm:$0xff] }
 0x212   :  { %v1030_v6 = vadd.f32 %v4905_v63, %v6907_v62  ;;  %v1036_v8 = vadd.f32 %v4905_v63, %v6909_v54  ;;  %v6910_v4 = vld [vmem:[#allocation48_spill] sm:$0xff]  ;;  %v1556_v26 = vmul.f32 %v4973_v47, %v1421_v44 }
 0x213   :  { %1714 = vadd.xlane.f32.xlu0 %v1552_v13  ;;  %v5445_v13 = vadd.f32 %v5321_v31, %v1033_v60  ;;  %6904 = vst [vmem:[#allocation69_spill] sm:$0xff] %v5455_v3  ;;  %v1038_v15 = vadd.f32 %v4905_v63, %v6910_v4  ;;  %v6912_v3 = vld [vmem:[#allocation56_spill] sm:$0xff] }
 0x214   :  { %1716 = vadd.xlane.f32.xlu1 %v1553_v37  ;;  %v6906_v37 = vld [vmem:[#allocation38_spill] sm:$0xff]  ;;  %v1046_v62 = vadd.f32 %v4905_v63, %v6912_v3  ;;  %v5487_v4 = vadd.f32 %v5321_v31, %v1036_v8 }
 0x215   :  { %6902 = vst [vmem:[#allocation65_spill] sm:$0xff] %v5445_v13  ;;  %v1028_v60 = vadd.f32 %v4905_v63, %v6906_v37  ;;  %v1423_v37 = vmax.f32 %v5183_v48, 0.0  ;;  %v1557_v13 = vmul.f32 %v4973_v47, %v1422_v25  ;;  %v5493_v48 = vadd.f32 %v5321_v31, %v1037_v5 }
 0x216   :  { %v5496_v25 = vadd.f32 %v5321_v31, %v1030_v6  ;;  %v5499_v46 = vadd.f32 %v5321_v31, %v1038_v15  ;;  %v5502_v3 = vadd.f32 %v5353_v30, %v1046_v62  ;;  %v1425_v5 = vmax.f32 %v5207_v18, 0.0 }
 0x217   :  { %1718 = vadd.xlane.f32.xlu0 %v1554_v24  ;;  %v6911_v24 = vld [vmem:[#allocation54_spill] sm:$0xff]  ;;  %v5481_v54 = vadd.f32 %v5321_v31, %v1028_v60  ;;  %6913 = vst [vmem:[#allocation73_spill] sm:$0xff] %v5493_v48  ;;  %v1426_v62 = vmax.f32 %v5204_v59, 0.0  ;;  %v1427_v59 = vmax.f32 %v5213_v49, 0.0 }
 0x218   :  { %1720 = vadd.xlane.f32.xlu1 %v1555_v14  ;;  %v1044_v17 = vadd.f32 %v4905_v63, %v6911_v24  ;;  %v5484_v14 = vrot.slane %v1214_v9, %v4900_v39  ;;  %6914 = vst [vmem:[#allocation75_spill] sm:$0xff] %v5496_v25  ;;  %6915 = vst [vmem:[#allocation77_spill] sm:$0xff] %v5499_v46  ;;  %v6917_v9 = vld [vmem:[#allocation55_spill] sm:$0xff]  ;;  %v6918_v60 = vld [vmem:[#allocation74_spill] sm:$0xff]  ;;  %v1558_v24 = vmul.f32 %v4973_v47, %v1423_v37 }
 0x219   :  { %6916 = vst [vmem:[#allocation19_spill] sm:$0xff] %v5502_v3  ;;  %v1057_v8 = vadd.f32 %v6918_v60, %v4905_v63  ;;  %v1559_v39 = vmul.f32 %v4973_v47, %v1424_v23  ;;  %v6921_v46 = vld [vmem:[#allocation64_spill] sm:$0xff]  ;;  %v6923_v37 = vld [vmem:[#allocation78_spill] sm:$0xff]  ;;  %v1428_v23 = vmax.f32 %v5210_v19, 0.0 }
 0x21a   :  { %v5490_v44 = vadd.f32 %v5353_v30, %v1044_v17  ;;  %v6920_v17 = vld [vmem:[#allocation60_spill] sm:$0xff]  ;;  %v1059_v48 = vadd.f32 %v6923_v37, %v4905_v63 }
 0x21b   :  { %1722 = vadd.xlane.f32.xlu0 %v1556_v26  ;;  %v1047_v26 = vadd.f32 %v6917_v9, %v4905_v63  ;;  %v1048_v15 = vadd.f32 %v4905_v63, %v6920_v17  ;;  %v1050_v9 = vadd.f32 %v4905_v63, %v6921_v46  ;;  %v6922_v3 = vld [vmem:[#allocation72_spill] sm:$0xff]  ;;  %v5523_v18 = vadd.f32 %v5484_v14, %v1057_v8 }
 0x21c   :  { %1724 = vadd.xlane.f32.xlu1 %v1557_v13  ;;  %v6919_v13 = vld [vmem:[#allocation58_spill] sm:$0xff]  ;;  %v1054_v60 = vadd.f32 %v4905_v63, %v6922_v3  ;;  %v1560_v3 = vmul.f32 %v4973_v47, %v1425_v5  ;;  %v5534_v25 = vadd.f32 %v5484_v14, %v1059_v48 }
 0x21d   :  { %v1049_v6 = vadd.f32 %v6919_v13, %v4905_v63  ;;  %v6924_v13 = vld [vmem:[#allocation70_spill] sm:$0xff]  ;;  %v5530_v46 = vadd.f32 %v5353_v30, %v1047_v26  ;;  %v5550_v26 = vadd.f32 %v5353_v30, %v1050_v9 }
 0x21e   :  { %v1055_v17 = vadd.f32 %v6924_v13, %v4905_v63  ;;  %6925 = vst [vmem:[#allocation20_spill] sm:$0xff] %v5534_v25  ;;  %v5540_v8 = vadd.f32 %v5353_v30, %v1054_v60  ;;  %v6930_v48 = vld [vmem:[#allocation62_spill] sm:$0xff]  ;;  %v1563_v25 = vmul.f32 %v4973_v47, %v1428_v23 }
 0x21f   :  { %1726 = vadd.xlane.f32.xlu0 %v1558_v24  ;;  %v5537_v24 = vadd.f32 %v5353_v30, %v1048_v15  ;;  %v5544_v19 = vadd.f32 %v5353_v30, %v1049_v6  ;;  %6929 = vst [vmem:[#allocation23_spill] sm:$0xff] %v5550_v26  ;;  %v1051_v5 = vadd.f32 %v6930_v48, %v4905_v63  ;;  %v6931_v15 = vld [vmem:[#allocation82_spill] sm:$0xff]  ;;  %v6936_v26 = vld [vmem:[#allocation88_spill] sm:$0xff] }
 0x220   :  { %1728 = vadd.xlane.f32.xlu1 %v1559_v39  ;;  %6926 = vst [vmem:[#allocation21_spill] sm:$0xff] %v5540_v8  ;;  %v1561_v39 = vmul.f32 %v4973_v47, %v1426_v62  ;;  %v5547_v49 = vadd.f32 %v5353_v30, %v1055_v17  ;;  %v1061_v37 = vadd.f32 %v6931_v15, %v4905_v63  ;;  %v6932_v60 = vld [vmem:[#allocation66_spill] sm:$0xff]  ;;  %v6933_v62 = vld [vmem:[#allocation68_spill] sm:$0xff] }
 0x221   :  { %6927 = vst [vmem:[#allocation79_spill] sm:$0xff] %v5544_v19  ;;  %v1053_v13 = vadd.f32 %v6932_v60, %v4905_v63  ;;  %v1052_v6 = vadd.f32 %v4905_v63, %v6933_v62  ;;  %v6934_v8 = vld [vmem:[#allocation76_spill] sm:$0xff]  ;;  %v1062_v48 = vadd.f32 %v4905_v63, %v6936_v26  ;;  %v1562_v19 = vmul.f32 %v4973_v47, %v1427_v59 }
 0x222   :  { %6928 = vst [vmem:[#allocation22_spill] sm:$0xff] %v5547_v49  ;;  %v1056_v17 = vadd.f32 %v4905_v63, %v6934_v8  ;;  %v6935_v49 = vld [vmem:[#allocation86_spill] sm:$0xff]  ;;  %v5569_v15 = vadd.f32 %v5484_v14, %v1061_v37  ;;  %v6937_v60 = vld [vmem:[#allocation92_spill] sm:$0xff]  ;;  %v1430_v8 = vmax.f32 %v5216_v56, 0.0  ;;  %v1447_v37 = vmax.f32 %v4947_v21, 0.0 }
 0x223   :  { %1730 = vadd.xlane.f32.xlu0 %v1560_v3  ;;  %v1063_v9 = vadd.f32 %v6935_v49, %v4905_v63  ;;  %v1429_v3 = vmax.f32 %v5222_v11, 0.0  ;;  %v1064_v62 = vadd.f32 %v4905_v63, %v6937_v60  ;;  %v5576_v49 = vadd.f32 %v5353_v30, %v1051_v5  ;;  %v6944_v60 = vld [vmem:[#allocation80_spill] sm:$0xff] }
 0x224   :  { %1732 = vadd.xlane.f32.xlu1 %v1561_v39  ;;  %v1448_v39 = vmax.f32 %v4944_v51, 0.0  ;;  %v5580_v59 = vadd.f32 %v5484_v14, %v1062_v48  ;;  %v5583_v11 = vadd.f32 %v5353_v30, %v1052_v6  ;;  %v5590_v56 = vadd.f32 %v5353_v30, %v1053_v13 }
 0x225   :  { %v5586_v26 = vadd.f32 %v5484_v14, %v1063_v9  ;;  %v5593_v23 = vadd.f32 %v5484_v14, %v1064_v62  ;;  %v5596_v51 = vadd.f32 %v5484_v14, %v1056_v17  ;;  %v1564_v6 = vmul.f32 %v4973_v47, %v1429_v3  ;;  %v6943_v9 = vld [vmem:[#allocation47_spill] sm:$0xff]  ;;  %v6946_v62 = vld [vmem:[#allocation94_spill] sm:$0xff] }
 0x226   :  { %6939 = vst [vmem:[#allocation26_spill] sm:$0xff] %v5590_v56  ;;  %v1039_v48 = vadd.f32 %v6943_v9, %v4905_v63  ;;  %v1058_v21 = vadd.f32 %v4905_v63, %v6944_v60  ;;  %v1565_v13 = vmul.f32 %v4973_v47, %v1430_v8  ;;  %v1067_v17 = vadd.f32 %v6946_v62, %v4905_v63 }
 0x227   :  { %1734 = vadd.xlane.f32.xlu0 %v1562_v19  ;;  %6938 = vst [vmem:[#allocation24_spill] sm:$0xff] %v5586_v26  ;;  %6940 = vst [vmem:[#allocation83_spill] sm:$0xff] %v5593_v23  ;;  %v6942_v19 = vld [vmem:[#allocation90_spill] sm:$0xff]  ;;  %v6947_v23 = vld [vmem:[#allocation96_spill] sm:$0xff]  ;;  %v1582_v8 = vmul.f32 %v4973_v47, %v1447_v37 }
 0x228   :  { %1736 = vadd.xlane.f32.xlu1 %v1563_v25  ;;  %6941 = vst [vmem:[#allocation25_spill] sm:$0xff] %v5596_v51  ;;  %v1065_v5 = vadd.f32 %v6942_v19, %v4905_v63  ;;  %v6945_v25 = vld [vmem:[#allocation84_spill] sm:$0xff]  ;;  %v1066_v51 = vadd.f32 %v4905_v63, %v6947_v23  ;;  %v6948_v19 = vld [vmem:[#allocation97_spill] sm:$0xff]  ;;  %v6949_v26 = vld [vmem:[#allocation98_spill] sm:$0xff]  ;;  %v5622_v62 = vadd.f32 %v5484_v14, %v1058_v21  ;;  %v1449_v23 = vmax.f32 %v5237_v7, 0.0 }
 0x229   :  { %v1060_v30 = vadd.f32 %v4905_v63, %v6945_v25  ;;  %v1069_v3 = vadd.f32 %v6948_v19, %v4905_v63  ;;  %v1068_v60 = vadd.f32 %v4905_v63, %v6949_v26  ;;  %v1583_v25 = vmul.f32 %v4973_v47, %v1448_v39  ;;  %v6950_v7 = vld [vmem:[#allocation100_spill] sm:$0xff] }
 0x22a   :  { %v5615_v9 = vadd.f32 %v5484_v14, %v1065_v5  ;;  %v5626_v56 = vadd.f32 %v5484_v14, %v1066_v51  ;;  %v5632_v5 = vadd.f32 %v5484_v14, %v1067_v17  ;;  %v1450_v26 = vmax.f32 %v5234_v38, 0.0 }
 0x22b   :  { %1738 = vadd.xlane.f32.xlu0 %v1564_v6  ;;  %v5629_v6 = vadd.f32 %v5484_v14, %v1060_v30  ;;  %v5636_v39 = vadd.f32 %v5321_v31, %v1039_v48  ;;  %v5639_v37 = vadd.f32 %v5484_v14, %v1068_v60  ;;  %v5642_v21 = vadd.f32 %v5484_v14, %v1069_v3  ;;  %v6951_v30 = vld [vmem:[#allocation101_spill] sm:$0xff] }
 0x22c   :  { %1740 = vadd.xlane.f32.xlu1 %v1565_v13  ;;  %v1071_v51 = vadd.f32 %v6950_v7, %v4905_v63  ;;  %v1070_v13 = vadd.f32 %v4905_v63, %v6951_v30  ;;  %v1584_v17 = vmul.f32 %v4973_v47, %v1449_v23  ;;  %v1451_v38 = vmax.f32 %v5253_v10, 0.0 }
 0x22d   :  { %v1585_v48 = vmul.f32 %v4973_v47, %v1450_v26  ;;  %v1452_v19 = vmax.f32 %v5250_v12, 0.0  ;;  %v1453_v63 = vmax.f32 %v5259_v0, 0.0  ;;  %v1454_v10 = vmax.f32 %v5256_v28, 0.0 }
 0x22e   :  { %v5651_v31 = vadd.f32 %v5484_v14, %v1071_v51  ;;  %v5656_v3 = vadd.f32 %v5484_v14, %v1070_v13  ;;  %v1586_v60 = vmul.f32 %v4973_v47, %v1451_v38  ;;  %v1455_v23 = vmax.f32 %v5269_v22, 0.0 }
 0x22f   :  { %1774 = vadd.xlane.f32.xlu0 %v1582_v8  ;;  %v1588_v8 = vmul.f32 %v4973_v47, %v1453_v63  ;;  %v1589_v12 = vmul.f32 %v4973_v47, %v1454_v10  ;;  %v1432_v14 = vmax.f32 %v5262_v40, 0.0  ;;  %v1456_v0 = vmax.f32 %v5281_v42, 0.0  ;;  %v6953_v10 = vld [vmem:[#allocation106_spill] sm:$0xff] }
 0x230   :  { %1776 = vadd.xlane.f32.xlu1 %v1583_v25  ;;  %v1587_v25 = vmul.f32 %v4973_v47, %v1452_v19  ;;  %v1590_v26 = vmul.f32 %v4973_v47, %v1455_v23  ;;  %v1434_v28 = vmax.f32 %v5278_v50, 0.0  ;;  %v1457_v22 = vmax.f32 %v5295_v36, 0.0 }
 0x231   :  { %v1567_v7 = vmul.f32 %v4973_v47, %v1432_v14  ;;  %v1591_v51 = vmul.f32 %v4973_v47, %v1456_v0  ;;  %v1436_v40 = vmax.f32 %v5292_v57, 0.0  ;;  %v1458_v42 = vmax.f32 %v5301_v52, 0.0 }
 0x232   :  { %v1569_v30 = vmul.f32 %v4973_v47, %v1434_v28  ;;  %v1592_v13 = vmul.f32 %v4973_v47, %v1457_v22  ;;  %v1438_v50 = vmax.f32 %v5298_v20, 0.0  ;;  %v1459_v36 = vmax.f32 %v5311_v55, 0.0 }
 0x233   :  { %1778 = vadd.xlane.f32.xlu0 %v1584_v17  ;;  %v1571_v17 = vmul.f32 %v4973_v47, %v1436_v40  ;;  %v1593_v38 = vmul.f32 %v4973_v47, %v1458_v42  ;;  %v1440_v57 = vmax.f32 %v5304_v41, 0.0  ;;  %v1460_v52 = vmax.f32 %v5324_v58, 0.0 }
 0x234   :  { %1780 = vadd.xlane.f32.xlu1 %v1585_v48  ;;  %v1573_v48 = vmul.f32 %v4973_v47, %v1438_v50  ;;  %v1594_v19 = vmul.f32 %v4973_v47, %v1459_v36  ;;  %v1461_v55 = vmax.f32 %v5335_v53, 0.0  ;;  %v1462_v58 = vmax.f32 %v5340_v32, 0.0 }
 0x235   :  { %v1575_v20 = vmul.f32 %v4973_v47, %v1440_v57  ;;  %v6955_v0 = vlaneseq  ;;  %v1431_v28 = vmax.f32 %v5346_v33, 0.0  ;;  %v1463_v22 = vmax.f32 %v5343_v61, 0.0 }
 0x236   :  { %v1596_v23 = vmul.f32 %v4973_v47, %v1461_v55  ;;  %v1597_v53 = vmul.f32 %v4973_v47, %v1462_v58  ;;  %v5706_v40 = vstv %s6747_s7 }
 0x237   :  { %1782 = vadd.xlane.f32.xlu0 %v1586_v60  ;;  %v6952_v60 = vld [vmem:[#allocation104_spill] sm:$0xff]  ;;  %v1566_v50 = vmul.f32 %v4973_v47, %v1431_v28  ;;  %v1598_v36 = vmul.f32 %v4973_v47, %v1463_v22 }
 0x238   :  { %1784 = vadd.xlane.f32.xlu1 %v1587_v25  ;;  %v1442_v63 = vmax.f32 %v6952_v60, 0.0  ;;  %v1595_v25 = vmul.f32 %v4973_v47, %v1460_v52 }
 0x23a   :  { %v1577_v41 = vmul.f32 %v4973_v47, %v1442_v63 }
 0x23b   :  { %1786 = vadd.xlane.f32.xlu0 %v1588_v8  ;;  %v1444_v8 = vmax.f32 %v6953_v10, 0.0 }
 0x23c   :  { %1788 = vadd.xlane.f32.xlu1 %v1589_v12  ;;  %v6954_v12 = vld [vmem:[#allocation108_spill] sm:$0xff] }
 0x23d   :  { %v1446_v14 = vmax.f32 %v6954_v12, 0.0  ;;  %v6958_v12 = vld [vmem:[#allocation57_spill] sm:$0xff] }
 0x23f   :  { %1790 = vadd.xlane.f32.xlu0 %v1590_v26  ;;  %v1579_v26 = vmul.f32 %v4973_v47, %v1444_v8 }
 0x240   :  { %1744 = vadd.xlane.f32.xlu1 %v1567_v7  ;;  %v5695_v7 = vand.u32 127, %v6955_v0 }
 0x242   :  { %6956 = vst [vmem:[#allocation87_spill] sm:$0xff] %v5695_v7  ;;  %v2174_v32 = vadd.s32 4294967280, %v5695_v7  ;;  %v2181_v61 = vadd.s32 4294967272, %v5695_v7  ;;  %v2195_v57 = vadd.s32 4294967256, %v5695_v7  ;;  %v2188_v63 = vadd.s32 4294967264, %v5695_v7 }
 0x243   :  { %1792 = vadd.xlane.f32.xlu0 %v1591_v51  ;;  %v1581_v51 = vmul.f32 %v4973_v47, %v1446_v14  ;;  %v1480_v14 = vmax.f32 %v6958_v12, 0.0  ;;  %v5773_v12 = vld [vmem:[%s6746_s6] ss:$0 sm:$0xff]  ;;  %s4523_s6 = smov [#allocation12]  }
 0x244   :  { %1748 = vadd.xlane.f32.xlu1 %v1569_v30  ;;  %v2167_v30 = vadd.s32 4294967288, %v5695_v7  ;;  %s3716_s20 = sshll.u32 %s4523_s6, 4  ;;  %s3717_s20 = int_to_ptr.vmem [resolvable:$true] %s3716_s20 }
 0x245   :  { %s4459_s21 = scalar_lea.vmem %s3717_s20, 128  ;;  %p4464_p5 = scmp.lt.s32.totalorder %s3717_s20, %s3717_s20 }
 0x246   :  { %p4460_p4 = scmp.ne.s32.totalorder %s3717_s20, %s4459_s21  ;;  %p4465_p6 = scmp.lt.s32.totalorder %s4459_s21, %s4459_s21 }
 0x247   :  { %1794 = vadd.xlane.f32.xlu0 %v1592_v13 }
 0x248   :  { %1752 = vadd.xlane.f32.xlu1 %v1571_v17  ;;  %v6957_v17 = vld [vmem:[#allocation99_spill] sm:$0xff]  ;;  %p4466_p7 = por %p4465_p6, %p4464_p5 }
 0x249   :  { %v5710_v33 = vsub.s32 %v5695_v7, %v6957_v17  ;;  %v5720_v52 = vsub.s32 %v2174_v32, %v6957_v17  ;;  %v5723_v60 = vsub.s32 %v2167_v30, %v6957_v17  ;;  %v5730_v55 = vsub.s32 %v2181_v61, %v6957_v17 }
 0x24a   :  { %v5736_v58 = vsub.s32 %v2195_v57, %v6957_v17  ;;  %v5742_v0 = vsub.s32 %v2188_v63, %v6957_v17  ;;  %v2209_v32 = vadd.s32 4294967240, %v5695_v7  ;;  %v1437_v61 = vmax.f32 %v5393_v35, 0.0  ;;  %p4467_p8 = pnand %p4466_p7, %p4460_p4 }
 0x24b   :  { %1796 = vadd.xlane.f32.xlu0 %v1593_v38  ;;  %v1433_v38 = vmax.f32 %v5367_v29, 0.0  ;;  %v1481_v57 = vmax.f32 %v5388_v43, 0.0  ;;  %v2223_v43 = vadd.s32 4294967224, %v5695_v7 }
 0x24c   :  { %1756 = vadd.xlane.f32.xlu1 %v1573_v48  ;;  %v1465_v48 = vmax.f32 %v5364_v34, 0.0  ;;  %v1435_v34 = vmax.f32 %v5375_v45, 0.0 }
 0x24d   :  { %v1568_v8 = vmul.f32 %v4973_v47, %v1433_v38 }
 0x24e   :  { %v1570_v22 = vmul.f32 %v4973_v47, %v1435_v34  ;;  %v6959_v34 = vld [vmem:[#allocation103_spill] sm:$0xff] }
 0x24f   :  { %1798 = vadd.xlane.f32.xlu0 %v1594_v19  ;;  %v1439_v35 = vmax.f32 %v6959_v34, 0.0 }
 0x250   :  { %1760 = vadd.xlane.f32.xlu1 %v1575_v20 }
 0x253   :  { %1800 = vadd.xlane.f32.xlu0 %v1595_v25 }
 0x254   :  { %1764 = vadd.xlane.f32.xlu1 %v1577_v41 }
 0x257   :  { %1802 = vadd.xlane.f32.xlu0 %v1596_v23  ;;  %v1600_v23 = vmul.f32 %v4973_v47, %v1465_v48  ;;  %v1615_v48 = vmul.f32 %v4973_v47, %v1480_v14  ;;  %v1572_v14 = vmul.f32 %v5773_v12, %v1437_v61  ;;  %v5788_v61 = vsub.s32 %v2223_v43, %v6957_v17 }
 0x258   :  { %1768 = vadd.xlane.f32.xlu1 %v1579_v26 }
 0x25b   :  { %1804 = vadd.xlane.f32.xlu0 %v1597_v53  ;;  %v2202_v53 = vadd.s32 4294967248, %v5695_v7 }
 0x25c   :  { %1772 = vadd.xlane.f32.xlu1 %v1581_v51  ;;  %v1647_v13 = vpop.xlane.xlu0 %1646  ;;  %v1651_v42 = vpop.xlane.xlu1 %1650 }
 0x25d   :  { %v1904_v19 = vadd.f32 %v5706_v40, %v1647_v13  ;;  %v1906_v29 = vadd.f32 %v5706_v40, %v1651_v42 }
 0x25f   :  { %1742 = vadd.xlane.f32.xlu0 %v1566_v50  ;;  %v2166_v45 = vrot.slane %v1904_v19, %v5710_v33  ;;  %v2178_v28 = vrot.slane %v1906_v29, %v5720_v52  ;;  %v5759_v29 = vsub.s32 %v2202_v53, %v6957_v17  ;;  %v1616_v53 = vmul.f32 %v5773_v12, %v1481_v57 }
 0x260   :  { %1806 = vadd.xlane.f32.xlu1 %v1598_v36  ;;  %v1649_v20 = vpop.xlane.xlu0 %1648 }
 0x261   :  { %v1905_v25 = vadd.f32 %v5706_v40, %v1649_v20  ;;  %v1653_v10 = vpop.xlane.xlu1 %1652  ;;  %v2216_v20 = vadd.s32 4294967232, %v5695_v7 }
 0x262   :  { %v1907_v41 = vadd.f32 %v5706_v40, %v1653_v10  ;;  %v5765_v10 = vsub.s32 %v2209_v32, %v6957_v17 }
 0x263   :  { %v2171_v26 = vrot.slane %v1905_v25, %v5723_v60  ;;  %1746 = vadd.xlane.f32.xlu0 %v1568_v8  ;;  %v5782_v32 = vsub.s32 %v2216_v20, %v6957_v17 }
 0x264   :  { %1810 = vadd.xlane.f32.xlu1 %v1600_v23  ;;  %v1655_v51 = vpop.xlane.xlu0 %1654  ;;  %v2185_v13 = vrot.slane %v1907_v41, %v5730_v55 }
 0x265   :  { %v2173_v30 = vsel %vm2172_vm1, %v2171_v26, %v2166_v45  ;;  %v1657_v42 = vpop.xlane.xlu1 %1656  ;;  %v1908_v50 = vadd.f32 %v5706_v40, %v1655_v51 }
 0x266   :  { %v2180_v38 = vsel %vm2179_vm2, %v2178_v28, %v2173_v30  ;;  %v1909_v36 = vadd.f32 %v5706_v40, %v1657_v42  ;;  %v6960_v28 = vld [vmem:[#allocation59_spill] sm:$0xff]  ;;  %v2230_v30 = vadd.s32 4294967216, %v5695_v7 }
 0x267   :  { %v2187_v19 = vsel %vm2186_vm3, %v2185_v13, %v2180_v38  ;;  %v2192_v63 = vrot.slane %v1908_v50, %v5742_v0  ;;  %1750 = vadd.xlane.f32.xlu0 %v1570_v22  ;;  %v1482_v51 = vmax.f32 %v6960_v28, 0.0  ;;  %v6961_v13 = vld [vmem:[#allocation105_spill] sm:$0xff]  ;;  %v2251_v28 = vadd.s32 4294967192, %v5695_v7 }
 0x268   :  { %v2199_v25 = vrot.slane %v1909_v36, %v5736_v58  ;;  %1840 = vadd.xlane.f32.xlu1 %v1615_v48  ;;  %v1659_v47 = vpop.xlane.xlu0 %1658  ;;  %v1441_v42 = vmax.f32 %v6961_v13, 0.0  ;;  %v2237_v36 = vadd.s32 4294967208, %v5695_v7 }
 0x269   :  { %v2194_v8 = vsel %vm2193_vm4, %v2192_v63, %v2187_v19  ;;  %v1661_v41 = vpop.xlane.xlu1 %1660  ;;  %v1910_v23 = vadd.f32 %v5706_v40, %v1659_v47  ;;  %v1574_v63 = vmul.f32 %v5773_v12, %v1439_v35  ;;  %v6962_v47 = vld [vmem:[#allocation61_spill] sm:$0xff] }
 0x26a   :  { %v1911_v45 = vadd.f32 %v5706_v40, %v1661_v41  ;;  %v2201_v26 = vsel %vm2200_vm5, %v2199_v25, %v2194_v8  ;;  %v1617_v25 = vmul.f32 %v5773_v12, %v1482_v51  ;;  %v1468_v43 = vmax.f32 %v6962_v47, 0.0 }
 0x26b   :  { %v2206_v22 = vrot.slane %v1910_v23, %v5759_v29  ;;  %1754 = vadd.xlane.f32.xlu0 %v1572_v14  ;;  %v5800_v41 = vsub.s32 %v2230_v30, %v6957_v17  ;;  %v2244_v23 = vadd.s32 4294967200, %v5695_v7  ;;  %v6963_v14 = vld [vmem:[#allocation107_spill] sm:$0xff]  ;;  %v1576_v13 = vmul.f32 %v5773_v12, %v1441_v42 }
 0x26c   :  { %v2213_v50 = vrot.slane %v1911_v45, %v5765_v10  ;;  %1842 = vadd.xlane.f32.xlu1 %v1616_v53  ;;  %v1663_v38 = vpop.xlane.xlu0 %1662  ;;  %v1443_v45 = vmax.f32 %v6963_v14, 0.0  ;;  %v5824_v47 = vsub.s32 %v2251_v28, %v6957_v17  ;;  %v1470_v28 = vmax.f32 %v5435_v2, 0.0 }
 0x26d   :  { %v2208_v48 = vsel %vm2207_vm6, %v2206_v22, %v2201_v26  ;;  %v1665_v57 = vpop.xlane.xlu1 %1664  ;;  %v1912_v19 = vadd.f32 %v5706_v40, %v1663_v38  ;;  %v5806_v26 = vsub.s32 %v2237_v36, %v6957_v17 }
 0x26e   :  { %v1913_v20 = vadd.f32 %v5706_v40, %v1665_v57  ;;  %v2215_v34 = vsel %vm2214_vm7, %v2213_v50, %v2208_v48  ;;  %v1603_v48 = vmul.f32 %v5773_v12, %v1468_v43  ;;  %v6964_v57 = vld [vmem:[#allocation63_spill] sm:$0xff] }
 0x26f   :  { %v2220_v8 = vrot.slane %v1912_v19, %v5782_v32  ;;  %1758 = vadd.xlane.f32.xlu0 %v1574_v63  ;;  %v1484_v36 = vmax.f32 %v6964_v57, 0.0  ;;  %v5818_v63 = vsub.s32 %v2244_v23, %v6957_v17 }
 0x270   :  { %v2227_v35 = vrot.slane %v1913_v20, %v5788_v61  ;;  %1844 = vadd.xlane.f32.xlu1 %v1617_v25  ;;  %v1667_v53 = vpop.xlane.xlu0 %1666  ;;  %v2258_v20 = vadd.s32 4294967184, %v5695_v7 }
 0x271   :  { %v2222_v51 = vsel %vm2221_vm8, %v2220_v8, %v2215_v34  ;;  %v1669_v22 = vpop.xlane.xlu1 %1668  ;;  %v1914_v30 = vadd.f32 %v5706_v40, %v1667_v53  ;;  %v6965_v34 = vld [vmem:[#allocation109_spill] sm:$0xff]  ;;  %v2265_v8 = vadd.s32 4294967176, %v5695_v7  ;;  %v1578_v53 = vmul.f32 %v5773_v12, %v1443_v45 }
 0x272   :  { %v1915_v50 = vadd.f32 %v5706_v40, %v1669_v22  ;;  %v2229_v38 = vsel %vm6757_vm9, %v2227_v35, %v2222_v51  ;;  %v1445_v25 = vmax.f32 %v6965_v34, 0.0  ;;  %v1464_v34 = vmax.f32 %v5442_v16, 0.0 }
 0x273   :  { %v2234_v19 = vrot.slane %v1914_v30, %v5800_v41  ;;  %1762 = vadd.xlane.f32.xlu0 %v1576_v13  ;;  %v1619_v30 = vmul.f32 %v5773_v12, %v1484_v36  ;;  %v5840_v45 = vsub.s32 %v2265_v8, %v6957_v17  ;;  %v1471_v8 = vmax.f32 %v5439_v1, 0.0 }
 0x274   :  { %v2241_v42 = vrot.slane %v1915_v50, %v5806_v26  ;;  %1816 = vadd.xlane.f32.xlu1 %v1603_v48  ;;  %v1671_v43 = vpop.xlane.xlu0 %1670  ;;  %v5836_v50 = vsub.s32 %v2258_v20, %v6957_v17 }
 0x275   :  { %v2236_v14 = vsel %vm2235_vm10, %v2234_v19, %v2229_v38  ;;  %v1673_v35 = vpop.xlane.xlu1 %1672  ;;  %v1916_v23 = vadd.f32 %v5706_v40, %v1671_v43  ;;  %v1580_v19 = vmul.f32 %v5773_v12, %v1445_v25  ;;  %v1605_v43 = vmul.f32 %v5773_v12, %v1470_v28 }
 0x276   :  { %v1917_v51 = vadd.f32 %v5706_v40, %v1673_v35  ;;  %v2243_v22 = vsel %vm2242_vm11, %v2241_v42, %v2236_v14  ;;  %v1606_v28 = vmul.f32 %v5773_v12, %v1471_v8 }
 0x277   :  { %v2248_v13 = vrot.slane %v1916_v23, %v5818_v63  ;;  %1766 = vadd.xlane.f32.xlu0 %v1578_v53 }
 0x278   :  { %v2255_v38 = vrot.slane %v1917_v51, %v5824_v47  ;;  %1848 = vadd.xlane.f32.xlu1 %v1619_v30  ;;  %v1675_v48 = vpop.xlane.xlu0 %1674  ;;  %v1599_v51 = vmul.f32 %v5773_v12, %v1464_v34  ;;  %v6967_v34 = vld [vmem:[#allocation69_spill] sm:$0xff] }
 0x279   :  { %v2250_v57 = vsel %vm2249_vm12, %v2248_v13, %v2243_v22  ;;  %v1677_v36 = vpop.xlane.xlu1 %1676  ;;  %v1918_v2 = vadd.f32 %v5706_v40, %v1675_v48  ;;  %v1479_v22 = vmax.f32 %v5449_v27, 0.0  ;;  %v6966_v13 = vld [vmem:[#allocation65_spill] sm:$0xff] }
 0x27a   :  { %v1919_v20 = vadd.f32 %v5706_v40, %v1677_v36  ;;  %v2257_v42 = vsel %vm2256_vm13, %v2255_v38, %v2250_v57  ;;  %v1472_v38 = vmax.f32 %v6966_v13, 0.0 }
 0x27b   :  { %v2262_v14 = vrot.slane %v1918_v2, %v5836_v50  ;;  %1770 = vadd.xlane.f32.xlu0 %v1580_v19  ;;  %v1614_v27 = vmul.f32 %v5773_v12, %v1479_v22 }
 0x27c   :  { %v2269_v35 = vrot.slane %v1919_v20, %v5840_v45  ;;  %1820 = vadd.xlane.f32.xlu1 %v1605_v43  ;;  %v1679_v23 = vpop.xlane.xlu0 %1678  ;;  %v1466_v20 = vmax.f32 %v6967_v34, 0.0  ;;  %v1607_v8 = vmul.f32 %v5773_v12, %v1472_v38 }
 0x27d   :  { %v2264_v25 = vsel %vm2263_vm14, %v2262_v14, %v2257_v42  ;;  %v1681_v53 = vpop.xlane.xlu1 %1680  ;;  %v1920_v16 = vadd.f32 %v5706_v40, %v1679_v23  ;;  %v6968_v14 = vld [vmem:[#allocation67_spill] sm:$0xff] }
 0x27e   :  { %v5857_v30 = vsel %vm2270_vm15, %v2269_v35, %v2264_v25  ;;  %v1921_v1 = vadd.f32 %v5706_v40, %v1681_v53  ;;  %v1473_v35 = vmax.f32 %v6968_v14, 0.0 }
 0x27f   :  { %v2275_v48 = vrot.slane %v1920_v16, %v5710_v33  ;;  %1808 = vadd.xlane.f32.xlu0 %v1599_v51 }
 0x280   :  { %v2279_v57 = vrot.slane %v1921_v1, %v5723_v60  ;;  %1822 = vadd.xlane.f32.xlu1 %v1606_v28  ;;  %v1683_v36 = vpop.xlane.xlu0 %1682  ;;  %v1601_v1 = vmul.f32 %v5773_v12, %v1466_v20  ;;  %v1467_v28 = vmax.f32 %v5481_v54, 0.0 }
 0x281   :  { %v1685_v2 = vpop.xlane.xlu1 %1684  ;;  %v1922_v19 = vadd.f32 %v5706_v40, %v1683_v36 }
 0x282   :  { %v2280_v42 = vsel %vm2172_vm1, %v2279_v57, %v2275_v48  ;;  %v1923_v43 = vadd.f32 %v5706_v40, %v1685_v2  ;;  %v1608_v48 = vmul.f32 %v5773_v12, %v1473_v35  ;;  %v6969_v57 = vld [vmem:[#allocation71_spill] sm:$0xff] }
 0x283   :  { %v2284_v23 = vrot.slane %v1922_v19, %v5720_v52  ;;  %1838 = vadd.xlane.f32.xlu0 %v1614_v27  ;;  %v1474_v36 = vmax.f32 %v6969_v57, 0.0  ;;  %v6971_v57 = vld [vmem:[#allocation73_spill] sm:$0xff] }
 0x284   :  { %v2289_v25 = vrot.slane %v1923_v43, %v5730_v55  ;;  %1824 = vadd.xlane.f32.xlu1 %v1607_v8  ;;  %v1687_v53 = vpop.xlane.xlu0 %1686  ;;  %v1483_v43 = vmax.f32 %v5490_v44, 0.0 }
 0x285   :  { %v2285_v16 = vsel %vm2179_vm2, %v2284_v23, %v2280_v42  ;;  %v1689_v51 = vpop.xlane.xlu1 %1688  ;;  %v1924_v22 = vadd.f32 %v5706_v40, %v1687_v53  ;;  %v1602_v42 = vmul.f32 %v5773_v12, %v1467_v28  ;;  %v1609_v35 = vmul.f32 %v5773_v12, %v1474_v36  ;;  %v6970_v28 = vld [vmem:[#allocation75_spill] sm:$0xff] }
 0x286   :  { %v1925_v13 = vadd.f32 %v5706_v40, %v1689_v51  ;;  %v2290_v38 = vsel %vm2186_vm3, %v2289_v25, %v2285_v16  ;;  %v1475_v23 = vmax.f32 %v5487_v4, 0.0  ;;  %v1476_v36 = vmax.f32 %v6971_v57, 0.0 }
 0x287   :  { %v2294_v2 = vrot.slane %v1924_v22, %v5742_v0  ;;  %1812 = vadd.xlane.f32.xlu0 %v1601_v1  ;;  %v1618_v1 = vmul.f32 %v5773_v12, %v1483_v43  ;;  %v6972_v43 = vld [vmem:[#allocation19_spill] sm:$0xff] }
 0x288   :  { %v2299_v19 = vrot.slane %v1925_v13, %v5736_v58  ;;  %1826 = vadd.xlane.f32.xlu1 %v1608_v48  ;;  %v1691_v27 = vpop.xlane.xlu0 %1690  ;;  %v1469_v13 = vmax.f32 %v6970_v28, 0.0  ;;  %v1610_v48 = vmul.f32 %v5773_v12, %v1475_v23  ;;  %v1611_v23 = vmul.f32 %v5773_v12, %v1476_v36 }
 0x289   :  { %v2295_v34 = vsel %vm2193_vm4, %v2294_v2, %v2290_v38  ;;  %v1693_v20 = vpop.xlane.xlu1 %1692  ;;  %v1926_v54 = vadd.f32 %v5706_v40, %v1691_v27  ;;  %v1496_v36 = vmax.f32 %v5523_v18, 0.0 }
 0x28a   :  { %v1927_v8 = vadd.f32 %v5706_v40, %v1693_v20  ;;  %v2300_v14 = vsel %vm2200_vm5, %v2299_v19, %v2295_v34 }
 0x28b   :  { %v2304_v25 = vrot.slane %v1926_v54, %v5759_v29  ;;  %1814 = vadd.xlane.f32.xlu0 %v1602_v42  ;;  %v1604_v42 = vmul.f32 %v5773_v12, %v1469_v13 }
 0x28c   :  { %v2309_v53 = vrot.slane %v1927_v8, %v5765_v10  ;;  %1828 = vadd.xlane.f32.xlu1 %v1609_v35  ;;  %v1695_v16 = vpop.xlane.xlu0 %1694  ;;  %v1485_v8 = vmax.f32 %v6972_v43, 0.0 }
 0x28d   :  { %v2305_v51 = vsel %vm2207_vm6, %v2304_v25, %v2300_v14  ;;  %v1697_v22 = vpop.xlane.xlu1 %1696  ;;  %v1928_v44 = vadd.f32 %v5706_v40, %v1695_v16  ;;  %v6973_v25 = vld [vmem:[#allocation77_spill] sm:$0xff] }
 0x28e   :  { %v1929_v38 = vadd.f32 %v5706_v40, %v1697_v22  ;;  %v2310_v4 = vsel %vm2214_vm7, %v2309_v53, %v2305_v51  ;;  %v1477_v53 = vmax.f32 %v6973_v25, 0.0  ;;  %v1620_v13 = vmul.f32 %v5773_v12, %v1485_v8 }
 0x28f   :  { %v2314_v2 = vrot.slane %v1928_v44, %v5782_v32  ;;  %1846 = vadd.xlane.f32.xlu0 %v1618_v1  ;;  %v1631_v8 = vmul.f32 %v5773_v12, %v1496_v36 }
 0x290   :  { %v2319_v19 = vrot.slane %v1929_v38, %v5788_v61  ;;  %1830 = vadd.xlane.f32.xlu1 %v1610_v48  ;;  %v1699_v27 = vpop.xlane.xlu0 %1698  ;;  %v1486_v38 = vmax.f32 %v5530_v46, 0.0  ;;  %v1612_v57 = vmul.f32 %v5773_v12, %v1477_v53 }
 0x291   :  { %v2315_v34 = vsel %vm2221_vm8, %v2314_v2, %v2310_v4  ;;  %v1701_v20 = vpop.xlane.xlu1 %1700  ;;  %v1930_v54 = vadd.f32 %v5706_v40, %v1699_v27 }
 0x292   :  { %v1931_v14 = vadd.f32 %v5706_v40, %v1701_v20  ;;  %v2320_v35 = vsel %vm6757_vm9, %v2319_v19, %v2315_v34 }
 0x293   :  { %v2324_v16 = vrot.slane %v1930_v54, %v5800_v41  ;;  %1818 = vadd.xlane.f32.xlu0 %v1604_v42  ;;  %v1621_v54 = vmul.f32 %v5773_v12, %v1486_v38  ;;  %v1487_v42 = vmax.f32 %v5537_v24, 0.0 }
 0x294   :  { %v2329_v51 = vrot.slane %v1931_v14, %v5806_v26  ;;  %1832 = vadd.xlane.f32.xlu1 %v1611_v23  ;;  %v1703_v22 = vpop.xlane.xlu0 %1702  ;;  %v6974_v14 = vld [vmem:[#allocation20_spill] sm:$0xff] }
 0x295   :  { %v2325_v44 = vsel %vm2235_vm10, %v2324_v16, %v2320_v35  ;;  %v1705_v1 = vpop.xlane.xlu1 %1704  ;;  %v1932_v28 = vadd.f32 %v5706_v40, %v1703_v22  ;;  %v1498_v35 = vmax.f32 %v6974_v14, 0.0  ;;  %v6975_v22 = vld [vmem:[#allocation79_spill] sm:$0xff] }
 0x296   :  { %v1933_v4 = vadd.f32 %v5706_v40, %v1705_v1  ;;  %v2330_v48 = vsel %vm2242_vm11, %v2329_v51, %v2325_v44  ;;  %v1622_v51 = vmul.f32 %v5773_v12, %v1487_v42  ;;  %v1488_v44 = vmax.f32 %v6975_v22, 0.0  ;;  %v6980_v22 = vld [vmem:[#allocation26_spill] sm:$0xff] }
 0x297   :  { %v2334_v2 = vrot.slane %v1932_v28, %v5818_v63  ;;  %1850 = vadd.xlane.f32.xlu0 %v1620_v13  ;;  %v1633_v28 = vmul.f32 %v5773_v12, %v1498_v35  ;;  %v6976_v13 = vld [vmem:[#allocation21_spill] sm:$0xff]  ;;  %v1490_v42 = vmax.f32 %v5576_v49, 0.0 }
 0x298   :  { %v2339_v19 = vrot.slane %v1933_v4, %v5824_v47  ;;  %1834 = vadd.xlane.f32.xlu1 %v1612_v57  ;;  %v1707_v27 = vpop.xlane.xlu0 %1706  ;;  %v1493_v38 = vmax.f32 %v6976_v13, 0.0  ;;  %v1623_v36 = vmul.f32 %v5773_v12, %v1488_v44  ;;  %v1492_v44 = vmax.f32 %v6980_v22, 0.0 }
 0x299   :  { %v2335_v34 = vsel %vm2249_vm12, %v2334_v2, %v2330_v48  ;;  %v1709_v20 = vpop.xlane.xlu1 %1708  ;;  %v1934_v46 = vadd.f32 %v5706_v40, %v1707_v27  ;;  %v6978_v2 = vld [vmem:[#allocation23_spill] sm:$0xff]  ;;  %v1625_v35 = vmul.f32 %v5773_v12, %v1490_v42 }
 0x29a   :  { %v1935_v43 = vadd.f32 %v5706_v40, %v1709_v20  ;;  %v2340_v18 = vsel %vm2256_vm13, %v2339_v19, %v2335_v34  ;;  %v1489_v19 = vmax.f32 %v6978_v2, 0.0  ;;  %v1628_v27 = vmul.f32 %v5773_v12, %v1493_v38  ;;  %v6979_v34 = vld [vmem:[#allocation22_spill] sm:$0xff] }
 0x29b   :  { %v2344_v23 = vrot.slane %v1934_v46, %v5836_v50  ;;  %1852 = vadd.xlane.f32.xlu0 %v1621_v54  ;;  %v1494_v20 = vmax.f32 %v6979_v34, 0.0 }
 0x29c   :  { %v2349_v25 = vrot.slane %v1935_v43, %v5840_v45  ;;  %1872 = vadd.xlane.f32.xlu1 %v1631_v8  ;;  %v5933_v53 = vpop.xlane.xlu0 %1710  ;;  %v1624_v54 = vmul.f32 %v5773_v12, %v1489_v19 }
 0x29d   :  { %v2345_v16 = vsel %vm2263_vm14, %v2344_v23, %v2340_v18  ;;  %v5936_v24 = vpop.xlane.xlu1 %1712  ;;  %v1629_v43 = vmul.f32 %v5773_v12, %v1494_v20  ;;  %v1500_v18 = vmax.f32 %v5569_v15, 0.0  ;;  %v1491_v23 = vmax.f32 %v5583_v11, 0.0 }
 0x29e   :  { %v2350_v1 = vsel %vm2270_vm15, %v2349_v25, %v2345_v16  ;;  %v1501_v16 = vmax.f32 %v5580_v59, 0.0  ;;  %v1627_v59 = vmul.f32 %v5773_v12, %v1492_v44  ;;  %v1505_v44 = vmax.f32 %v5626_v56, 0.0 }
 0x29f   :  { %v5945_v4 = vsel %vm6756_vm0, %v2350_v1, %v5857_v30  ;;  %1854 = vadd.xlane.f32.xlu0 %v1622_v51  ;;  %v1635_v25 = vmul.f32 %v5773_v12, %v1500_v18  ;;  %v1626_v15 = vmul.f32 %v5773_v12, %v1491_v23  ;;  %vm2827_vm0 = vcmask 1042434  }
 0x2a0   :  { %6977 = vst [vmem:[#allocation91_spill] sm:$0xff] %v5945_v4  ;;  %1876 = vadd.xlane.f32.xlu1 %v1633_v28  ;;  %v5947_v48 = vpop.xlane.xlu0 %1714  ;;  %v1636_v1 = vmul.f32 %v5773_v12, %v1501_v16  ;;  %v6981_v28 = vld [vmem:[#allocation24_spill] sm:$0xff] }
 0x2a1   :  { %v5949_v57 = vpop.xlane.xlu1 %1716  ;;  %v1502_v13 = vmax.f32 %v6981_v28, 0.0  ;;  %v1478_v28 = vmax.f32 %v5636_v39, 0.0 }
 0x2a3   :  { %1856 = vadd.xlane.f32.xlu0 %v1623_v36  ;;  %v6982_v36 = vld [vmem:[#allocation25_spill] sm:$0xff]  ;;  %v1637_v19 = vmul.f32 %v5773_v12, %v1502_v13  ;;  %v1640_v13 = vmul.f32 %v5773_v12, %v1505_v44  ;;  %v1613_v56 = vmul.f32 %v5773_v12, %v1478_v28 }
 0x2a4   :  { %1866 = vadd.xlane.f32.xlu1 %v1628_v27  ;;  %v5955_v46 = vpop.xlane.xlu0 %1718  ;;  %v1495_v2 = vmax.f32 %v6982_v36, 0.0  ;;  %v6983_v27 = vld [vmem:[#allocation83_spill] sm:$0xff] }
 0x2a5   :  { %v5957_v30 = vpop.xlane.xlu1 %1720  ;;  %v1503_v34 = vmax.f32 %v6983_v27, 0.0  ;;  %v1507_v27 = vmax.f32 %v5639_v37, 0.0 }
 0x2a6   :  { %v1630_v42 = vmul.f32 %v5773_v12, %v1495_v2  ;;  %v1508_v2 = vmax.f32 %v5642_v21, 0.0 }
 0x2a7   :  { %1858 = vadd.xlane.f32.xlu0 %v1624_v54  ;;  %v1638_v18 = vmul.f32 %v5773_v12, %v1503_v34 }
 0x2a8   :  { %1868 = vadd.xlane.f32.xlu1 %v1629_v43  ;;  %v5963_v8 = vpop.xlane.xlu0 %1722  ;;  %v1497_v43 = vmax.f32 %v5622_v62, 0.0 }
 0x2a9   :  { %v5965_v14 = vpop.xlane.xlu1 %1724 }
 0x2aa   :  { %v1632_v16 = vmul.f32 %v5773_v12, %v1497_v43  ;;  %v1642_v43 = vmul.f32 %v5773_v12, %v1507_v27 }
 0x2ab   :  { %1860 = vadd.xlane.f32.xlu0 %v1625_v35  ;;  %v1504_v35 = vmax.f32 %v5615_v9, 0.0 }
 0x2ac   :  { %1880 = vadd.xlane.f32.xlu1 %v1635_v25  ;;  %v5971_v49 = vpop.xlane.xlu0 %1726 }
 0x2ad   :  { %v5973_v51 = vpop.xlane.xlu1 %1728  ;;  %v1639_v22 = vmul.f32 %v5773_v12, %v1504_v35 }
 0x2af   :  { %1862 = vadd.xlane.f32.xlu0 %v1626_v15  ;;  %v1499_v15 = vmax.f32 %v5629_v6, 0.0 }
 0x2b0   :  { %1882 = vadd.xlane.f32.xlu1 %v1636_v1  ;;  %v5979_v11 = vpop.xlane.xlu0 %1730 }
 0x2b1   :  { %v5981_v38 = vpop.xlane.xlu1 %1732  ;;  %v1634_v9 = vmul.f32 %v5773_v12, %v1499_v15 }
 0x2b3   :  { %1864 = vadd.xlane.f32.xlu0 %v1627_v59  ;;  %v1506_v59 = vmax.f32 %v5632_v5, 0.0  ;;  %v1643_v5 = vmul.f32 %v5773_v12, %v1508_v2 }
 0x2b4   :  { %1884 = vadd.xlane.f32.xlu1 %v1637_v19  ;;  %v5987_v20 = vpop.xlane.xlu0 %1734 }
 0x2b5   :  { %v5989_v54 = vpop.xlane.xlu1 %1736  ;;  %v1641_v19 = vmul.f32 %v5773_v12, %v1506_v59 }
 0x2b7   :  { %1870 = vadd.xlane.f32.xlu0 %v1630_v42  ;;  %v1509_v42 = vmax.f32 %v5656_v3, 0.0 }
 0x2b8   :  { %1886 = vadd.xlane.f32.xlu1 %v1638_v18  ;;  %v5995_v23 = vpop.xlane.xlu0 %1738  ;;  %v1510_v18 = vmax.f32 %v5651_v31, 0.0 }
 0x2b9   :  { %v5997_v25 = vpop.xlane.xlu1 %1740  ;;  %v1644_v37 = vmul.f32 %v5773_v12, %v1509_v42 }
 0x2bb   :  { %1874 = vadd.xlane.f32.xlu0 %v1632_v16  ;;  %v1645_v16 = vmul.f32 %v5773_v12, %v1510_v18 }
 0x2bc   :  { %1888 = vadd.xlane.f32.xlu1 %v1639_v22  ;;  %v6003_v62 = vpop.xlane.xlu0 %1774 }
 0x2bd   :  { %v6005_v1 = vpop.xlane.xlu1 %1776 }
 0x2bf   :  { %1878 = vadd.xlane.f32.xlu0 %v1634_v9 }
 0x2c0   :  { %1890 = vadd.xlane.f32.xlu1 %v1640_v13  ;;  %v6011_v6 = vpop.xlane.xlu0 %1778 }
 0x2c1   :  { %v6013_v36 = vpop.xlane.xlu1 %1780 }
 0x2c3   :  { %1836 = vadd.xlane.f32.xlu0 %v1613_v56 }
 0x2c4   :  { %1892 = vadd.xlane.f32.xlu1 %v1641_v19  ;;  %v6019_v39 = vpop.xlane.xlu0 %1782 }
 0x2c5   :  { %v6021_v34 = vpop.xlane.xlu1 %1784 }
 0x2c7   :  { %1896 = vadd.xlane.f32.xlu0 %v1643_v5 }
 0x2c8   :  { %1894 = vadd.xlane.f32.xlu1 %v1642_v43  ;;  %v6027_v21 = vpop.xlane.xlu0 %1786 }
 0x2c9   :  { %v6029_v35 = vpop.xlane.xlu1 %1788 }
 0x2cb   :  { %1898 = vadd.xlane.f32.xlu0 %v1644_v37 }
 0x2cc   :  { %1900 = vadd.xlane.f32.xlu1 %v1645_v16  ;;  %v6033_v15 = vpop.xlane.xlu0 %1790 }
 0x2cd   :  { %v6035_v22 = vpop.xlane.xlu1 %1744 }
 0x2d0   :  { %v6037_v3 = vpop.xlane.xlu0 %1792 }
 0x2d1   :  { %v6039_v44 = vpop.xlane.xlu1 %1748 }
 0x2d4   :  { %v6041_v31 = vpop.xlane.xlu0 %1794 }
 0x2d5   :  { %v6043_v9 = vpop.xlane.xlu1 %1752 }
 0x2d8   :  { %v6045_v28 = vpop.xlane.xlu0 %1796 }
 0x2d9   :  { %6984 = vst [vmem:[#allocation95_spill] sm:$0xff] %v6045_v28  ;;  %v6047_v13 = vpop.xlane.xlu1 %1756 }
 0x2da   :  { %6985 = vst [vmem:[#allocation27_spill] sm:$0xff] %v6047_v13 }
 0x2dc   :  { %v6049_v59 = vpop.xlane.xlu0 %1798 }
 0x2dd   :  { %6986 = vst [vmem:[#allocation28_spill] sm:$0xff] %v6049_v59  ;;  %v6051_v12 = vpop.xlane.xlu1 %1760 }
 0x2de   :  { %6987 = vst [vmem:[#allocation30_spill] sm:$0xff] %v6051_v12  ;;  %v1936_v12 = vadd.f32 %v5706_v40, %v5933_v53  ;;  %v1940_v53 = vadd.f32 %v5706_v40, %v5955_v46 }
 0x2e0   :  { %v6053_v56 = vpop.xlane.xlu0 %1800 }
 0x2e1   :  { %6988 = vst [vmem:[#allocation29_spill] sm:$0xff] %v6053_v56  ;;  %v6055_v2 = vpop.xlane.xlu1 %1764 }
 0x2e2   :  { %6989 = vst [vmem:[#allocation32_spill] sm:$0xff] %v6055_v2  ;;  %v1937_v2 = vadd.f32 %v5706_v40, %v5936_v24 }
 0x2e4   :  { %v6057_v19 = vpop.xlane.xlu0 %1802  ;;  %v2358_v28 = vrot.slane %v1937_v2, %v5723_v60  ;;  %v1941_v2 = vadd.f32 %v5706_v40, %v5957_v30 }
 0x2e5   :  { %6990 = vst [vmem:[#allocation81_spill] sm:$0xff] %v6057_v19  ;;  %v6059_v27 = vpop.xlane.xlu1 %1768 }
 0x2e6   :  { %6991 = vst [vmem:[#allocation31_spill] sm:$0xff] %v6059_v27  ;;  %v2378_v46 = vrot.slane %v1941_v2, %v5736_v58 }
 0x2e8   :  { %v6061_v5 = vpop.xlane.xlu0 %1804 }
 0x2e9   :  { %6992 = vst [vmem:[#allocation34_spill] sm:$0xff] %v6061_v5  ;;  %v6063_v42 = vpop.xlane.xlu1 %1772 }
 0x2ea   :  { %6993 = vst [vmem:[#allocation85_spill] sm:$0xff] %v6063_v42 }
 0x2ec   :  { %v6065_v43 = vpop.xlane.xlu0 %1742 }
 0x2ed   :  { %v6067_v18 = vpop.xlane.xlu1 %1806 }
 0x2f0   :  { %v6069_v37 = vpop.xlane.xlu0 %1746 }
 0x2f1   :  { %v6071_v16 = vpop.xlane.xlu1 %1810 }
 0x2f4   :  { %v6073_v17 = vpop.xlane.xlu0 %1750 }
 0x2f5   :  { %v6075_v7 = vpop.xlane.xlu1 %1840 }
 0x2f6   :  { %6994 = vst [vmem:[#allocation89_spill] sm:$0xff] %v6075_v7  ;;  %v1938_v7 = vadd.f32 %v5706_v40, %v5947_v48 }
 0x2f8   :  { %v6077_v4 = vpop.xlane.xlu0 %1754  ;;  %v2363_v24 = vrot.slane %v1938_v7, %v5720_v52  ;;  %v1942_v7 = vadd.f32 %v5706_v40, %v5963_v8 }
 0x2f9   :  { %v6079_v19 = vpop.xlane.xlu1 %1842 }
 0x2fa   :  { %6995 = vst [vmem:[#allocation36_spill] sm:$0xff] %v6079_v19 }
 0x2fc   :  { %v6081_v27 = vpop.xlane.xlu0 %1758 }
 0x2fd   :  { %6996 = vst [vmem:[#allocation49_spill] sm:$0xff] %v6081_v27  ;;  %v6083_v5 = vpop.xlane.xlu1 %1844 }
 0x2fe   :  { %6997 = vst [vmem:[#allocation93_spill] sm:$0xff] %v6083_v5  ;;  %v2354_v5 = vrot.slane %v1936_v12, %v5710_v33 }
 0x300   :  { %v6085_v42 = vpop.xlane.xlu0 %1762  ;;  %v2359_v48 = vsel %vm2172_vm1, %v2358_v28, %v2354_v5  ;;  %v1943_v28 = vadd.f32 %v5706_v40, %v5965_v14  ;;  %v1945_v14 = vadd.f32 %v5706_v40, %v5973_v51 }
 0x301   :  { %6998 = vst [vmem:[#allocation52_spill] sm:$0xff] %v6085_v42  ;;  %v6087_v56 = vpop.xlane.xlu1 %1816  ;;  %v1939_v42 = vadd.f32 %v5706_v40, %v5949_v57  ;;  %v2364_v27 = vsel %vm2179_vm2, %v2363_v24, %v2359_v48  ;;  %v2373_v57 = vrot.slane %v1940_v53, %v5742_v0  ;;  %v1944_v24 = vadd.f32 %v5706_v40, %v5971_v49 }
 0x302   :  { %v2388_v8 = vrot.slane %v1943_v28, %v5765_v10  ;;  %v1969_v49 = vadd.f32 %v5706_v40, %v6005_v1  ;;  %v2398_v51 = vrot.slane %v1945_v14, %v5788_v61  ;;  %v1972_v14 = vadd.f32 %v5706_v40, %v6019_v39 }
 0x304   :  { %v6093_v59 = vpop.xlane.xlu0 %1766 }
 0x305   :  { %6999 = vst [vmem:[#allocation51_spill] sm:$0xff] %v6093_v59  ;;  %v6097_v19 = vpop.xlane.xlu1 %1848 }
 0x306   :  { %7000 = vst [vmem:[#allocation37_spill] sm:$0xff] %v6097_v19  ;;  %v2368_v19 = vrot.slane %v1939_v42, %v5730_v55  ;;  %v2383_v42 = vrot.slane %v1942_v7, %v5759_v29  ;;  %v1968_v7 = vadd.f32 %v5706_v40, %v6003_v62 }
 0x308   :  { %v6103_v13 = vpop.xlane.xlu0 %1770  ;;  %v2512_v62 = vrot.slane %v1968_v7, %v5710_v33 }
 0x309   :  { %7001 = vst [vmem:[#allocation53_spill] sm:$0xff] %v6103_v13  ;;  %v6108_v59 = vpop.xlane.xlu1 %1820 }
 0x30a   :  { %7002 = vst [vmem:[#allocation33_spill] sm:$0xff] %v6108_v59  ;;  %v2369_v59 = vsel %vm2186_vm3, %v2368_v19, %v2364_v27  ;;  %v2393_v27 = vrot.slane %v1944_v24, %v5782_v32  ;;  %v1947_v24 = vadd.f32 %v5706_v40, %v5981_v38 }
 0x30b   :  { %v2374_v30 = vsel %vm2193_vm4, %v2373_v57, %v2369_v59  ;;  %v1946_v57 = vadd.f32 %v5706_v40, %v5979_v11 }
 0x30c   :  { %v1809_v12 = vpop.xlane.xlu0 %1808  ;;  %v2379_v48 = vsel %vm2200_vm5, %v2378_v46, %v2374_v30  ;;  %v1970_v46 = vadd.f32 %v5706_v40, %v6011_v6  ;;  %v1971_v6 = vadd.f32 %v5706_v40, %v6013_v36  ;;  %v1949_v36 = vadd.f32 %v5706_v40, %v5989_v54 }
 0x30d   :  { %v6118_v13 = vpop.xlane.xlu1 %1822  ;;  %v2384_v19 = vsel %vm2207_vm6, %v2383_v42, %v2379_v48  ;;  %v2403_v1 = vrot.slane %v1946_v57, %v5800_v41  ;;  %v2516_v48 = vrot.slane %v1969_v49, %v5723_v60 }
 0x30e   :  { %v2389_v28 = vsel %vm2214_vm7, %v2388_v8, %v2384_v19  ;;  %v1948_v8 = vadd.f32 %v5706_v40, %v5987_v20  ;;  %v2521_v19 = vrot.slane %v1970_v46, %v5720_v52  ;;  %v2526_v46 = vrot.slane %v1971_v6, %v5730_v55 }
 0x30f   :  { %v2394_v42 = vsel %vm2221_vm8, %v2393_v27, %v2389_v28  ;;  %v2408_v27 = vrot.slane %v1947_v24, %v5806_v26  ;;  %v2517_v20 = vsel %vm2172_vm1, %v2516_v48, %v2512_v62  ;;  %v1973_v24 = vadd.f32 %v5706_v40, %v6021_v34 }
 0x310   :  { %v6124_v5 = vpop.xlane.xlu0 %1838  ;;  %v2399_v57 = vsel %vm6757_vm9, %v2398_v51, %v2394_v42  ;;  %v2413_v28 = vrot.slane %v1948_v8, %v5818_v63  ;;  %v2522_v39 = vsel %vm2179_vm2, %v2521_v19, %v2517_v20  ;;  %v2531_v51 = vrot.slane %v1972_v14, %v5742_v0 }
 0x311   :  { %v6130_v53 = vpop.xlane.xlu1 %1824  ;;  %v2404_v7 = vsel %vm2235_vm10, %v2403_v1, %v2399_v57  ;;  %v1974_v42 = vadd.f32 %v5706_v40, %v6027_v21  ;;  %v1952_v1 = vadd.f32 %v5706_v40, %v6065_v43  ;;  %v1954_v48 = vadd.f32 %v5706_v40, %v6069_v37 }
 0x312   :  { %v2409_v6 = vsel %vm2242_vm11, %v2408_v27, %v2404_v7  ;;  %v2527_v8 = vsel %vm2186_vm3, %v2526_v46, %v2522_v39  ;;  %v1953_v34 = vadd.f32 %v5706_v40, %v6035_v22  ;;  %v1985_v19 = vadd.f32 %v5706_v40, %v1809_v12 }
 0x313   :  { %v2418_v21 = vrot.slane %v1949_v36, %v5824_v47  ;;  %v2414_v14 = vsel %vm2249_vm12, %v2413_v28, %v2409_v6  ;;  %v2536_v43 = vrot.slane %v1973_v24, %v5736_v58  ;;  %v2532_v57 = vsel %vm2193_vm4, %v2531_v51, %v2527_v8 }
 0x314   :  { %v1813_v2 = vpop.xlane.xlu0 %1812  ;;  %v1975_v37 = vadd.f32 %v5706_v40, %v6029_v35  ;;  %v2541_v27 = vrot.slane %v1974_v42, %v5759_v29  ;;  %v1984_v7 = vadd.f32 %v5706_v40, %v6067_v18  ;;  %v2433_v22 = vrot.slane %v1952_v1, %v5710_v33 }
 0x315   :  { %v6138_v59 = vpop.xlane.xlu1 %1826  ;;  %v6208_v12 = vadd.f32 %v5706_v40, %v5997_v25  ;;  %v1950_v36 = vadd.f32 %v5706_v40, %v5995_v23  ;;  %v1955_v46 = vadd.f32 %v5706_v40, %v6039_v44  ;;  %v2442_v35 = vrot.slane %v1954_v48, %v5720_v52 }
 0x316   :  { %v2437_v18 = vrot.slane %v1953_v34, %v5723_v60  ;;  %v1956_v39 = vadd.f32 %v5706_v40, %v6073_v17  ;;  %v2595_v24 = vrot.slane %v1985_v19, %v5723_v60  ;;  %v1987_v25 = vadd.f32 %v5706_v40, %v1813_v2 }
 0x317   :  { %v2419_v51 = vsel %vm2256_vm13, %v2418_v21, %v2414_v14  ;;  %v2537_v23 = vsel %vm2200_vm5, %v2536_v43, %v2532_v57  ;;  %v1986_v44 = vadd.f32 %v5706_v40, %v6071_v16  ;;  %v2546_v1 = vrot.slane %v1975_v37, %v5765_v10 }
 0x318   :  { %v1815_v30 = vpop.xlane.xlu0 %1814  ;;  %v2542_v48 = vsel %vm2207_vm6, %v2541_v27, %v2537_v23  ;;  %v2591_v6 = vrot.slane %v1984_v7, %v5710_v33  ;;  %v2438_v17 = vsel %vm2172_vm1, %v2437_v18, %v2433_v22  ;;  %v1976_v2 = vadd.f32 %v5706_v40, %v6033_v15 }
 0x319   :  { %v6153_v11 = vpop.xlane.xlu1 %1828  ;;  %v1988_v42 = vadd.f32 %v5706_v40, %v1815_v30  ;;  %v2447_v34 = vrot.slane %v1955_v46, %v5730_v55  ;;  %v1977_v16 = vadd.f32 %v5706_v40, %v6037_v3  ;;  %v2443_v30 = vsel %vm2179_vm2, %v2442_v35, %v2438_v17  ;;  %v7005_v17 = vld [vmem:[#allocation95_spill] sm:$0xff] }
 0x31a   :  { %v2452_v21 = vrot.slane %v1956_v39, %v5742_v0  ;;  %v1958_v14 = vadd.f32 %v5706_v40, %v6077_v4  ;;  %v2596_v43 = vsel %vm2172_vm1, %v2595_v24, %v2591_v6  ;;  %v2605_v57 = vrot.slane %v1987_v25, %v5730_v55 }
 0x31b   :  { %v1957_v15 = vadd.f32 %v5706_v40, %v6043_v9  ;;  %v2600_v37 = vrot.slane %v1986_v44, %v5720_v52  ;;  %v2610_v3 = vrot.slane %v1988_v42, %v5742_v0  ;;  %v2428_v7 = vrot.slane %v6208_v12, %v5840_v45  ;;  %v7003_v44 = vld [vmem:[#allocation49_spill] sm:$0xff] }
 0x31c   :  { %v6165_v38 = vpop.xlane.xlu0 %1846  ;;  %v2423_v22 = vrot.slane %v1950_v36, %v5836_v50  ;;  %v2547_v4 = vsel %vm2214_vm7, %v2546_v1, %v2542_v48  ;;  %v1989_v46 = vadd.f32 %v5706_v40, %v6087_v56  ;;  %v2551_v9 = vrot.slane %v1976_v2, %v5782_v32  ;;  %v7004_v48 = vld [vmem:[#allocation27_spill] sm:$0xff] }
 0x31d   :  { %v6169_v49 = vpop.xlane.xlu1 %1830  ;;  %v1978_v18 = vadd.f32 %v5706_v40, %v6041_v31  ;;  %v2448_v39 = vsel %vm2186_vm3, %v2447_v34, %v2443_v30  ;;  %v2556_v12 = vrot.slane %v1977_v16, %v5788_v61  ;;  %v2462_v25 = vrot.slane %v1958_v14, %v5759_v29  ;;  %v7006_v16 = vld [vmem:[#allocation33_spill] sm:$0xff] }
 0x31e   :  { %v2453_v36 = vsel %vm2193_vm4, %v2452_v21, %v2448_v39  ;;  %v2457_v23 = vrot.slane %v1957_v15, %v5736_v58  ;;  %v1960_v42 = vadd.f32 %v5706_v40, %v7003_v44  ;;  %v1959_v6 = vadd.f32 %v5706_v40, %v7004_v48  ;;  %v7010_v48 = vld [vmem:[#allocation32_spill] sm:$0xff] }
 0x31f   :  { %v1979_v2 = vadd.f32 %v5706_v40, %v7005_v17  ;;  %v2615_v34 = vrot.slane %v1989_v46, %v5736_v58  ;;  %v1991_v30 = vadd.f32 %v5706_v40, %v7006_v16  ;;  %v2552_v14 = vsel %vm2221_vm8, %v2551_v9, %v2547_v4  ;;  %v7008_v4 = vld [vmem:[#allocation52_spill] sm:$0xff]  ;;  %v7011_v17 = vld [vmem:[#allocation29_spill] sm:$0xff] }
 0x320   :  { %v1819_v54 = vpop.xlane.xlu0 %1818  ;;  %v2557_v46 = vsel %vm6757_vm9, %v2556_v12, %v2552_v14  ;;  %v1962_v9 = vadd.f32 %v5706_v40, %v7008_v4  ;;  %v2000_v16 = vadd.f32 %v5706_v40, %v6124_v5  ;;  %v7012_v14 = vld [vmem:[#allocation89_spill] sm:$0xff] }
 0x321   :  { %v6187_v62 = vpop.xlane.xlu1 %1832  ;;  %v1990_v27 = vadd.f32 %v5706_v40, %v1819_v54  ;;  %v2601_v54 = vsel %vm2179_vm2, %v2600_v37, %v2596_v43  ;;  %v2561_v43 = vrot.slane %v1978_v18, %v5800_v41  ;;  %v2458_v37 = vsel %vm2200_vm5, %v2457_v23, %v2453_v36 }
 0x322   :  { %v2606_v56 = vsel %vm2186_vm3, %v2605_v57, %v2601_v54  ;;  %v7007_v57 = vld [vmem:[#allocation28_spill] sm:$0xff]  ;;  %v2463_v39 = vsel %vm2207_vm6, %v2462_v25, %v2458_v37  ;;  %v1992_v18 = vadd.f32 %v5706_v40, %v6118_v13  ;;  %v2467_v23 = vrot.slane %v1959_v6, %v5765_v10 }
 0x323   :  { %v2611_v31 = vsel %vm2193_vm4, %v2610_v3, %v2606_v56  ;;  %v2620_v1 = vrot.slane %v1990_v27, %v5759_v29  ;;  %v1980_v15 = vadd.f32 %v5706_v40, %v7007_v57  ;;  %v2424_v27 = vsel %vm2263_vm14, %v2423_v22, %v2419_v51  ;;  %v7009_v22 = vld [vmem:[#allocation30_spill] sm:$0xff] }
 0x324   :  { %v6204_v20 = vpop.xlane.xlu0 %1850  ;;  %v2616_v54 = vsel %vm2200_vm5, %v2615_v34, %v2611_v31  ;;  %v2472_v56 = vrot.slane %v1960_v42, %v5782_v32  ;;  %v2566_v51 = vrot.slane %v1979_v2, %v5806_v26  ;;  %v1961_v12 = vadd.f32 %v5706_v40, %v7009_v22 }
 0x325   :  { %v6215_v28 = vpop.xlane.xlu1 %1834  ;;  %v2621_v36 = vsel %vm2207_vm6, %v2620_v1, %v2616_v54  ;;  %v2625_v25 = vrot.slane %v1991_v30, %v5765_v10  ;;  %v2562_v42 = vsel %vm2235_vm10, %v2561_v43, %v2557_v46  ;;  %v2571_v31 = vrot.slane %v1980_v15, %v5818_v63 }
 0x326   :  { %v1963_v13 = vadd.f32 %v5706_v40, %v7010_v48  ;;  %v1981_v1 = vadd.f32 %v5706_v40, %v7011_v17  ;;  %v2468_v2 = vsel %vm2214_vm7, %v2467_v23, %v2463_v39  ;;  %v1993_v34 = vadd.f32 %v5706_v40, %v6130_v53  ;;  %v7013_v53 = vld [vmem:[#allocation51_spill] sm:$0xff]  ;;  %v7015_v48 = vld [vmem:[#allocation53_spill] sm:$0xff] }
 0x327   :  { %v2626_v30 = vsel %vm2214_vm7, %v2625_v25, %v2621_v36  ;;  %v2001_v43 = vadd.f32 %v5706_v40, %v7012_v14  ;;  %v2473_v57 = vsel %vm2221_vm8, %v2472_v56, %v2468_v2  ;;  %v2482_v15 = vrot.slane %v1962_v9, %v5800_v41 }
 0x328   :  { %v6231_v8 = vpop.xlane.xlu0 %1852  ;;  %v2630_v37 = vrot.slane %v1992_v18, %v5782_v32  ;;  %v2567_v46 = vsel %vm2242_vm11, %v2566_v51, %v2562_v42  ;;  %v2477_v39 = vrot.slane %v1961_v12, %v5788_v61  ;;  %v1964_v54 = vadd.f32 %v5706_v40, %v7013_v53 }
 0x329   :  { %v6239_v19 = vpop.xlane.xlu1 %1872  ;;  %v2429_v4 = vsel %vm2270_vm15, %v2428_v7, %v2424_v27  ;;  %v2572_v36 = vsel %vm2249_vm12, %v2571_v31, %v2567_v46  ;;  %v1994_v56 = vadd.f32 %v5706_v40, %v6138_v59  ;;  %v2576_v23 = vrot.slane %v1981_v1, %v5824_v47  ;;  %v7014_v27 = vld [vmem:[#allocation36_spill] sm:$0xff]  ;;  %v7019_v46 = vld [vmem:[#allocation91_spill] sm:$0xff] }
 0x32a   :  { %v2631_v9 = vsel %vm2221_vm8, %v2630_v37, %v2626_v30  ;;  %v2478_v51 = vsel %vm6757_vm9, %v2477_v39, %v2473_v57  ;;  %v2635_v22 = vrot.slane %v1993_v34, %v5788_v61  ;;  %v2670_v12 = vrot.slane %v2000_v16, %v5710_v33  ;;  %v7017_v30 = vld [vmem:[#allocation81_spill] sm:$0xff] }
 0x32b   :  { %v2487_v25 = vrot.slane %v1963_v13, %v5806_v26  ;;  %v2674_v7 = vrot.slane %v2001_v43, %v5723_v60  ;;  %v2002_v42 = vadd.f32 %v5706_v40, %v7014_v27  ;;  %v2483_v59 = vsel %vm2235_vm10, %v2482_v15, %v2478_v51  ;;  %v7016_v13 = vld [vmem:[#allocation31_spill] sm:$0xff]  ;;  %v7018_v43 = vld [vmem:[#allocation93_spill] sm:$0xff] }
 0x32c   :  { %v6257_v35 = vpop.xlane.xlu0 %1854  ;;  %v2492_v31 = vrot.slane %v1964_v54, %v5818_v63  ;;  %v1966_v17 = vadd.f32 %v5706_v40, %v7015_v48  ;;  %v1995_v1 = vadd.f32 %v5706_v40, %v6153_v11  ;;  %v2636_v2 = vsel %vm6757_vm9, %v2635_v22, %v2631_v9  ;;  %v7020_v27 = vld [vmem:[#allocation85_spill] sm:$0xff] }
 0x32d   :  { %v6264_v24 = vpop.xlane.xlu1 %1876  ;;  %v1965_v16 = vadd.f32 %v5706_v40, %v7016_v13  ;;  %v1982_v14 = vadd.f32 %v5706_v40, %v7017_v30  ;;  %v2003_v57 = vadd.f32 %v5706_v40, %v7018_v43  ;;  %v2640_v15 = vrot.slane %v1994_v56, %v5800_v41 }
 0x32e   :  { %v2828_v11 = vsel %vm2827_vm0, %v2429_v4, %v7019_v46  ;;  %v2577_v39 = vsel %vm2256_vm13, %v2576_v23, %v2572_v36  ;;  %v2675_v53 = vsel %vm2172_vm1, %v2674_v7, %v2670_v12  ;;  %v2004_v54 = vadd.f32 %v5706_v40, %v6165_v38 }
 0x32f   :  { %v2679_v9 = vrot.slane %v2002_v42, %v5720_v52  ;;  %v2488_v51 = vsel %vm2242_vm11, %v2487_v25, %v2483_v59  ;;  %v1996_v22 = vadd.f32 %v5706_v40, %v6169_v49  ;;  %v2641_v56 = vsel %vm2235_vm10, %v2640_v15, %v2636_v2  ;;  %v7021_v2 = vld [vmem:[#allocation37_spill] sm:$0xff] }
 0x330   :  { %v6282_v21 = vpop.xlane.xlu0 %1856  ;;  %vm2829_vm9 = vcmask 1043459   ;;  %v1967_v4 = vadd.f32 %v5706_v40, %v7020_v27  ;;  %v2493_v36 = vsel %vm2249_vm12, %v2492_v31, %v2488_v51  ;;  %v2502_v23 = vrot.slane %v1966_v17, %v5836_v50 }
 0x331   :  { %v6289_v3 = vpop.xlane.xlu1 %1866  ;;  %v2645_v12 = vrot.slane %v1995_v1, %v5806_v26  ;;  %v2497_v7 = vrot.slane %v1965_v16, %v5824_v47  ;;  %v2581_v25 = vrot.slane %v1982_v14, %v5836_v50  ;;  %v2684_v49 = vrot.slane %v2003_v57, %v5730_v55  ;;  %v7022_v57 = vld [vmem:[#allocation34_spill] sm:$0xff] }
 0x332   :  { %v2680_v42 = vsel %vm2179_vm2, %v2679_v9, %v2675_v53  ;;  %v2689_v48 = vrot.slane %v2004_v54, %v5742_v0  ;;  %v1997_v31 = vadd.f32 %v5706_v40, %v6187_v62  ;;  %v2006_v1 = vadd.f32 %v5706_v40, %v6204_v20 }
 0x333   :  { %v2646_v17 = vsel %vm2242_vm11, %v2645_v12, %v2641_v56  ;;  %v2005_v13 = vadd.f32 %v5706_v40, %v7021_v2  ;;  %v2498_v16 = vsel %vm2256_vm13, %v2497_v7, %v2493_v36  ;;  %v2650_v30 = vrot.slane %v1996_v22, %v5818_v63 }
 0x334   :  { %v6306_v44 = vpop.xlane.xlu0 %1858  ;;  %v2007_v14 = vadd.f32 %v5706_v40, %v6231_v8  ;;  %v2507_v43 = vrot.slane %v1967_v4, %v5840_v45  ;;  %v6403_v62 = vadd.f32 %v5706_v40, %v7022_v57  ;;  %v2503_v15 = vsel %vm2263_vm14, %v2502_v23, %v2498_v16 }
 0x335   :  { %v6314_v6 = vpop.xlane.xlu1 %1868  ;;  %v2685_v20 = vsel %vm2186_vm3, %v2684_v49, %v2680_v42  ;;  %v1998_v53 = vadd.f32 %v5706_v40, %v6215_v28  ;;  %v2651_v54 = vsel %vm2249_vm12, %v2650_v30, %v2646_v17  ;;  %v2008_v9 = vadd.f32 %v5706_v40, %v6257_v35 }
 0x336   :  { %v2690_v22 = vsel %vm2193_vm4, %v2689_v48, %v2685_v20  ;;  %v2655_v56 = vrot.slane %v1997_v31, %v5824_v47  ;;  %v2699_v27 = vrot.slane %v2006_v1, %v5759_v29  ;;  %v2017_v4 = vadd.f32 %v5706_v40, %v6239_v19 }
 0x337   :  { %v6419_v36 = vsel %vm2263_vm14, %v2581_v25, %v2577_v39  ;;  %v2694_v28 = vrot.slane %v2005_v13, %v5736_v58  ;;  %v2508_v23 = vsel %vm2270_vm15, %v2507_v43, %v2503_v15  ;;  %v2704_v35 = vrot.slane %v2007_v14, %v5765_v10 }
 0x338   :  { %v6331_v5 = vpop.xlane.xlu0 %1860  ;;  %v2586_v12 = vrot.slane %v6403_v62, %v5840_v45  ;;  %v2656_v7 = vsel %vm2256_vm13, %v2655_v56, %v2651_v54  ;;  %v2019_v49 = vadd.f32 %v5706_v40, %v6264_v24  ;;  %v2660_v39 = vrot.slane %v1998_v53, %v5836_v50 }
 0x339   :  { %v6338_v18 = vpop.xlane.xlu1 %1880  ;;  %v2695_v25 = vsel %vm2200_vm5, %v2694_v28, %v2690_v22  ;;  %v2709_v48 = vrot.slane %v2008_v9, %v5782_v32  ;;  %v2753_v2 = vrot.slane %v2017_v4, %v5723_v60  ;;  %v2009_v13 = vadd.f32 %v5706_v40, %v6282_v21 }
 0x33a   :  { %v2700_v1 = vsel %vm2207_vm6, %v2699_v27, %v2695_v25  ;;  %v6439_v24 = vsel %vm2829_vm9, %v2508_v23, %v2828_v11  ;;  %v2010_v30 = vadd.f32 %v5706_v40, %v6306_v44  ;;  %v2763_v43 = vrot.slane %v2019_v49, %v5730_v55 }
 0x33b   :  { %v2705_v16 = vsel %vm2214_vm7, %v2704_v35, %v2700_v1  ;;  %v2021_v60 = vadd.f32 %v5706_v40, %v6338_v18  ;;  %v2011_v21 = vadd.f32 %v5706_v40, %v6331_v5  ;;  %v2014_v55 = vadd.f32 %v5706_v40, %v6289_v3 }
 0x33c   :  { %v6355_v34 = vpop.xlane.xlu0 %1862  ;;  %v2710_v15 = vsel %vm2221_vm8, %v2709_v48, %v2705_v16  ;;  %v2714_v18 = vrot.slane %v2009_v13, %v5788_v61  ;;  %v2719_v54 = vrot.slane %v2010_v30, %v5800_v41 }
 0x33d   :  { %v6364_v37 = vpop.xlane.xlu1 %1882  ;;  %v2012_v5 = vadd.f32 %v5706_v40, %v6355_v34  ;;  %v2773_v22 = vrot.slane %v2021_v60, %v5736_v58  ;;  %v2724_v3 = vrot.slane %v2011_v21, %v5806_v26 }
 0x33e   :  { %v2022_v20 = vadd.f32 %v5706_v40, %v6364_v37 }
 0x33f   :  { %v2729_v28 = vrot.slane %v2012_v5, %v5818_v63 }
 0x340   :  { %v6382_v38 = vpop.xlane.xlu0 %1864 }
 0x341   :  { %v1885_v59 = vpop.xlane.xlu1 %1884  ;;  %v2013_v37 = vadd.f32 %v5706_v40, %v6382_v38 }
 0x342   :  { %v2023_v53 = vadd.f32 %v5706_v40, %v1885_v59  ;;  %v2778_v59 = vrot.slane %v2022_v20, %v5759_v29  ;;  %v2587_v20 = vsel %vm2270_vm15, %v2586_v12, %v6419_v36 }
 0x343   :  { %v2734_v49 = vrot.slane %v2013_v37, %v5824_v47 }
 0x344   :  { %v1871_v46 = vpop.xlane.xlu0 %1870  ;;  %v2783_v58 = vrot.slane %v2023_v53, %v5765_v10 }
 0x345   :  { %v1887_v8 = vpop.xlane.xlu1 %1886  ;;  %v2016_v51 = vadd.f32 %v5706_v40, %v1871_v46 }
 0x346   :  { %v2024_v9 = vadd.f32 %v5706_v40, %v1887_v8 }
 0x347   :  { %v2749_v42 = vrot.slane %v2016_v51, %v5710_v33  ;;  %v2661_v33 = vsel %vm2263_vm14, %v2660_v39, %v2656_v7 }
 0x348   :  { %v1875_v19 = vpop.xlane.xlu0 %1874  ;;  %v2788_v29 = vrot.slane %v2024_v9, %v5782_v32 }
 0x349   :  { %v1889_v31 = vpop.xlane.xlu1 %1888  ;;  %v2018_v17 = vadd.f32 %v5706_v40, %v1875_v19  ;;  %v2754_v11 = vsel %vm2172_vm1, %v2753_v2, %v2749_v42  ;;  %vm2831_vm1 = vcmask 1044484  }
 0x34a   :  { %v2025_v56 = vadd.f32 %v5706_v40, %v1889_v31 }
 0x34b   :  { %v2758_v14 = vrot.slane %v2018_v17, %v5720_v52 }
 0x34c   :  { %v1879_v57 = vpop.xlane.xlu0 %1878  ;;  %v2793_v39 = vrot.slane %v2025_v56, %v5788_v61 }
 0x34d   :  { %v2759_v44 = vsel %vm2179_vm2, %v2758_v14, %v2754_v11  ;;  %v1891_v46 = vpop.xlane.xlu1 %1890  ;;  %v2020_v52 = vadd.f32 %v5706_v40, %v1879_v57  ;;  %vm2833_vm2 = vcmask 1045509   ;;  %v2739_v14 = vrot.slane %v2014_v55, %v5836_v50 }
 0x34e   :  { %v2764_v34 = vsel %vm2186_vm3, %v2763_v43, %v2759_v44  ;;  %v2026_v4 = vadd.f32 %v5706_v40, %v1891_v46  ;;  %vm7023_vm3 = vcmask 654912   ;;  %v2015_v43 = vadd.f32 %v5706_v40, %v6314_v6 }
 0x34f   :  { %v2768_v51 = vrot.slane %v2020_v52, %v5742_v0  ;;  %v2715_v7 = vsel %vm7023_vm3, %v2714_v18, %v2710_v15  ;;  %v7025_v18 = vld [vmem:[#allocation87_spill] sm:$0xff] }
 0x350   :  { %v1837_v27 = vpop.xlane.xlu0 %1836  ;;  %v2720_v19 = vsel %vm2235_vm10, %v2719_v54, %v2715_v7  ;;  %v2798_v17 = vrot.slane %v2026_v4, %v5800_v41 }
 0x351   :  { %v2769_v38 = vsel %vm2193_vm4, %v2768_v51, %v2764_v34  ;;  %v1893_v8 = vpop.xlane.xlu1 %1892  ;;  %v1999_v0 = vadd.f32 %v5706_v40, %v1837_v27  ;;  %v2725_v31 = vsel %vm2242_vm11, %v2724_v3, %v2720_v19  ;;  %vm7024_vm4 = vmmov %vm7023_vm3  ;;  %v7026_v34 = vld [vmem:[#allocation102_spill] sm:$0xff] }
 0x352   :  { %v2774_v23 = vsel %vm2200_vm5, %v2773_v22, %v2769_v38  ;;  %v2027_v35 = vadd.f32 %v5706_v40, %v1893_v8  ;;  %v2730_v13 = vsel %vm2249_vm12, %v2729_v28, %v2725_v31  ;;  %vm2835_vm5 = vcmask 1046534  }
 0x353   :  { %v2779_v42 = vsel %vm2207_vm6, %v2778_v59, %v2774_v23  ;;  %v2665_v10 = vrot.slane %v1999_v0, %v5840_v45  ;;  %v2735_v41 = vsel %vm2256_vm13, %v2734_v49, %v2730_v13  ;;  %vm2837_vm6 = vcmask 1047559   ;;  %v7027_v59 = vld [vmem:[#allocation99_spill] sm:$0xff] }
 0x354   :  { %v2784_v25 = vsel %vm2214_vm7, %v2783_v58, %v2779_v42  ;;  %v1897_v48 = vpop.xlane.xlu0 %1896  ;;  %v2803_v61 = vrot.slane %v2027_v35, %v5806_v26  ;;  %vm2034_vm7 = vcmp.lt.s32.totalorder %v7025_v18, 8  ;;  %v2920_v4 = vsub.s32 1, %v7027_v59 }
 0x355   :  { %v2789_v1 = vsel %vm2221_vm8, %v2788_v29, %v2784_v25  ;;  %v1895_v2 = vpop.xlane.xlu1 %1894  ;;  %v2029_v32 = vadd.f32 %v5706_v40, %v1897_v48  ;;  %v2666_v11 = vsel %vm2270_vm15, %v2665_v10, %v2661_v33  ;;  %v2740_v33 = vsel %vm2263_vm14, %v2739_v14, %v2735_v41 }
 0x356   :  { %v2794_v16 = vsel %vm7024_vm4, %v2793_v39, %v2789_v1  ;;  %v2028_v30 = vadd.f32 %v5706_v40, %v1895_v2  ;;  %v2987_v8 = vsub.s32 2, %v7027_v59  ;;  %v3054_v28 = vsub.s32 3, %v7027_v59 }
 0x357   :  { %v2799_v60 = vsel %vm2235_vm10, %v2798_v17, %v2794_v16  ;;  %v2813_v15 = vrot.slane %v2029_v32, %v5824_v47  ;;  %v2744_v47 = vrot.slane %v2015_v43, %v5840_v45  ;;  %v3121_v7 = vsub.s32 4, %v7027_v59  ;;  %v4244_v43 = vld [vmem:[#allocation3] sm:$0xff] }
 0x358   :  { %v2804_v21 = vsel %vm2242_vm11, %v2803_v61, %v2799_v60  ;;  %v2808_v57 = vrot.slane %v2028_v30, %v5818_v63  ;;  %v1899_v26 = vpop.xlane.xlu0 %1898  ;;  %v2832_v63 = vsel %vm2831_vm1, %v2587_v20, %v6439_v24  ;;  %v3188_v13 = vsub.s32 5, %v7027_v59  ;;  %v4243_v30 = vld [vmem:[#allocation3 + $0x8] sm:$0xff] }
 0x359   :  { %v1901_v6 = vpop.xlane.xlu1 %1900  ;;  %v2030_v44 = vadd.f32 %v5706_v40, %v1899_v26  ;;  %v2834_v62 = vsel %vm2833_vm2, %v2666_v11, %v2832_v63  ;;  %v3255_v60 = vsub.s32 6, %v7027_v59  ;;  %v4245_v11 = vld [vmem:[#allocation3 + $0x10] sm:$0xff]  ;;  %vm7028_vm8 = vcmask 1041409  }
 0x35a   :  { %v2809_v46 = vsel %vm2249_vm12, %v2808_v57, %v2804_v21  ;;  %v2031_v52 = vadd.f32 %v5706_v40, %v1901_v6  ;;  %v2745_v40 = vsel %vm2270_vm15, %v2744_v47, %v2740_v33  ;;  %v4246_v6 = vld [vmem:[#allocation3 + $0x18] sm:$0xff] }
 0x35b   :  { %v2818_v55 = vrot.slane %v2030_v44, %v5836_v50  ;;  %v2814_v36 = vsel %vm2256_vm13, %v2813_v15, %v2809_v46  ;;  %v2836_v53 = vsel %vm2835_vm5, %v2745_v40, %v2834_v62  ;;  %v3322_v46 = vsub.s32 7, %v7027_v59  ;;  %v4249_v40 = vld [vmem:[#allocation3 + $0x90] sm:$0xff]  ;;  %v4253_v59 = vld [vmem:[#allocation3 + $0xa0] sm:$0xff] }
 0x35c   :  { %v2823_v12 = vrot.slane %v2031_v52, %v5840_v45 }
 0x35d   :  { %v2819_v5 = vsel %vm2263_vm14, %v2818_v55, %v2814_v36  ;;  %v4247_v55 = vld [vmem:[#allocation3 + $0x80] sm:$0xff]  ;;  %v4248_v36 = vld [vmem:[#allocation3 + $0x88] sm:$0xff] }
 0x35e   :  { %v2824_v24 = vsel %vm2270_vm15, %v2823_v12, %v2819_v5 }
 0x35f   :  { %v2838_v50 = vsel %vm2837_vm6, %v2824_v24, %v2836_v53 }
 0x360   :  { %v2840_v54 = vsel %vm2034_vm7, %v2838_v50, -1e+30  ;;  %v4250_v50 = vld [vmem:[#allocation3 + $0x20] sm:$0xff] }
 0x361   :  { %2841 = vmax.xlane.f32.xlu0 %v2840_v54 }
 0x3ee   :  { %v2842_v37 = vpop.xlane.xlu0 %2841 }
 0x3ef   :  { %v2843_v9 = vsub.f32 %v2840_v54, %v2842_v37 }
 0x3f1   :  { %v2844_v51 = vmul.f32 1.442695, %v2843_v9 }
 0x3f3   :  { %4238 = vpow2.f32 %v2844_v51  ;;  %v4251_v51 = vld [vmem:[#allocation3 + $0x98] sm:$0xff] }
 0x3fd   :  { %v4239_v45 = vpop.eup %4238 }
 0x3fe   :  { %2846 = vadd.xlane.f32.xlu1 %v4239_v45 }
 0x48b   :  { %v2847_v22 = vpop.xlane.xlu1 %2846 }
 0x48c   :  { %4240 = vrcp.f32 %v2847_v22 }
 0x496   :  { %v4241_v3 = vpop.eup %4240 }
 0x497   :  { %v6527_v56 = vmul.f32 %v4241_v3, %v4239_v45  ;;  %v4252_v3 = vld [vmem:[#allocation3 + $0x28] sm:$0xff] }
 0x499   :  { %v2854_v27 = vrot.slane %v6527_v56, %v7026_v34  ;;  %2850 = vst [vmem:[#allocation12] sm:$0xff] %v6527_v56  ;;  %v2921_v38 = vrot.slane %v6527_v56, %v2920_v4  ;;  %v2988_v0 = vrot.slane %v6527_v56, %v2987_v8  ;;  %v3055_v58 = vrot.slane %v6527_v56, %v3054_v28 }
 0x49a   :  { %v6540_v42 = vrot.slane %v6527_v56, %v3121_v7  ;;  %v6573_v21 = vrot.slane %v6527_v56, %v3188_v13  ;;  %v6581_v52 = vrot.slane %v6527_v56, %v3255_v60  ;;  %v6586_v53 = vrot.slane %v6527_v56, %v3322_v46 }
 0x49b   :  { %2860 = vbcast.lane.b32.xlu1 %v2854_v27, 264  ;;  %2856 = vbcast.lane.b32.xlu0 %v2854_v27, 256 }
 0x49f   :  { %2864 = vbcast.lane.b32.xlu1 %v2854_v27, 272  ;;  %2872 = vbcast.lane.b32.xlu0 %v2854_v27, 288 }
 0x4a3   :  { %2868 = vbcast.lane.b32.xlu1 %v2854_v27, 280  ;;  %2880 = vbcast.lane.b32.xlu0 %v2854_v27, 304 }
 0x4a7   :  { %2876 = vbcast.lane.b32.xlu1 %v2854_v27, 296  ;;  %2888 = vbcast.lane.b32.xlu0 %v2854_v27, 320 }
 0x4ab   :  { %2884 = vbcast.lane.b32.xlu1 %v2854_v27, 312  ;;  %2896 = vbcast.lane.b32.xlu0 %v2854_v27, 336 }
 0x4af   :  { %2892 = vbcast.lane.b32.xlu1 %v2854_v27, 328  ;;  %2904 = vbcast.lane.b32.xlu0 %v2854_v27, 352 }
 0x4b3   :  { %2900 = vbcast.lane.b32.xlu1 %v2854_v27, 344  ;;  %2912 = vbcast.lane.b32.xlu0 %v2854_v27, 368 }
 0x4b7   :  { %2908 = vbcast.lane.b32.xlu1 %v2854_v27, 360  ;;  %2923 = vbcast.lane.b32.xlu0 %v2921_v38, 256 }
 0x4bb   :  { %2916 = vbcast.lane.b32.xlu1 %v2854_v27, 376  ;;  %2931 = vbcast.lane.b32.xlu0 %v2921_v38, 272 }
 0x4bf   :  { %2927 = vbcast.lane.b32.xlu1 %v2921_v38, 264  ;;  %2939 = vbcast.lane.b32.xlu0 %v2921_v38, 288 }
 0x4c3   :  { %2935 = vbcast.lane.b32.xlu1 %v2921_v38, 280  ;;  %2947 = vbcast.lane.b32.xlu0 %v2921_v38, 304 }
 0x4c7   :  { %2943 = vbcast.lane.b32.xlu1 %v2921_v38, 296  ;;  %2955 = vbcast.lane.b32.xlu0 %v2921_v38, 320 }
 0x4cb   :  { %2951 = vbcast.lane.b32.xlu1 %v2921_v38, 312  ;;  %2963 = vbcast.lane.b32.xlu0 %v2921_v38, 336 }
 0x4cf   :  { %2959 = vbcast.lane.b32.xlu1 %v2921_v38, 328  ;;  %2971 = vbcast.lane.b32.xlu0 %v2921_v38, 352 }
 0x4d3   :  { %2967 = vbcast.lane.b32.xlu1 %v2921_v38, 344  ;;  %2979 = vbcast.lane.b32.xlu0 %v2921_v38, 368 }
 0x4d7   :  { %2975 = vbcast.lane.b32.xlu1 %v2921_v38, 360  ;;  %2990 = vbcast.lane.b32.xlu0 %v2988_v0, 256 }
 0x4db   :  { %2983 = vbcast.lane.b32.xlu1 %v2921_v38, 376  ;;  %2998 = vbcast.lane.b32.xlu0 %v2988_v0, 272 }
 0x4df   :  { %2994 = vbcast.lane.b32.xlu1 %v2988_v0, 264  ;;  %3006 = vbcast.lane.b32.xlu0 %v2988_v0, 288 }
 0x4e3   :  { %3002 = vbcast.lane.b32.xlu1 %v2988_v0, 280  ;;  %3014 = vbcast.lane.b32.xlu0 %v2988_v0, 304 }
 0x4e7   :  { %3010 = vbcast.lane.b32.xlu1 %v2988_v0, 296  ;;  %3022 = vbcast.lane.b32.xlu0 %v2988_v0, 320 }
 0x4eb   :  { %3018 = vbcast.lane.b32.xlu1 %v2988_v0, 312  ;;  %3030 = vbcast.lane.b32.xlu0 %v2988_v0, 336 }
 0x4ef   :  { %3026 = vbcast.lane.b32.xlu1 %v2988_v0, 328  ;;  %3038 = vbcast.lane.b32.xlu0 %v2988_v0, 352 }
 0x4f3   :  { %3034 = vbcast.lane.b32.xlu1 %v2988_v0, 344  ;;  %3046 = vbcast.lane.b32.xlu0 %v2988_v0, 368 }
 0x4f7   :  { %3042 = vbcast.lane.b32.xlu1 %v2988_v0, 360  ;;  %3057 = vbcast.lane.b32.xlu0 %v3055_v58, 256 }
 0x4fb   :  { %3050 = vbcast.lane.b32.xlu1 %v2988_v0, 376  ;;  %3065 = vbcast.lane.b32.xlu0 %v3055_v58, 272  ;;  %v4254_v0 = vld [vmem:[#allocation3 + $0xa8] sm:$0xff] }
 0x4ff   :  { %3061 = vbcast.lane.b32.xlu1 %v3055_v58, 264  ;;  %3073 = vbcast.lane.b32.xlu0 %v3055_v58, 288 }
 0x503   :  { %3069 = vbcast.lane.b32.xlu1 %v3055_v58, 280  ;;  %3081 = vbcast.lane.b32.xlu0 %v3055_v58, 304 }
 0x507   :  { %3077 = vbcast.lane.b32.xlu1 %v3055_v58, 296  ;;  %3089 = vbcast.lane.b32.xlu0 %v3055_v58, 320 }
 0x50b   :  { %3085 = vbcast.lane.b32.xlu1 %v3055_v58, 312  ;;  %3097 = vbcast.lane.b32.xlu0 %v3055_v58, 336 }
 0x50d   :  { %v2861_v23 = vpop.permute.xlu1 %2860  ;;  %v2857_v35 = vpop.permute.xlu0 %2856 }
 0x50e   :  { %v3388_v14 = vmul.f32 %v4243_v30, %v2861_v23  ;;  %v3387_v41 = vmul.f32 %v4244_v43, %v2857_v35  ;;  %v4255_v35 = vld [vmem:[#allocation3 + $0xb0] sm:$0xff]  ;;  %v4258_v43 = vld [vmem:[#allocation3 + $0x38] sm:$0xff] }
 0x50f   :  { %3093 = vbcast.lane.b32.xlu1 %v3055_v58, 328  ;;  %3105 = vbcast.lane.b32.xlu0 %v3055_v58, 352 }
 0x510   :  { %v3515_v20 = vadd.f32 %v3388_v14, %v3387_v41 }
 0x511   :  { %v2865_v49 = vpop.permute.xlu1 %2864  ;;  %v2873_v29 = vpop.permute.xlu0 %2872 }
 0x512   :  { %v3389_v57 = vmul.f32 %v4245_v11, %v2865_v49  ;;  %v3391_v54 = vmul.f32 %v4250_v50, %v2873_v29  ;;  %v4256_v29 = vld [vmem:[#allocation3 + $0x30] sm:$0xff]  ;;  %v4259_v11 = vld [vmem:[#allocation3 + $0xc0] sm:$0xff] }
 0x513   :  { %3101 = vbcast.lane.b32.xlu1 %v3055_v58, 344  ;;  %3113 = vbcast.lane.b32.xlu0 %v3055_v58, 368 }
 0x514   :  { %v3516_v33 = vadd.f32 %v3515_v20, %v3389_v57 }
 0x515   :  { %v2869_v19 = vpop.permute.xlu1 %2868  ;;  %v6542_v39 = vpop.permute.xlu0 %2880 }
 0x516   :  { %v3390_v44 = vmul.f32 %v4246_v6, %v2869_v19  ;;  %v3393_v19 = vmul.f32 %v4256_v29, %v6542_v39 }
 0x517   :  { %3109 = vbcast.lane.b32.xlu1 %v3055_v58, 360  ;;  %3124 = vbcast.lane.b32.xlu0 %v6540_v42, 256 }
 0x518   :  { %v3517_v18 = vadd.f32 %v3516_v33, %v3390_v44  ;;  %v4260_v44 = vld [vmem:[#allocation3 + $0xc8] sm:$0xff] }
 0x519   :  { %v2877_v25 = vpop.permute.xlu1 %2876  ;;  %v6545_v10 = vpop.permute.xlu0 %2888 }
 0x51a   :  { %v3392_v34 = vmul.f32 %v4252_v3, %v2877_v25  ;;  %v3518_v27 = vadd.f32 %v3517_v18, %v3391_v54  ;;  %v4263_v18 = vld [vmem:[#allocation3 + $0xd8] sm:$0xff]  ;;  %v4266_v3 = vld [vmem:[#allocation3 + $0xe8] sm:$0xff] }
 0x51b   :  { %3117 = vbcast.lane.b32.xlu1 %v3055_v58, 376  ;;  %3132 = vbcast.lane.b32.xlu0 %v6540_v42, 272 }
 0x51c   :  { %v3519_v23 = vadd.f32 %v3518_v27, %v3392_v34 }
 0x51d   :  { %v6548_v48 = vpop.permute.xlu1 %2884  ;;  %v6550_v31 = vpop.permute.xlu0 %2896 }
 0x51e   :  { %v3394_v41 = vmul.f32 %v4258_v43, %v6548_v48  ;;  %v3520_v60 = vadd.f32 %v3519_v23, %v3393_v19  ;;  %v4273_v43 = vld [vmem:[#allocation3 + $0x110] sm:$0xff] }
 0x51f   :  { %3128 = vbcast.lane.b32.xlu1 %v6540_v42, 264  ;;  %3140 = vbcast.lane.b32.xlu0 %v6540_v42, 288 }
 0x520   :  { %v3521_v33 = vadd.f32 %v3520_v60, %v3394_v41  ;;  %v4274_v60 = vld [vmem:[#allocation3 + $0x60] sm:$0xff] }
 0x521   :  { %v6554_v17 = vpop.permute.xlu1 %2892  ;;  %v6556_v1 = vpop.permute.xlu0 %2904 }
 0x523   :  { %3136 = vbcast.lane.b32.xlu1 %v6540_v42, 280  ;;  %3148 = vbcast.lane.b32.xlu0 %v6540_v42, 304 }
 0x525   :  { %v6560_v2 = vpop.permute.xlu1 %2900  ;;  %v6562_v32 = vpop.permute.xlu0 %2912 }
 0x527   :  { %3144 = vbcast.lane.b32.xlu1 %v6540_v42, 296  ;;  %3156 = vbcast.lane.b32.xlu0 %v6540_v42, 320 }
 0x529   :  { %v6567_v16 = vpop.permute.xlu1 %2908  ;;  %v2924_v61 = vpop.permute.xlu0 %2923 }
 0x52a   :  { %v3403_v62 = vmul.f32 %v4247_v55, %v2924_v61  ;;  %v4257_v61 = vld [vmem:[#allocation3 + $0xb8] sm:$0xff]  ;;  %v4262_v55 = vld [vmem:[#allocation3 + $0x40] sm:$0xff] }
 0x52b   :  { %3152 = vbcast.lane.b32.xlu1 %v6540_v42, 312  ;;  %3164 = vbcast.lane.b32.xlu0 %v6540_v42, 336 }
 0x52d   :  { %v6575_v15 = vpop.permute.xlu1 %2916  ;;  %v2932_v26 = vpop.permute.xlu0 %2931 }
 0x52e   :  { %v3405_v5 = vmul.f32 %v4249_v40, %v2932_v26 }
 0x52f   :  { %3160 = vbcast.lane.b32.xlu1 %v6540_v42, 328  ;;  %3195 = vbcast.lane.b32.xlu0 %v6573_v21, 264 }
 0x531   :  { %v2928_v63 = vpop.permute.xlu1 %2927  ;;  %v2940_v47 = vpop.permute.xlu0 %2939 }
 0x532   :  { %v3404_v12 = vmul.f32 %v4248_v36, %v2928_v63  ;;  %v3407_v4 = vmul.f32 %v4253_v59, %v2940_v47  ;;  %v4261_v63 = vld [vmem:[#allocation3 + $0xd0] sm:$0xff] }
 0x533   :  { %3191 = vbcast.lane.b32.xlu1 %v6573_v21, 256  ;;  %3262 = vbcast.lane.b32.xlu0 %v6581_v52, 264  ;;  %v4267_v59 = vld [vmem:[#allocation3 + $0xf0] sm:$0xff] }
 0x534   :  { %v3536_v24 = vadd.f32 %v3404_v12, %v3403_v62  ;;  %v3395_v62 = vmul.f32 %v4262_v55, %v6545_v10 }
 0x535   :  { %v2936_v37 = vpop.permute.xlu1 %2935  ;;  %v2948_v9 = vpop.permute.xlu0 %2947 }
 0x536   :  { %v3406_v45 = vmul.f32 %v4251_v51, %v2936_v37  ;;  %v3537_v22 = vadd.f32 %v3536_v24, %v3405_v5  ;;  %v3409_v7 = vmul.f32 %v4255_v35, %v2948_v9  ;;  %v4264_v24 = vld [vmem:[#allocation3 + $0x48] sm:$0xff]  ;;  %v3522_v54 = vadd.f32 %v3521_v33, %v3395_v62  ;;  %v4265_v37 = vld [vmem:[#allocation3 + $0xe0] sm:$0xff]  ;;  %v4270_v35 = vld [vmem:[#allocation3 + $0x58] sm:$0xff] }
 0x537   :  { %3258 = vbcast.lane.b32.xlu1 %v6581_v52, 256  ;;  %3325 = vbcast.lane.b32.xlu0 %v6586_v53, 256  ;;  %v3396_v50 = vmul.f32 %v4264_v24, %v6554_v17  ;;  %v4280_v24 = vld [vmem:[#allocation3 + $0x70] sm:$0xff] }
 0x538   :  { %v3538_v38 = vadd.f32 %v3537_v22, %v3406_v45 }
 0x539   :  { %v2944_v8 = vpop.permute.xlu1 %2943  ;;  %v2956_v56 = vpop.permute.xlu0 %2955  ;;  %v3523_v27 = vadd.f32 %v3522_v54, %v3396_v50  ;;  %v3401_v50 = vmul.f32 %v4280_v24, %v6562_v32  ;;  %v4293_v24 = vld [vmem:[#allocation3 + $0x190] sm:$0xff] }
 0x53a   :  { %v3408_v28 = vmul.f32 %v4254_v0, %v2944_v8  ;;  %v3539_v58 = vadd.f32 %v3538_v38, %v3407_v4  ;;  %v3411_v57 = vmul.f32 %v4259_v11, %v2956_v56  ;;  %v4268_v38 = vld [vmem:[#allocation3 + $0x50] sm:$0xff]  ;;  %v3399_v11 = vmul.f32 %v4274_v60, %v6556_v1 }
 0x53b   :  { %3199 = vbcast.lane.b32.xlu1 %v6573_v21, 272  ;;  %3266 = vbcast.lane.b32.xlu0 %v6581_v52, 272  ;;  %v3397_v8 = vmul.f32 %v4268_v38, %v6550_v31  ;;  %v4272_v31 = vld [vmem:[#allocation3 + $0x108] sm:$0xff] }
 0x53c   :  { %v3540_v49 = vadd.f32 %v3539_v58, %v3408_v28  ;;  %v4269_v28 = vld [vmem:[#allocation3 + $0xf8] sm:$0xff]  ;;  %v4284_v38 = vld [vmem:[#allocation3 + $0x148] sm:$0xff] }
 0x53d   :  { %v2952_v25 = vpop.permute.xlu1 %2951  ;;  %v2964_v13 = vpop.permute.xlu0 %2963 }
 0x53e   :  { %v3410_v30 = vmul.f32 %v4257_v61, %v2952_v25  ;;  %v3541_v14 = vadd.f32 %v3540_v49, %v3409_v7  ;;  %v3413_v48 = vmul.f32 %v4261_v63, %v2964_v13  ;;  %v3398_v7 = vmul.f32 %v4270_v35, %v6560_v2  ;;  %v4271_v13 = vld [vmem:[#allocation3 + $0x100] sm:$0xff] }
 0x53f   :  { %3329 = vbcast.lane.b32.xlu1 %v6586_v53, 264  ;;  %3333 = vbcast.lane.b32.xlu0 %v6586_v53, 272  ;;  %v3524_v49 = vadd.f32 %v3523_v27, %v3397_v8  ;;  %v4277_v63 = vld [vmem:[#allocation3 + $0x120] sm:$0xff] }
 0x540   :  { %v3542_v26 = vadd.f32 %v3541_v14, %v3410_v30 }
 0x541   :  { %v2960_v20 = vpop.permute.xlu1 %2959  ;;  %v2972_v6 = vpop.permute.xlu0 %2971  ;;  %v3525_v14 = vadd.f32 %v3524_v49, %v3398_v7  ;;  %v4286_v7 = vld [vmem:[#allocation3 + $0x158] sm:$0xff] }
 0x542   :  { %v3412_v39 = vmul.f32 %v4260_v44, %v2960_v20  ;;  %v3543_v46 = vadd.f32 %v3542_v26, %v3411_v57  ;;  %v3415_v9 = vmul.f32 %v4265_v37, %v2972_v6  ;;  %v4275_v20 = vld [vmem:[#allocation3 + $0x118] sm:$0xff] }
 0x543   :  { %3203 = vbcast.lane.b32.xlu1 %v6573_v21, 280  ;;  %3207 = vbcast.lane.b32.xlu0 %v6573_v21, 288  ;;  %v3526_v33 = vadd.f32 %v3525_v14, %v3399_v11 }
 0x544   :  { %v3544_v47 = vadd.f32 %v3543_v46, %v3412_v39  ;;  %v4276_v39 = vld [vmem:[#allocation3 + $0x68] sm:$0xff] }
 0x545   :  { %v2968_v36 = vpop.permute.xlu1 %2967  ;;  %v2980_v12 = vpop.permute.xlu0 %2979  ;;  %v3400_v46 = vmul.f32 %v4276_v39, %v6567_v16 }
 0x546   :  { %v3414_v40 = vmul.f32 %v4263_v18, %v2968_v36  ;;  %v3545_v5 = vadd.f32 %v3544_v47, %v3413_v48  ;;  %v3417_v17 = vmul.f32 %v4267_v59, %v2980_v12  ;;  %v4278_v36 = vld [vmem:[#allocation3 + $0x128] sm:$0xff] }
 0x547   :  { %3270 = vbcast.lane.b32.xlu1 %v6581_v52, 280  ;;  %3274 = vbcast.lane.b32.xlu0 %v6581_v52, 288  ;;  %v3527_v18 = vadd.f32 %v3526_v33, %v3400_v46  ;;  %v4290_v46 = vld [vmem:[#allocation3 + $0x178] sm:$0xff] }
 0x548   :  { %v3546_v51 = vadd.f32 %v3545_v5, %v3414_v40  ;;  %v4279_v40 = vld [vmem:[#allocation3 + $0x130] sm:$0xff] }
 0x549   :  { %v2976_v45 = vpop.permute.xlu1 %2975  ;;  %v2991_v22 = vpop.permute.xlu0 %2990 }
 0x54a   :  { %v3416_v10 = vmul.f32 %v4266_v3, %v2976_v45  ;;  %v3547_v34 = vadd.f32 %v3546_v51, %v3415_v9  ;;  %v3419_v61 = vmul.f32 %v4271_v13, %v2991_v22  ;;  %v4281_v9 = vld [vmem:[#allocation3 + $0x138] sm:$0xff]  ;;  %v4287_v13 = vld [vmem:[#allocation3 + $0x160] sm:$0xff] }
 0x54b   :  { %3337 = vbcast.lane.b32.xlu1 %v6586_v53, 280  ;;  %3341 = vbcast.lane.b32.xlu0 %v6586_v53, 288  ;;  %v4282_v22 = vld [vmem:[#allocation3 + $0x78] sm:$0xff] }
 0x54c   :  { %v3548_v4 = vadd.f32 %v3547_v34, %v3416_v10  ;;  %v3402_v3 = vmul.f32 %v4282_v22, %v6575_v15  ;;  %v3528_v10 = vadd.f32 %v3527_v18, %v3401_v50  ;;  %v4283_v34 = vld [vmem:[#allocation3 + $0x140] sm:$0xff]  ;;  %v4292_v18 = vld [vmem:[#allocation3 + $0x188] sm:$0xff]  ;;  %v4294_v22 = vld [vmem:[#allocation3 + $0x198] sm:$0xff] }
 0x54d   :  { %v2984_v56 = vpop.permute.xlu1 %2983  ;;  %v2999_v0 = vpop.permute.xlu0 %2998 }
 0x54e   :  { %v3418_v58 = vmul.f32 %v4269_v28, %v2984_v56  ;;  %v3549_v23 = vadd.f32 %v3548_v4, %v3417_v17  ;;  %v3421_v2 = vmul.f32 %v4273_v43, %v2999_v0  ;;  %v3529_v56 = vadd.f32 %v3528_v10, %v3402_v3  ;;  %v4285_v0 = vld [vmem:[#allocation3 + $0x150] sm:$0xff] }
 0x54f   :  { %3211 = vbcast.lane.b32.xlu1 %v6573_v21, 296  ;;  %3215 = vbcast.lane.b32.xlu0 %v6573_v21, 304 }
 0x550   :  { %v6608_v29 = vadd.f32 %v3549_v23, %v3418_v58 }
 0x551   :  { %v2995_v19 = vpop.permute.xlu1 %2994  ;;  %v3007_v25 = vpop.permute.xlu0 %3006 }
 0x552   :  { %v3420_v30 = vmul.f32 %v4272_v31, %v2995_v19  ;;  %v3423_v48 = vmul.f32 %v4277_v63, %v3007_v25  ;;  %v3551_v58 = vrot.slane %v6608_v29, 4  ;;  %v3530_v25 = vrot.slane %v3529_v56, 4 }
 0x553   :  { %3278 = vbcast.lane.b32.xlu1 %v6581_v52, 296  ;;  %3282 = vbcast.lane.b32.xlu0 %v6581_v52, 304 }
 0x554   :  { %v3557_v41 = vadd.f32 %v3420_v30, %v3419_v61  ;;  %v3552_v30 = vadd.f32 %v3551_v58, %v6608_v29  ;;  %v3531_v11 = vadd.f32 %v3530_v25, %v3529_v56 }
 0x555   :  { %v3003_v57 = vpop.permute.xlu1 %3002  ;;  %v3015_v26 = vpop.permute.xlu0 %3014 }
 0x556   :  { %v3422_v6 = vmul.f32 %v4275_v20, %v3003_v57  ;;  %v3558_v44 = vadd.f32 %v3557_v41, %v3421_v2  ;;  %v3425_v16 = vmul.f32 %v4279_v40, %v3015_v26  ;;  %v4288_v2 = vld [vmem:[#allocation3 + $0x168] sm:$0xff]  ;;  %v4289_v57 = vld [vmem:[#allocation3 + $0x170] sm:$0xff]  ;;  %v3532_v29 = vrot.slane %v3531_v11, 2 }
 0x557   :  { %3345 = vbcast.lane.b32.xlu1 %v6586_v53, 296  ;;  %3349 = vbcast.lane.b32.xlu0 %v6586_v53, 304 }
 0x558   :  { %v3559_v47 = vadd.f32 %v3558_v44, %v3422_v6  ;;  %v3553_v6 = vrot.slane %v3552_v30, 2 }
 0x559   :  { %v3011_v55 = vpop.permute.xlu1 %3010  ;;  %v3023_v62 = vpop.permute.xlu0 %3022 }
 0x55a   :  { %v3424_v1 = vmul.f32 %v4278_v36, %v3011_v55  ;;  %v3560_v12 = vadd.f32 %v3559_v47, %v3423_v48  ;;  %v3427_v27 = vmul.f32 %v4283_v34, %v3023_v62  ;;  %v3554_v47 = vadd.f32 %v3553_v6, %v3552_v30  ;;  %v4291_v36 = vld [vmem:[#allocation3 + $0x180] sm:$0xff]  ;;  %v4301_v6 = vld [vmem:[#allocation3 + $0x1d0] sm:$0xff] }
 0x55b   :  { %3219 = vbcast.lane.b32.xlu1 %v6573_v21, 312  ;;  %3223 = vbcast.lane.b32.xlu0 %v6573_v21, 320 }
 0x55c   :  { %v3561_v5 = vadd.f32 %v3560_v12, %v3424_v1 }
 0x55d   :  { %v3019_v54 = vpop.permute.xlu1 %3018  ;;  %v3031_v37 = vpop.permute.xlu0 %3030 }
 0x55e   :  { %v3426_v51 = vmul.f32 %v4281_v9, %v3019_v54  ;;  %v3562_v45 = vadd.f32 %v3561_v5, %v3425_v16  ;;  %v3429_v15 = vmul.f32 %v4285_v0, %v3031_v37  ;;  %v3533_v16 = vadd.f32 %v3532_v29, %v3531_v11  ;;  %v4296_v0 = vld [vmem:[#allocation3 + $0x1a8] sm:$0xff] }
 0x55f   :  { %3286 = vbcast.lane.b32.xlu1 %v6581_v52, 312  ;;  %3290 = vbcast.lane.b32.xlu0 %v6581_v52, 320  ;;  %v3555_v37 = vrot.slane %v3554_v47, 1 }
 0x560   :  { %v3563_v59 = vadd.f32 %v3562_v45, %v3426_v51  ;;  %v3534_v34 = vrot.slane %v3533_v16, 1 }
 0x561   :  { %v3027_v17 = vpop.permute.xlu1 %3026  ;;  %v3039_v4 = vpop.permute.xlu0 %3038 }
 0x562   :  { %v3428_v32 = vmul.f32 %v4284_v38, %v3027_v17  ;;  %v3564_v8 = vadd.f32 %v3563_v59, %v3427_v27  ;;  %v3431_v61 = vmul.f32 %v4287_v13, %v3039_v4  ;;  %v4295_v59 = vld [vmem:[#allocation3 + $0x1a0] sm:$0xff]  ;;  %v3556_v38 = vadd.f32 %v3555_v37, %v3554_v47  ;;  %v4306_v37 = vld [vmem:[#allocation3 + $0x1f8] sm:$0xff] }
 0x563   :  { %3353 = vbcast.lane.b32.xlu1 %v6586_v53, 312  ;;  %3357 = vbcast.lane.b32.xlu0 %v6586_v53, 320  ;;  %v3535_v58 = vadd.f32 %v3534_v34, %v3533_v16  ;;  %v4303_v47 = vld [vmem:[#allocation3 + $0x1e0] sm:$0xff]  ;;  %v4305_v16 = vld [vmem:[#allocation3 + $0x1f0] sm:$0xff] }
 0x564   :  { %v3565_v28 = vadd.f32 %v3564_v8, %v3428_v32 }
 0x565   :  { %v3035_v23 = vpop.permute.xlu1 %3034  ;;  %v3047_v35 = vpop.permute.xlu0 %3046 }
 0x566   :  { %v3430_v49 = vmul.f32 %v4286_v7, %v3035_v23  ;;  %v3566_v19 = vadd.f32 %v3565_v28, %v3429_v15  ;;  %v3433_v26 = vmul.f32 %v4289_v57, %v3047_v35  ;;  %v4297_v35 = vld [vmem:[#allocation3 + $0x1b0] sm:$0xff]  ;;  %v4300_v57 = vld [vmem:[#allocation3 + $0x1c8] sm:$0xff] }
 0x567   :  { %3227 = vbcast.lane.b32.xlu1 %v6573_v21, 328  ;;  %3231 = vbcast.lane.b32.xlu0 %v6573_v21, 336 }
 0x568   :  { %v3567_v31 = vadd.f32 %v3566_v19, %v3430_v49  ;;  %v3691_v19 = vsel %vm7028_vm8, %v3556_v38, %v3535_v58 }
 0x569   :  { %v3043_v14 = vpop.permute.xlu1 %3042  ;;  %v3058_v43 = vpop.permute.xlu0 %3057 }
 0x56a   :  { %v3432_v41 = vmul.f32 %v4288_v2, %v3043_v14  ;;  %v3568_v60 = vadd.f32 %v3567_v31, %v3431_v61  ;;  %v3435_v1 = vmul.f32 %v4291_v36, %v3058_v43  ;;  %v4298_v31 = vld [vmem:[#allocation3 + $0x1b8] sm:$0xff]  ;;  %v4299_v43 = vld [vmem:[#allocation3 + $0x1c0] sm:$0xff] }
 0x56b   :  { %3294 = vbcast.lane.b32.xlu1 %v6581_v52, 328  ;;  %3168 = vbcast.lane.b32.xlu0 %v6540_v42, 344 }
 0x56c   :  { %v3569_v20 = vadd.f32 %v3568_v60, %v3432_v41 }
 0x56d   :  { %v3051_v44 = vpop.permute.xlu1 %3050  ;;  %v3066_v39 = vpop.permute.xlu0 %3065 }
 0x56e   :  { %v3434_v33 = vmul.f32 %v4290_v46, %v3051_v44  ;;  %v3570_v63 = vadd.f32 %v3569_v20, %v3433_v26  ;;  %v3437_v50 = vmul.f32 %v4293_v24, %v3066_v39 }
 0x56f   :  { %3361 = vbcast.lane.b32.xlu1 %v6586_v53, 328  ;;  %3235 = vbcast.lane.b32.xlu0 %v6573_v21, 344 }
 0x570   :  { %v3571_v48 = vadd.f32 %v3570_v63, %v3434_v33  ;;  %v4302_v63 = vld [vmem:[#allocation3 + $0x1d8] sm:$0xff] }
 0x571   :  { %v3062_v55 = vpop.permute.xlu1 %3061  ;;  %v3074_v62 = vpop.permute.xlu0 %3073 }
 0x572   :  { %v3572_v12 = vrot.slane %v3571_v48, 4  ;;  %v3436_v40 = vmul.f32 %v4292_v18, %v3062_v55  ;;  %v3439_v17 = vmul.f32 %v4295_v59, %v3074_v62  ;;  %v4308_v59 = vld [vmem:[#allocation3 + $0x208] sm:$0xff] }
 0x573   :  { %3298 = vbcast.lane.b32.xlu1 %v6581_v52, 336  ;;  %3172 = vbcast.lane.b32.xlu0 %v6540_v42, 352 }
 0x574   :  { %v3573_v5 = vadd.f32 %v3572_v12, %v3571_v48  ;;  %v3578_v54 = vadd.f32 %v3436_v40, %v3435_v1  ;;  %v4304_v12 = vld [vmem:[#allocation3 + $0x1e8] sm:$0xff] }
 0x575   :  { %v3070_v9 = vpop.permute.xlu1 %3069  ;;  %v3082_v51 = vpop.permute.xlu0 %3081 }
 0x576   :  { %v3574_v45 = vrot.slane %v3573_v5, 2  ;;  %v3438_v3 = vmul.f32 %v4294_v22, %v3070_v9  ;;  %v3579_v10 = vadd.f32 %v3578_v54, %v3437_v50  ;;  %v3441_v7 = vmul.f32 %v4297_v35, %v3082_v51 }
 0x577   :  { %3365 = vbcast.lane.b32.xlu1 %v6586_v53, 336  ;;  %3239 = vbcast.lane.b32.xlu0 %v6573_v21, 352 }
 0x578   :  { %v3575_v27 = vadd.f32 %v3574_v45, %v3573_v5  ;;  %v3580_v4 = vadd.f32 %v3579_v10, %v3438_v3  ;;  %v4307_v10 = vld [vmem:[#allocation3 + $0x200] sm:$0xff] }
 0x579   :  { %v3078_v32 = vpop.permute.xlu1 %3077  ;;  %v3090_v8 = vpop.permute.xlu0 %3089 }
 0x57a   :  { %v3576_v56 = vrot.slane %v3575_v27, 1  ;;  %v3440_v15 = vmul.f32 %v4296_v0, %v3078_v32  ;;  %v3581_v28 = vadd.f32 %v3580_v4, %v3439_v17  ;;  %v3443_v2 = vmul.f32 %v4299_v43, %v3090_v8  ;;  %v4309_v4 = vld [vmem:[#allocation3 + $0x210] sm:$0xff] }
 0x57b   :  { %3302 = vbcast.lane.b32.xlu1 %v6581_v52, 344  ;;  %3176 = vbcast.lane.b32.xlu0 %v6540_v42, 360 }
 0x57c   :  { %v3577_v23 = vadd.f32 %v3576_v56, %v3575_v27  ;;  %v3582_v49 = vadd.f32 %v3581_v28, %v3440_v15 }
 0x57d   :  { %v3086_v25 = vpop.permute.xlu1 %3085  ;;  %v3098_v13 = vpop.permute.xlu0 %3097 }
 0x57e   :  { %v6640_v61 = vsel %vm2827_vm0, %v3577_v23, %v3691_v19  ;;  %v3442_v30 = vmul.f32 %v4298_v31, %v3086_v25  ;;  %v3583_v14 = vadd.f32 %v3582_v49, %v3441_v7  ;;  %v3445_v44 = vmul.f32 %v4301_v6, %v3098_v13  ;;  %v4311_v23 = vld [vmem:[#allocation3 + $0x220] sm:$0xff] }
 0x57f   :  { %3369 = vbcast.lane.b32.xlu1 %v6586_v53, 344  ;;  %3243 = vbcast.lane.b32.xlu0 %v6573_v21, 360  ;;  %v4315_v6 = vld [vmem:[#allocation3 + $0x240] sm:$0xff] }
 0x580   :  { %v3584_v41 = vadd.f32 %v3583_v14, %v3442_v30  ;;  %v4313_v14 = vld [vmem:[#allocation3 + $0x230] sm:$0xff] }
 0x581   :  { %v3094_v60 = vpop.permute.xlu1 %3093  ;;  %v3106_v11 = vpop.permute.xlu0 %3105 }
 0x582   :  { %v3444_v26 = vmul.f32 %v4300_v57, %v3094_v60  ;;  %v3585_v20 = vadd.f32 %v3584_v41, %v3443_v2  ;;  %v3447_v55 = vmul.f32 %v4303_v47, %v3106_v11  ;;  %v4314_v11 = vld [vmem:[#allocation3 + $0x238] sm:$0xff] }
 0x583   :  { %3306 = vbcast.lane.b32.xlu1 %v6581_v52, 352  ;;  %3180 = vbcast.lane.b32.xlu0 %v6540_v42, 368 }
 0x584   :  { %v3586_v39 = vadd.f32 %v3585_v20, %v3444_v26 }
 0x585   :  { %v3102_v46 = vpop.permute.xlu1 %3101  ;;  %v3114_v33 = vpop.permute.xlu0 %3113 }
 0x586   :  { %v3446_v29 = vmul.f32 %v4302_v63, %v3102_v46  ;;  %v3587_v48 = vadd.f32 %v3586_v39, %v3445_v44  ;;  %v3449_v5 = vmul.f32 %v4305_v16, %v3114_v33 }
 0x587   :  { %3373 = vbcast.lane.b32.xlu1 %v6586_v53, 352  ;;  %3247 = vbcast.lane.b32.xlu0 %v6573_v21, 368 }
 0x588   :  { %v3588_v62 = vadd.f32 %v3587_v48, %v3446_v29 }
 0x589   :  { %v3110_v36 = vpop.permute.xlu1 %3109  ;;  %v3125_v1 = vpop.permute.xlu0 %3124 }
 0x58a   :  { %v3448_v18 = vmul.f32 %v4304_v12, %v3110_v36  ;;  %v3589_v40 = vadd.f32 %v3588_v62, %v3447_v55  ;;  %v3451_v34 = vmul.f32 %v4307_v10, %v3125_v1 }
 0x58b   :  { %3310 = vbcast.lane.b32.xlu1 %v6581_v52, 360  ;;  %3184 = vbcast.lane.b32.xlu0 %v6540_v42, 376 }
 0x58c   :  { %v3590_v24 = vadd.f32 %v3589_v40, %v3448_v18 }
 0x58d   :  { %v3118_v50 = vpop.permute.xlu1 %3117  ;;  %v3133_v54 = vpop.permute.xlu0 %3132 }
 0x58e   :  { %v3450_v9 = vmul.f32 %v4306_v37, %v3118_v50  ;;  %v3591_v51 = vadd.f32 %v3590_v24, %v3449_v5  ;;  %v3453_v38 = vmul.f32 %v4309_v4, %v3133_v54 }
 0x58f   :  { %3377 = vbcast.lane.b32.xlu1 %v6586_v53, 360  ;;  %3251 = vbcast.lane.b32.xlu0 %v6573_v21, 376  ;;  %v4310_v21 = vld [vmem:[#allocation3 + $0x218] sm:$0xff] }
 0x590   :  { %v3592_v45 = vadd.f32 %v3591_v51, %v3450_v9 }
 0x591   :  { %v3129_v22 = vpop.permute.xlu1 %3128  ;;  %v3141_v3 = vpop.permute.xlu0 %3140 }
 0x592   :  { %v3593_v27 = vrot.slane %v3592_v45, 4  ;;  %v3452_v42 = vmul.f32 %v4308_v59, %v3129_v22  ;;  %v3455_v35 = vmul.f32 %v4311_v23, %v3141_v3 }
 0x593   :  { %3314 = vbcast.lane.b32.xlu1 %v6581_v52, 368  ;;  %3318 = vbcast.lane.b32.xlu0 %v6581_v52, 376  ;;  %v4312_v52 = vld [vmem:[#allocation3 + $0x228] sm:$0xff] }
 0x594   :  { %v3594_v17 = vadd.f32 %v3593_v27, %v3592_v45  ;;  %v3599_v32 = vadd.f32 %v3452_v42, %v3451_v34 }
 0x595   :  { %v3137_v8 = vpop.permute.xlu1 %3136  ;;  %v3149_v56 = vpop.permute.xlu0 %3148 }
 0x596   :  { %v3595_v0 = vrot.slane %v3594_v17, 2  ;;  %v3454_v15 = vmul.f32 %v4310_v21, %v3137_v8  ;;  %v3600_v28 = vadd.f32 %v3599_v32, %v3453_v38  ;;  %v3457_v43 = vmul.f32 %v4313_v14, %v3149_v56 }
 0x597   :  { %3381 = vbcast.lane.b32.xlu1 %v6586_v53, 368 }
 0x598   :  { %v3596_v58 = vadd.f32 %v3595_v0, %v3594_v17  ;;  %v3601_v7 = vadd.f32 %v3600_v28, %v3454_v15 }
 0x599   :  { %v3145_v49 = vpop.permute.xlu1 %3144  ;;  %v3157_v19 = vpop.permute.xlu0 %3156 }
 0x59a   :  { %v3597_v25 = vrot.slane %v3596_v58, 1  ;;  %v3456_v13 = vmul.f32 %v4312_v52, %v3145_v49  ;;  %v3602_v31 = vadd.f32 %v3601_v7, %v3455_v35  ;;  %v3459_v44 = vmul.f32 %v4315_v6, %v3157_v19 }
 0x59b   :  { %3385 = vbcast.lane.b32.xlu1 %v6586_v53, 376  ;;  %v4316_v53 = vld [vmem:[#allocation3 + $0x248] sm:$0xff] }
 0x59c   :  { %v3598_v30 = vadd.f32 %v3597_v25, %v3596_v58  ;;  %v3603_v2 = vadd.f32 %v3602_v31, %v3456_v13 }
 0x59d   :  { %v3153_v41 = vpop.permute.xlu1 %3152  ;;  %v3165_v60 = vpop.permute.xlu0 %3164 }
 0x59e   :  { %v3458_v57 = vmul.f32 %v4314_v11, %v3153_v41  ;;  %v3604_v26 = vadd.f32 %v3603_v2, %v3457_v43  ;;  %v6658_v20 = vsel %vm2829_vm9, %v3598_v30, %v6640_v61 }
 0x5a0   :  { %v3605_v39 = vadd.f32 %v3604_v26, %v3458_v57 }
 0x5a1   :  { %v3161_v46 = vpop.permute.xlu1 %3160  ;;  %v3196_v33 = vpop.permute.xlu0 %3195 }
 0x5a2   :  { %v3460_v63 = vmul.f32 %v4316_v53, %v3161_v46  ;;  %v3606_v29 = vadd.f32 %v3605_v39, %v3459_v44 }
 0x5a3   :  { %4470 = shalt.err (!%p4467_p8)
}
 0x5a4   :  { %s4471_s24 = scalar_lea.hbm %s6749_s9, 128 }
 0x5a5   :  { %p4472_p9 = scmp.ne.s32.totalorder %s6749_s9, %s4471_s24  ;;  %p4475_p10 = scmp.lt.u32.totalorder %s4471_s24, %s6749_s9 }
 0x5a7   :  { %p4477_p11 = pnand %p4475_p10, %p4472_p9 }
 0x5a9   :  { %4480 = shalt.err (!%p4477_p11)
}
 0x5aa   :  { %3719 = dma.vmem_to_hbm [thread:$0]  %s3717_s20, 128, %s6749_s9, [#allocation13]   ;;  %v4317_v61 = vld [vmem:[#allocation3 + $0x250] sm:$0xff]  ;;  %v3607_v47 = vadd.f32 %v3606_v29, %v3460_v63  ;;  %v3192_v55 = vpop.permute.xlu1 %3191  ;;  %v3263_v62 = vpop.permute.xlu0 %3262  ;;  %v4318_v36 = vld [vmem:[#allocation3 + $0x288] sm:$0xff]  ;;  %v4319_v12 = vld [vmem:[#allocation3 + $0x280] sm:$0xff] }
 0x5ab   :  { %v3461_v48 = vmul.f32 %v4317_v61, %v3165_v60  ;;  %v3468_v1 = vmul.f32 %v4318_v36, %v3196_v33  ;;  %v3467_v18 = vmul.f32 %v4319_v12, %v3192_v55  ;;  %v4320_v50 = vld [vmem:[#allocation3 + $0x308] sm:$0xff]  ;;  %v4321_v37 = vld [vmem:[#allocation3 + $0x300] sm:$0xff]  ;;  %v4322_v3 = vld [vmem:[#allocation3 + $0x290] sm:$0xff]  ;;  %s4524_s9 = smov [#allocation11]  }
 0x5ac   :  { %v3484_v54 = vmul.f32 %v4320_v50, %v3263_v62  ;;  %v4323_v42 = vld [vmem:[#allocation3 + $0x380] sm:$0xff]  ;;  %v4324_v4 = vld [vmem:[#allocation3 + $0x388] sm:$0xff]  ;;  %v4325_v11 = vld [vmem:[#allocation3 + $0x298] sm:$0xff]  ;;  %s3706_s29 = sshll.u32 %s4524_s9, 4  ;;  %s3707_s29 = int_to_ptr.vmem [resolvable:$true] %s3706_s29 }
 0x5ad   :  { %v6672_v40 = vadd.f32 %v3607_v47, %v3461_v48  ;;  %v3620_v16 = vadd.f32 %v3468_v1, %v3467_v18  ;;  %v4326_v39 = vld [vmem:[#allocation3 + $0x310] sm:$0xff]  ;;  %v4327_v63 = vld [vmem:[#allocation3 + $0x2a0] sm:$0xff]  ;;  %v4328_v61 = vld [vmem:[#allocation3 + $0x2a8] sm:$0xff]  ;;  %s4481_s30 = scalar_lea.vmem %s3707_s29, 128  ;;  %p4486_p13 = scmp.lt.s32.totalorder %s3707_s29, %s3707_s29 }
 0x5ae   :  { %v3259_v5 = vpop.permute.xlu1 %3258  ;;  %v3326_v24 = vpop.permute.xlu0 %3325  ;;  %v4329_v47 = vld [vmem:[#allocation3 + $0x318] sm:$0xff]  ;;  %p4482_p12 = scmp.ne.s32.totalorder %s3707_s29, %s4481_s30  ;;  %p4487_p0 = scmp.lt.s32.totalorder %s4481_s30, %s4481_s30 }
 0x5af   :  { %v3483_v9 = vmul.f32 %v4321_v37, %v3259_v5  ;;  %v3499_v17 = vmul.f32 %v4323_v42, %v3326_v24  ;;  %v4330_v5 = vld [vmem:[#allocation3 + $0x2b0] sm:$0xff]  ;;  %v4331_v50 = vld [vmem:[#allocation3 + $0x2b8] sm:$0xff] }
 0x5b0   :  { %v4332_v37 = vld [vmem:[#allocation3 + $0x390] sm:$0xff]  ;;  %p4488_p1 = por %p4487_p0, %p4486_p13 }
 0x5b1   :  { %v3641_v51 = vadd.f32 %v3484_v54, %v3483_v9 }
 0x5b2   :  { %v3200_v45 = vpop.permute.xlu1 %3199  ;;  %v3267_v22 = vpop.permute.xlu0 %3266  ;;  %p4489_p2 = pnand %p4488_p1, %p4482_p12 }
 0x5b3   :  { %v3469_v10 = vmul.f32 %v4322_v3, %v3200_v45  ;;  %v3485_v46 = vmul.f32 %v4326_v39, %v3267_v22  ;;  %v4333_v45 = vld [vmem:[#allocation3 + $0x320] sm:$0xff]  ;;  %v4334_v3 = vld [vmem:[#allocation3 + $0x398] sm:$0xff]  ;;  %v4340_v39 = vld [vmem:[#allocation3 + $0x3a8] sm:$0xff] }
 0x5b5   :  { %v3621_v34 = vadd.f32 %v3620_v16, %v3469_v10  ;;  %v3642_v36 = vadd.f32 %v3641_v51, %v3485_v46  ;;  %v4341_v46 = vld [vmem:[#allocation3 + $0x338] sm:$0xff] }
 0x5b6   :  { %v3330_v27 = vpop.permute.xlu1 %3329  ;;  %v3334_v59 = vpop.permute.xlu0 %3333 }
 0x5b7   :  { %v3500_v38 = vmul.f32 %v4324_v4, %v3330_v27  ;;  %v3501_v9 = vmul.f32 %v4332_v37, %v3334_v59 }
 0x5b9   :  { %v3662_v32 = vadd.f32 %v3500_v38, %v3499_v17 }
 0x5ba   :  { %v3204_v8 = vpop.permute.xlu1 %3203  ;;  %v3208_v56 = vpop.permute.xlu0 %3207 }
 0x5bb   :  { %v3470_v57 = vmul.f32 %v4325_v11, %v3204_v8  ;;  %v3471_v29 = vmul.f32 %v4327_v63, %v3208_v56  ;;  %v3663_v4 = vadd.f32 %v3662_v32, %v3501_v9  ;;  %v4337_v11 = vld [vmem:[#allocation3 + $0x2c8] sm:$0xff]  ;;  %v4348_v9 = vld [vmem:[#allocation3 + $0x340] sm:$0xff] }
 0x5bd   :  { %v3622_v44 = vadd.f32 %v3621_v34, %v3470_v57  ;;  %v4335_v34 = vld [vmem:[#allocation3 + $0x328] sm:$0xff]  ;;  %v4338_v57 = vld [vmem:[#allocation3 + $0x3a0] sm:$0xff] }
 0x5be   :  { %v3271_v0 = vpop.permute.xlu1 %3270  ;;  %v3275_v21 = vpop.permute.xlu0 %3274 }
 0x5bf   :  { %v3486_v55 = vmul.f32 %v4329_v47, %v3271_v0  ;;  %v3623_v62 = vadd.f32 %v3622_v44, %v3471_v29  ;;  %v3487_v22 = vmul.f32 %v4333_v45, %v3275_v21 }
 0x5c1   :  { %v3643_v16 = vadd.f32 %v3642_v36, %v3486_v55 }
 0x5c2   :  { %v3338_v15 = vpop.permute.xlu1 %3337  ;;  %v6674_v28 = vpop.permute.xlu0 %3341 }
 0x5c3   :  { %v3502_v10 = vmul.f32 %v4334_v3, %v3338_v15  ;;  %v3644_v38 = vadd.f32 %v3643_v16, %v3487_v22  ;;  %v3503_v15 = vmul.f32 %v4338_v57, %v6674_v28  ;;  %v4349_v22 = vld [vmem:[#allocation3 + $0x3b8] sm:$0xff]  ;;  %v4350_v3 = vld [vmem:[#allocation3 + $0x348] sm:$0xff] }
 0x5c5   :  { %v3664_v56 = vadd.f32 %v3663_v4, %v3502_v10 }
 0x5c6   :  { %v3212_v58 = vpop.permute.xlu1 %3211  ;;  %v3216_v23 = vpop.permute.xlu0 %3215 }
 0x5c7   :  { %v3472_v48 = vmul.f32 %v4328_v61, %v3212_v58  ;;  %v3473_v24 = vmul.f32 %v4330_v5, %v3216_v23  ;;  %v4342_v61 = vld [vmem:[#allocation3 + $0x258] sm:$0xff]  ;;  %v3665_v47 = vadd.f32 %v3664_v56, %v3503_v15  ;;  %v4344_v5 = vld [vmem:[#allocation3 + $0x2d0] sm:$0xff] }
 0x5c9   :  { %v3624_v18 = vadd.f32 %v3623_v62, %v3472_v48 }
 0x5ca   :  { %v3279_v35 = vpop.permute.xlu1 %3278  ;;  %v6676_v7 = vpop.permute.xlu0 %3282 }
 0x5cb   :  { %v3488_v27 = vmul.f32 %v4335_v34, %v3279_v35  ;;  %v3625_v17 = vadd.f32 %v3624_v18, %v3473_v24  ;;  %v4339_v35 = vld [vmem:[#allocation3 + $0x330] sm:$0xff] }
 0x5cc   :  { %v3489_v44 = vmul.f32 %v4339_v35, %v6676_v7 }
 0x5cd   :  { %v3645_v0 = vadd.f32 %v3644_v38, %v3488_v27 }
 0x5ce   :  { %v6678_v49 = vpop.permute.xlu1 %3345  ;;  %v6680_v19 = vpop.permute.xlu0 %3349 }
 0x5cf   :  { %v3504_v32 = vmul.f32 %v4340_v39, %v6678_v49  ;;  %v3646_v55 = vadd.f32 %v3645_v0, %v3489_v44  ;;  %v4345_v49 = vld [vmem:[#allocation3 + $0x2d8] sm:$0xff]  ;;  %v4356_v44 = vld [vmem:[#allocation3 + $0x2f0] sm:$0xff] }
 0x5d1   :  { %v3666_v16 = vadd.f32 %v3665_v47, %v3504_v32  ;;  %v4357_v32 = vld [vmem:[#allocation3 + $0x278] sm:$0xff]  ;;  %v4360_v47 = vld [vmem:[#allocation3 + $0x360] sm:$0xff] }
 0x5d2   :  { %v3220_v25 = vpop.permute.xlu1 %3219  ;;  %v3224_v52 = vpop.permute.xlu0 %3223 }
 0x5d3   :  { %v3474_v54 = vmul.f32 %v4331_v50, %v3220_v25  ;;  %v4336_v25 = vld [vmem:[#allocation3 + $0x2c0] sm:$0xff]  ;;  %v4346_v50 = vld [vmem:[#allocation3 + $0x268] sm:$0xff] }
 0x5d4   :  { %v3475_v59 = vmul.f32 %v4336_v25, %v3224_v52 }
 0x5d5   :  { %v3626_v8 = vadd.f32 %v3625_v17, %v3474_v54  ;;  %v4351_v17 = vld [vmem:[#allocation3 + $0x2e0] sm:$0xff] }
 0x5d6   :  { %v3287_v13 = vpop.permute.xlu1 %3286  ;;  %v6682_v31 = vpop.permute.xlu0 %3290 }
 0x5d7   :  { %v3490_v63 = vmul.f32 %v4341_v46, %v3287_v13  ;;  %v3627_v29 = vadd.f32 %v3626_v8, %v3475_v59  ;;  %v3491_v45 = vmul.f32 %v4348_v9, %v6682_v31  ;;  %v4353_v8 = vld [vmem:[#allocation3 + $0x350] sm:$0xff] }
 0x5d9   :  { %v3647_v28 = vadd.f32 %v3646_v55, %v3490_v63  ;;  %v4358_v63 = vld [vmem:[#allocation3 + $0x3c0] sm:$0xff] }
 0x5da   :  { %v6684_v30 = vpop.permute.xlu1 %3353  ;;  %v6686_v14 = vpop.permute.xlu0 %3357 }
 0x5de   :  { %v3228_v43 = vpop.permute.xlu1 %3227  ;;  %v6688_v2 = vpop.permute.xlu0 %3231 }
 0x5df   :  { %v3476_v21 = vmul.f32 %v4337_v11, %v3228_v43  ;;  %v4343_v43 = vld [vmem:[#allocation3 + $0x260] sm:$0xff]  ;;  %v3477_v7 = vmul.f32 %v4344_v5, %v6688_v2  ;;  %v4355_v11 = vld [vmem:[#allocation3 + $0x358] sm:$0xff] }
 0x5e1   :  { %v3628_v36 = vadd.f32 %v3627_v29, %v3476_v21  ;;  %v4359_v29 = vld [vmem:[#allocation3 + $0x3c8] sm:$0xff] }
 0x5e2   :  { %v6690_v41 = vpop.permute.xlu1 %3294  ;;  %v3169_v60 = vpop.permute.xlu0 %3168 }
 0x5e3   :  { %v3462_v48 = vmul.f32 %v4342_v61, %v3169_v60  ;;  %v4347_v60 = vld [vmem:[#allocation3 + $0x3b0] sm:$0xff]  ;;  %v3492_v10 = vmul.f32 %v4350_v3, %v6690_v41 }
 0x5e4   :  { %v3505_v37 = vmul.f32 %v4347_v60, %v6680_v19  ;;  %v3648_v19 = vadd.f32 %v3647_v28, %v3491_v45  ;;  %v4365_v45 = vld [vmem:[#allocation3 + $0x3e0] sm:$0xff] }
 0x5e5   :  { %v3609_v24 = vadd.f32 %v6672_v40, %v3462_v48  ;;  %v3629_v40 = vadd.f32 %v3628_v36, %v3477_v7  ;;  %v4361_v36 = vld [vmem:[#allocation3 + $0x3d0] sm:$0xff]  ;;  %v4362_v7 = vld [vmem:[#allocation3 + $0x368] sm:$0xff] }
 0x5e6   :  { %v6692_v26 = vpop.permute.xlu1 %3361  ;;  %v6694_v6 = vpop.permute.xlu0 %3235  ;;  %v3667_v38 = vadd.f32 %v3666_v16, %v3505_v37  ;;  %v3649_v41 = vadd.f32 %v3648_v19, %v3492_v10 }
 0x5e7   :  { %v3478_v13 = vmul.f32 %v4345_v49, %v6694_v6  ;;  %v3508_v61 = vmul.f32 %v4359_v29, %v6692_v26  ;;  %v4364_v26 = vld [vmem:[#allocation3 + $0x3d8] sm:$0xff] }
 0x5e9   :  { %v3630_v56 = vadd.f32 %v3629_v40, %v3478_v13  ;;  %v4366_v40 = vld [vmem:[#allocation3 + $0x370] sm:$0xff] }
 0x5ea   :  { %v6696_v33 = vpop.permute.xlu1 %3298  ;;  %v3173_v53 = vpop.permute.xlu0 %3172 }
 0x5eb   :  { %v3463_v18 = vmul.f32 %v4343_v43, %v3173_v53  ;;  %v3506_v53 = vmul.f32 %v4349_v22, %v6684_v30  ;;  %v3493_v31 = vmul.f32 %v4353_v8, %v6696_v33  ;;  %v4354_v30 = vld [vmem:[#allocation3 + $0x2e8] sm:$0xff]  ;;  %v3507_v33 = vmul.f32 %v4358_v63, %v6686_v14  ;;  %v4363_v14 = vld [vmem:[#allocation3 + $0x2f8] sm:$0xff] }
 0x5ed   :  { %v3610_v27 = vadd.f32 %v3609_v24, %v3463_v18  ;;  %v3668_v59 = vadd.f32 %v3667_v38, %v3506_v53 }
 0x5ee   :  { %v6698_v1 = vpop.permute.xlu1 %3365  ;;  %v6700_v12 = vpop.permute.xlu0 %3239 }
 0x5ef   :  { %v3479_v6 = vmul.f32 %v4351_v17, %v6700_v12  ;;  %v3509_v43 = vmul.f32 %v4361_v36, %v6698_v1 }
 0x5f1   :  { %v3631_v35 = vadd.f32 %v3630_v56, %v3479_v6  ;;  %v4367_v6 = vld [vmem:[#allocation3 + $0x3e8] sm:$0xff] }
 0x5f2   :  { %v6702_v42 = vpop.permute.xlu1 %3302  ;;  %v3177_v51 = vpop.permute.xlu0 %3176 }
 0x5f3   :  { %v3464_v54 = vmul.f32 %v4346_v50, %v3177_v51  ;;  %v4352_v51 = vld [vmem:[#allocation3 + $0x270] sm:$0xff]  ;;  %v3494_v21 = vmul.f32 %v4355_v11, %v6702_v42  ;;  %v3669_v42 = vadd.f32 %v3668_v59, %v3507_v33 }
 0x5f5   :  { %v3611_v0 = vadd.f32 %v3610_v27, %v3464_v54  ;;  %v3670_v50 = vadd.f32 %v3669_v42, %v3508_v61 }
 0x5f6   :  { %v6704_v58 = vpop.permute.xlu1 %3369  ;;  %v3244_v23 = vpop.permute.xlu0 %3243 }
 0x5f7   :  { %v3480_v25 = vmul.f32 %v4354_v30, %v3244_v23  ;;  %v3650_v23 = vadd.f32 %v3649_v41, %v3493_v31  ;;  %v3510_v54 = vmul.f32 %v4364_v26, %v6704_v58  ;;  %v3671_v9 = vadd.f32 %v3670_v50, %v3509_v43  ;;  %v4368_v58 = vld [vmem:[#allocation3 + $0x378] sm:$0xff] }
 0x5f9   :  { %v3632_v48 = vadd.f32 %v3631_v35, %v3480_v25  ;;  %v3651_v18 = vadd.f32 %v3650_v23, %v3494_v21  ;;  %v3672_v17 = vadd.f32 %v3671_v9, %v3510_v54  ;;  %v4369_v25 = vld [vmem:[#allocation3 + $0x3f0] sm:$0xff] }
 0x5fa   :  { %v3307_v62 = vpop.permute.xlu1 %3306  ;;  %v3181_v52 = vpop.permute.xlu0 %3180 }
 0x5fb   :  { %v3465_v4 = vmul.f32 %v4352_v51, %v3181_v52  ;;  %v3495_v55 = vmul.f32 %v4360_v47, %v3307_v62 }
 0x5fd   :  { %v3612_v12 = vadd.f32 %v3611_v0, %v3465_v4  ;;  %v3652_v60 = vadd.f32 %v3651_v18, %v3495_v55 }
 0x5fe   :  { %v3374_v2 = vpop.permute.xlu1 %3373  ;;  %v3248_v34 = vpop.permute.xlu0 %3247 }
 0x5ff   :  { %v3481_v39 = vmul.f32 %v4356_v44, %v3248_v34  ;;  %v3511_v22 = vmul.f32 %v4365_v45, %v3374_v2 }
 0x601   :  { %v3633_v5 = vadd.f32 %v3632_v48, %v3481_v39  ;;  %v3673_v31 = vadd.f32 %v3672_v17, %v3511_v22  ;;  %v4370_v39 = vld [vmem:[#allocation3 + $0x3f8] sm:$0xff] }
 0x602   :  { %v3311_v57 = vpop.permute.xlu1 %3310  ;;  %v3185_v15 = vpop.permute.xlu0 %3184 }
 0x603   :  { %v3466_v46 = vmul.f32 %v4357_v32, %v3185_v15  ;;  %v3496_v24 = vmul.f32 %v4362_v7, %v3311_v57 }
 0x605   :  { %v3613_v52 = vadd.f32 %v3612_v12, %v3466_v46  ;;  %v3653_v3 = vadd.f32 %v3652_v60, %v3496_v24 }
 0x606   :  { %v3378_v16 = vpop.permute.xlu1 %3377  ;;  %v3252_v28 = vpop.permute.xlu0 %3251 }
 0x607   :  { %v3614_v49 = vrot.slane %v3613_v52, 4  ;;  %v3482_v13 = vmul.f32 %v4363_v14, %v3252_v28  ;;  %v3512_v51 = vmul.f32 %v4367_v6, %v3378_v16 }
 0x609   :  { %v3615_v62 = vadd.f32 %v3614_v49, %v3613_v52  ;;  %v3634_v37 = vadd.f32 %v3633_v5, %v3482_v13  ;;  %v3674_v41 = vadd.f32 %v3673_v31, %v3512_v51 }
 0x60a   :  { %v3315_v1 = vpop.permute.xlu1 %3314  ;;  %v3319_v53 = vpop.permute.xlu0 %3318 }
 0x60b   :  { %v3616_v10 = vrot.slane %v3615_v62, 2  ;;  %v3635_v34 = vrot.slane %v3634_v37, 4  ;;  %v3497_v27 = vmul.f32 %v4366_v40, %v3315_v1  ;;  %v3498_v8 = vmul.f32 %v4368_v58, %v3319_v53 }
 0x60d   :  { %v3617_v4 = vadd.f32 %v3616_v10, %v3615_v62  ;;  %v3636_v38 = vadd.f32 %v3635_v34, %v3634_v37  ;;  %v3654_v19 = vadd.f32 %v3653_v3, %v3497_v27 }
 0x60e   :  { %v3382_v56 = vpop.permute.xlu1 %3381 }
 0x60f   :  { %v3618_v0 = vrot.slane %v3617_v4, 1  ;;  %v3637_v30 = vrot.slane %v3636_v38, 2  ;;  %v3655_v2 = vadd.f32 %v3654_v19, %v3498_v8  ;;  %v3513_v59 = vmul.f32 %v4369_v25, %v3382_v56 }
 0x611   :  { %v3619_v11 = vadd.f32 %v3618_v0, %v3617_v4  ;;  %v3638_v21 = vadd.f32 %v3637_v30, %v3636_v38  ;;  %v3656_v57 = vrot.slane %v3655_v2, 4  ;;  %v3675_v15 = vadd.f32 %v3674_v41, %v3513_v59 }
 0x612   :  { %v3386_v35 = vpop.permute.xlu1 %3385 }
 0x613   :  { %v3639_v12 = vrot.slane %v3638_v21, 1  ;;  %v3657_v44 = vadd.f32 %v3656_v57, %v3655_v2  ;;  %v3514_v32 = vmul.f32 %v4370_v39, %v3386_v35  ;;  %v3694_v46 = vsel %vm2831_vm1, %v3619_v11, %v6658_v20 }
 0x615   :  { %v3640_v63 = vadd.f32 %v3639_v12, %v3638_v21  ;;  %v3658_v33 = vrot.slane %v3657_v44, 2  ;;  %v3676_v29 = vadd.f32 %v3675_v15, %v3514_v32 }
 0x617   :  { %v3659_v61 = vadd.f32 %v3658_v33, %v3657_v44  ;;  %v3677_v23 = vrot.slane %v3676_v29, 4  ;;  %v3695_v48 = vsel %vm2833_vm2, %v3640_v63, %v3694_v46 }
 0x619   :  { %v3660_v47 = vrot.slane %v3659_v61, 1  ;;  %v3678_v55 = vadd.f32 %v3677_v23, %v3676_v29 }
 0x61b   :  { %v3661_v52 = vadd.f32 %v3660_v47, %v3659_v61  ;;  %v3679_v42 = vrot.slane %v3678_v55, 2 }
 0x61d   :  { %v3680_v36 = vadd.f32 %v3679_v42, %v3678_v55  ;;  %v3696_v43 = vsel %vm2835_vm5, %v3661_v52, %v3695_v48 }
 0x61f   :  { %v3681_v18 = vrot.slane %v3680_v36, 1 }
 0x621   :  { %v3682_v16 = vadd.f32 %v3681_v18, %v3680_v36 }
 0x623   :  { %v3697_v20 = vsel %vm2837_vm6, %v3682_v16, %v3696_v43 }
 0x624   :  { %3699 = vst [vmem:[#allocation11] sm:$0xff] %v3697_v20 }
 0x625   :  { %4492 = shalt.err (!%p4489_p2)
}
 0x626   :  { %s4493_s14 = scalar_lea.hbm %s6748_s8, 128 }
 0x627   :  { %p4494_p3 = scmp.ne.s32.totalorder %s6748_s8, %s4493_s14  ;;  %p4497_p4 = scmp.lt.u32.totalorder %s4493_s14, %s6748_s8 }
 0x629   :  { %p4499_p5 = pnand %p4497_p4, %p4494_p3 }
 0x62b   :  { %4502 = shalt.err (!%p4499_p5)
}
 0x62c   :  { %3709 = dma.vmem_to_hbm [thread:$0]  %s3707_s29, 128, %s6748_s8, [#allocation5]  }
 0x62d   :  { %4509 = dma.done.wait [#allocation5], 128  }
 0x62e   :  { %4510 = vsyncadd [#allocation5], 4294967168 }
 0x62f   :  { %4511 = dma.done.wait [#allocation13], 128  }
 0x630   :  { %4512 = vsyncadd [#allocation13], 4294967168 }
 0x631   :  { %3726 = vsyncpa [#allocation4], 1 }
 0x632   :  { %3727 = vsyncpa [#allocation7], 1 }
 0x633   :  { %3728 = vsyncpa [#allocation10], 1 }
 0x634   :  { %3729 = vsyncpa [#allocation5], 1 }
 0x635   :  { %3730 = vsyncpa [#allocation13], 1 }

</bundles_post_ra>
